<compile_context>
chip_gen: v7x
topology: tpu7x:2x2x1
jax: 0.10.0
libtpu: 0.0.40
codegen_flags: <defaults>
</compile_context>

<pallas_src>
import functools
import math

import jax
import jax.numpy as jnp
from jax import lax
from jax.experimental import pallas as pl
from jax.experimental.pallas import tpu as pltpu


def _round_up(x, m):
    return (x + m - 1) // m * m


def _pick_tile(n, cap):
    """Largest tile <= cap dividing n (n is always a multiple of 8 here)."""
    if n <= cap:
        return n
    for c in (512, 256, 128, 64, 32, 16, 8):
        if c <= cap and n % c == 0:
            return c
    return 8


# ----------------------------------------------------------------------------
# Kernel 1: fused patch-embed (SFE + MWT) + Q/K/V projection matmul.
#   Writes the embedding in spatial-major layout (hw_pad, BF * E_pad) so the
#   attention kernel gets leading-batch operands without any transpose.
# ----------------------------------------------------------------------------
def _embed_kernel(x_ref, w_ref, b_ref, o_ref):
    acc = jnp.dot(x_ref[0], w_ref[...], preferred_element_type=jnp.float32)
    o_ref[...] = (acc + b_ref[...]).astype(o_ref.dtype)


def fused_embed(patches, w5, b5, *, sect):
    """patches: (BF, hw_pad, Kd) bf16; w5: (Kd, 5*sect) bf16; b5: (1, 5*sect) f32.
    Returns (hw_pad, BF * 5*sect) bf16, spatial-major / frame-minor layout."""
    BF, hw_pad, Kd = patches.shape
    e_pad = w5.shape[1]
    n_e = e_pad // sect                      # one output tile per 128-lane section
    sp_t = _pick_tile(hw_pad, 256)
    n_sp = hw_pad // sp_t

    # Scoped-VMEM derived from actual block sizes (double-buffered) + headroom.
    vmem = (2 * (sp_t * Kd * 2) + 2 * (Kd * sect * 2)
            + 2 * (sect * 4) + 2 * (sp_t * sect * 2))
    vmem_limit = int(min(40 * 1024 * 1024, 2 * vmem + 16 * 1024 * 1024))

    return pl.pallas_call(
        _embed_kernel,
        out_shape=jax.ShapeDtypeStruct((hw_pad, BF * e_pad), jnp.bfloat16),
        grid=(n_e, BF, n_sp),                # section outermost: weight fetched once
        in_specs=[
            pl.BlockSpec((1, sp_t, Kd), lambda j, b, s: (b, s, 0)),
            pl.BlockSpec((Kd, sect), lambda j, b, s: (0, j)),
            pl.BlockSpec((1, sect), lambda j, b, s: (0, j)),
        ],
        out_specs=pl.BlockSpec((sp_t, sect), lambda j, b, s: (s, b * n_e + j)),
        compiler_params=pltpu.CompilerParams(
            dimension_semantics=("parallel", "parallel", "parallel"),
            vmem_limit_bytes=vmem_limit,
        ),
    )(patches, w5, b5)


# ----------------------------------------------------------------------------
# Kernel 2: DAMA cross-frame attention + spatial partial sums, gridded over
#   spatial tiles (fully parallel).  Emits per-tile partial sums
#   [space_sum | freq_sum | attn_sum] of width 3*sect; tiny epilogue is in JAX.
# ----------------------------------------------------------------------------
def _fuse_kernel(emb_ref, out_ref, *, sect, dim, num_heads, hw, tn):
    L = emb_ref.shape[1]                     # frames in this chunk (= BF)
    dh = dim // num_heads
    scale = 1.0 / math.sqrt(dh)

    # Spatial rows >= hw are zero-padded patches (embed == bias, finite); mask
    # their contribution at every reduction point with a select (NaN-safe).
    n0 = pl.program_id(0) * tn
    valid = (lax.broadcasted_iota(jnp.int32, (tn, 1, 1), 0) + n0) < hw   # (tn,1,1)

    sp = emb_ref[:, :, 0 * sect:1 * sect]    # (tn, L, sect) bf16, lane-aligned views
    fr = emb_ref[:, :, 1 * sect:2 * sect]
    q = emb_ref[:, :, 2 * sect:3 * sect]
    k = emb_ref[:, :, 3 * sect:4 * sect]
    v = emb_ref[:, :, 4 * sect:5 * sect]

    zero_bf = jnp.bfloat16(0)
    sp_sum = jnp.sum(jnp.where(valid, sp, zero_bf).astype(jnp.float32), axis=0)
    fr_sum = jnp.sum(jnp.where(valid, fr, zero_bf).astype(jnp.float32), axis=0)

    head_sums = []
    for h in range(num_heads):               # small static head loop; MXU inside
        sl = slice(h * dh, (h + 1) * dh)
        qh = q[:, :, sl]                      # (tn, L, dh) bf16
        kh = k[:, :, sl]
        vh = v[:, :, sl]
        s = jnp.einsum('nqd,nkd->nqk', qh, kh,
                       preferred_element_type=jnp.float32) * scale      # (tn, L, L)
        s = s - jnp.max(s, axis=-1, keepdims=True)
        e = jnp.exp(s)
        p = e * pl.reciprocal(jnp.sum(e, axis=-1, keepdims=True), approx=True)
        oh = jnp.einsum('nqk,nkd->nqd', p.astype(jnp.bfloat16), vh,
                        preferred_element_type=jnp.float32)             # (tn, L, dh)
        head_sums.append(jnp.sum(jnp.where(valid, oh, 0.0), axis=0))    # (L, dh)

    attn_sum = jnp.concatenate(head_sums, axis=-1)                      # (L, dim)
    if sect > dim:
        attn_sum = jnp.concatenate(
            [attn_sum, jnp.zeros((L, sect - dim), jnp.float32)], axis=-1)

    # Single lane-dense write per grid step.
    out_ref[0, :, :] = jnp.concatenate([sp_sum, fr_sum, attn_sum], axis=-1)


def dama_fuse(emb3, *, sect, dim, num_heads, hw):
    """emb3: (hw_pad, BF, E_pad) bf16 -> per-tile partial sums (n_tiles, BF, 3*sect) f32."""
    hw_pad, L, e_pad = emb3.shape
    budget = 4 * 1024 * 1024                               # per-buffer emb block budget
    tn_max = max(8, (budget // (L * e_pad * 2)) // 8 * 8)
    tn = _pick_tile(hw_pad, min(tn_max, 512))
    n_tiles = hw_pad // tn
    out_w = 3 * sect

    kernel = functools.partial(_fuse_kernel, sect=sect, dim=dim,
                               num_heads=num_heads, hw=hw, tn=tn)
    vmem = 2 * (tn * L * e_pad * 2) + 2 * (L * out_w * 4)
    vmem_limit = int(min(40 * 1024 * 1024, 2 * vmem + 16 * 1024 * 1024))

    return pl.pallas_call(
        kernel,
        out_shape=jax.ShapeDtypeStruct((n_tiles, L, out_w), jnp.float32),
        grid=(n_tiles,),
        in_specs=[pl.BlockSpec((tn, L, e_pad), lambda i: (i, 0, 0))],
        out_specs=pl.BlockSpec((1, L, out_w), lambda i: (i, 0, 0)),
        compiler_params=pltpu.CompilerParams(
            dimension_semantics=("parallel",),
            vmem_limit_bytes=vmem_limit,
        ),
    )(emb3)


# ----------------------------------------------------------------------------
# DAMA forward (chunked over frames, like the PyTorch module)
# ----------------------------------------------------------------------------
def dama_forward(x, params, *, dim, num_heads, batch_size):
    B, K, C, H, W = x.shape
    assert H % 32 == 0 and W % 32 == 0 and dim % num_heads == 0
    h, w = H // 32, W // 32
    hw = h * w
    hw_pad = _round_up(hw, 8)
    Kd = C * 32 * 32
    sect = _round_up(dim, 128)               # per-section lane width
    e_pad = 5 * sect

    def pad_cols(a):
        return jnp.pad(a, ((0, 0), (0, sect - dim))) if sect > dim else a

    # Fold SFE / MWT patch-embed weights and the attention in-projections into one
    # weight matrix with lane-aligned sections: [space | freq | q | k | v].
    w_q = params['w_sfe'] @ params['wq']
    b_q = params['b_sfe'] @ params['wq'] + params['bq']
    w_k = params['w_mwt'] @ params['wk']
    b_k = params['b_mwt'] @ params['wk'] + params['bk']
    w_v = params['w_mwt'] @ params['wv']
    b_v = params['b_mwt'] @ params['wv'] + params['bv']
    w5 = jnp.concatenate([pad_cols(params['w_sfe']), pad_cols(params['w_mwt']),
                          pad_cols(w_q), pad_cols(w_k), pad_cols(w_v)],
                         axis=1).astype(jnp.bfloat16)
    b5 = jnp.concatenate([pad_cols(params['b_sfe']), pad_cols(params['b_mwt']),
                          pad_cols(b_q), pad_cols(b_k), pad_cols(b_v)],
                         axis=1).astype(jnp.float32)

    mean_fused = jnp.zeros((B, dim), jnp.float32)
    mean_space = jnp.zeros((B, dim), jnp.float32)
    mean_freq = jnp.zeros((B, dim), jnp.float32)

    # TODO(synk): fold the frame-chunk loop into the kernels (extra grid axis /
    #             lax.scan) to avoid re-fetching the fused weight per chunk.
    for start in range(0, K, batch_size):
        end = min(start + batch_size, K)
        F_ = end - start
        BF = B * F_
        frames = x[:, start:end].reshape(BF, C, H, W).astype(jnp.bfloat16)

        # TODO(synk): fold this 32x32 patch gather (im2col) into the embed kernel
        #             (BlockSpec over NCHW row slabs / manual DMA gather) so the
        #             patch tensor never round-trips through HBM.
        patches = (frames.reshape(BF, C, h, 32, w, 32)
                   .transpose(0, 2, 4, 1, 3, 5)
                   .reshape(BF, hw, Kd))
        if hw_pad > hw:
            patches = jnp.pad(patches, ((0, 0), (0, hw_pad - hw), (0, 0)))

        emb2d = fused_embed(patches, w5, b5, sect=sect)     # (hw_pad, BF*e_pad) bf16
        emb3 = emb2d.reshape(hw_pad, BF, e_pad)             # free reshape, no copy

        partial = dama_fuse(emb3, sect=sect, dim=dim, num_heads=num_heads, hw=hw)
        sums = jnp.sum(partial, axis=0)                     # (BF, 3*sect) f32
        inv_n = 1.0 / hw
        sm = sums[:, 0 * sect:0 * sect + dim] * inv_n       # spatial means (BF, dim)
        fm = sums[:, 1 * sect:1 * sect + dim] * inv_n
        am = sums[:, 2 * sect:2 * sect + dim] * inv_n

        # Tiny per-frame epilogue in plain JAX (exact: out-proj / gating commute
        # with the linear spatial mean); keeps the kernel grid fully parallel.
        attn_out = am @ params['wo'] + params['bo']
        hidden = jax.nn.relu(sm @ params['g1'][:dim] + fm @ params['g1'][dim:]
                             + params['gb1'])
        logits = hidden @ params['g2'] + params['gb2']
        gw = jax.nn.softmax(logits, axis=1)                 # (BF, 2)
        fused = gw[:, 0:1] * sm + gw[:, 1:2] * attn_out

        mean_fused = mean_fused + fused.reshape(B, F_, dim).sum(axis=1)
        mean_space = mean_space + sm.reshape(B, F_, dim).sum(axis=1)
        mean_freq = mean_freq + fm.reshape(B, F_, dim).sum(axis=1)

    return {'fused': mean_fused / K, 'space': mean_space / K, 'freq': mean_freq / K}


# ----------------------------------------------------------------------------
# Deterministic parameter init
# ----------------------------------------------------------------------------
def init_params(key, *, in_channels, dim):
    ks = jax.random.split(key, 16)
    patch = in_channels * 32 * 32

    def nrm(k, shape, scale=0.02):
        return scale * jax.random.normal(k, shape, jnp.float32)

    return {
        'w_sfe': nrm(ks[0], (patch, dim)), 'b_sfe': nrm(ks[1], (1, dim)),
        'w_mwt': nrm(ks[2], (patch, dim)), 'b_mwt': nrm(ks[3], (1, dim)),
        'wq': nrm(ks[4], (dim, dim)), 'bq': nrm(ks[5], (1, dim)),
        'wk': nrm(ks[6], (dim, dim)), 'bk': nrm(ks[7], (1, dim)),
        'wv': nrm(ks[8], (dim, dim)), 'bv': nrm(ks[9], (1, dim)),
        'wo': nrm(ks[10], (dim, dim)), 'bo': nrm(ks[11], (1, dim)),
        'g1': nrm(ks[12], (2 * dim, dim // 2)), 'gb1': nrm(ks[13], (1, dim // 2)),
        'g2': nrm(ks[14], (dim // 2, 2)), 'gb2': nrm(ks[15], (1, 2)),
    }


if __name__ == "__main__":
    key = jax.random.PRNGKey(0)
    kx, kp = jax.random.split(key)

    # Small shapes consistent with the module (H, W must be multiples of 32).
    B, K, C, H, W = 2, 4, 3, 64, 64
    dim, num_heads, chunk = 32, 4, 2

    x = jax.random.normal(kx, (B, K, C, H, W), jnp.float32)
    params = init_params(kp, in_channels=C, dim=dim)

    fwd = jax.jit(functools.partial(dama_forward, dim=dim, num_heads=num_heads,
                                    batch_size=chunk))
    out = fwd(x, params)
    out = jax.tree_util.tree_map(jax.block_until_ready, out)

    assert out['fused'].shape == (B, dim)
    assert out['space'].shape == (B, dim)
    assert out['freq'].shape == (B, dim)
    for v in out.values():
        assert bool(jnp.all(jnp.isfinite(v)))
    print("KERNEL_OK")
</pallas_src>

<mosaic_0001>
module attributes {stable_mosaic.version = 11 : i64} {
  func.func @_embed_kernel(%arg0: i32, %arg1: i32, %arg2: i32, %arg3: memref<1x8x3072xbf16, #tpu.memory_space<vmem>>, %arg4: memref<3072x128xbf16, #tpu.memory_space<vmem>>, %arg5: memref<1x128xf32, #tpu.memory_space<vmem>>, %arg6: memref<8x128xbf16, #tpu.memory_space<vmem>>) attributes {dimension_semantics = [#tpu.dimension_semantics<parallel>, #tpu.dimension_semantics<parallel>, #tpu.dimension_semantics<parallel>], iteration_bounds = array<i64: 5, 4, 1>, scalar_prefetch = 0 : i64, scratch_operands = 0 : i64, tpu.core_type = #tpu.core_type<tc>, window_params = [{transform_indices = @transform_0, window_bounds = array<i64: 1, 8, 3072>}, {transform_indices = @transform_1, window_bounds = array<i64: 3072, 128>}, {transform_indices = @transform_2, window_bounds = array<i64: 1, 128>}, {transform_indices = @transform_3, window_bounds = array<i64: 8, 128>}]} {
    %c0 = arith.constant 0 : index
    %c0_0 = arith.constant 0 : index
    %c0_1 = arith.constant 0 : index
    %0 = vector.load %arg3[%c0, %c0_0, %c0_1] : memref<1x8x3072xbf16, #tpu.memory_space<vmem>>, vector<1x8x3072xbf16>
    %1 = vector.shape_cast %0 : vector<1x8x3072xbf16> to vector<8x3072xbf16>
    %c0_2 = arith.constant 0 : index
    %c0_3 = arith.constant 0 : index
    %2 = vector.load %arg4[%c0_2, %c0_3] : memref<3072x128xbf16, #tpu.memory_space<vmem>>, vector<3072x128xbf16>
    %cst = arith.constant dense<0.000000e+00> : vector<8x128xf32>
    %3 = tpu.matmul %1, %2, %cst {dimension_numbers = #tpu.dot_dimension_numbers<[1], [0], [0], [1], [0, 0, 1, 1], [], []>} : vector<8x3072xbf16>, vector<3072x128xbf16>, vector<8x128xf32> -> vector<8x128xf32>
    %c0_4 = arith.constant 0 : index
    %c0_5 = arith.constant 0 : index
    %4 = vector.load %arg5[%c0_4, %c0_5] : memref<1x128xf32, #tpu.memory_space<vmem>>, vector<1x128xf32>
    %5 = vector.broadcast %4 : vector<1x128xf32> to vector<8x128xf32>
    %6 = arith.addf %3, %5 : vector<8x128xf32>
    %7 = arith.truncf %6 : vector<8x128xf32> to vector<8x128xbf16>
    %c0_6 = arith.constant 0 : index
    %c0_7 = arith.constant 0 : index
    %8 = vector.load %arg6[%c0_6, %c0_7] : memref<8x128xbf16, #tpu.memory_space<vmem>>, vector<8x128xbf16>
    tpu.vector_store %arg6[%c0_6, %c0_7], %7 {strides = array<i32>} : memref<8x128xbf16, #tpu.memory_space<vmem>>, vector<8x128xbf16>,
    return
  }
  func.func @transform_0(%arg0: i32, %arg1: i32, %arg2: i32) -> (i32, i32, i32) {
    %c0_i32 = arith.constant 0 : i32
    %c0_i32_0 = arith.constant 0 : i32
    return %arg1, %arg2, %c0_i32 : i32, i32, i32
  }
  func.func @transform_1(%arg0: i32, %arg1: i32, %arg2: i32) -> (i32, i32) {
    %c0_i32 = arith.constant 0 : i32
    %c0_i32_0 = arith.constant 0 : i32
    return %c0_i32, %arg0 : i32, i32
  }
  func.func @transform_2(%arg0: i32, %arg1: i32, %arg2: i32) -> (i32, i32) {
    %c0_i32 = arith.constant 0 : i32
    %c0_i32_0 = arith.constant 0 : i32
    return %c0_i32, %arg0 : i32, i32
  }
  func.func @transform_3(%arg0: i32, %arg1: i32, %arg2: i32) -> (i32, i32) {
    %c5_i32 = arith.constant 5 : i32
    %0 = arith.muli %arg1, %c5_i32 : i32
    %1 = arith.addi %0, %arg0 : i32
    %c0_i32 = arith.constant 0 : i32
    return %arg2, %1 : i32, i32
  }
}

module attributes {stable_mosaic.version = 11 : i64} {
  func.func @_fuse_kernel(%arg0: i32, %arg1: memref<8x4x640xbf16, #tpu.memory_space<vmem>>, %arg2: memref<1x4x384xf32, #tpu.memory_space<vmem>>) attributes {dimension_semantics = [#tpu.dimension_semantics<parallel>], iteration_bounds = array<i64: 1>, scalar_prefetch = 0 : i64, scratch_operands = 0 : i64, tpu.core_type = #tpu.core_type<tc>, window_params = [{transform_indices = @transform_0, window_bounds = array<i64: 8, 4, 640>}, {transform_indices = @transform_1, window_bounds = array<i64: 1, 4, 384>}]} {
    %c8_i32 = arith.constant 8 : i32
    %0 = arith.muli %arg0, %c8_i32 : i32
    %1 = tpu.iota {dimensions = array<i32: 0>} : vector<8x1x1xi32>
    %2 = vector.broadcast %0 : i32 to vector<8x1x1xi32>
    %3 = arith.addi %1, %2 : vector<8x1x1xi32>
    %c4_i32 = arith.constant 4 : i32
    %4 = vector.broadcast %c4_i32 : i32 to vector<8x1x1xi32>
    %5 = arith.cmpi slt, %3, %4 : vector<8x1x1xi32>
    %c0 = arith.constant 0 : index
    %c0_0 = arith.constant 0 : index
    %c0_1 = arith.constant 0 : index
    %6 = vector.load %arg1[%c0, %c0_0, %c0_1] : memref<8x4x640xbf16, #tpu.memory_space<vmem>>, vector<8x4x128xbf16>
    %c0_2 = arith.constant 0 : index
    %c0_3 = arith.constant 0 : index
    %c128 = arith.constant 128 : index
    %7 = vector.load %arg1[%c0_2, %c0_3, %c128] : memref<8x4x640xbf16, #tpu.memory_space<vmem>>, vector<8x4x128xbf16>
    %c0_4 = arith.constant 0 : index
    %c0_5 = arith.constant 0 : index
    %c256 = arith.constant 256 : index
    %8 = vector.load %arg1[%c0_4, %c0_5, %c256] : memref<8x4x640xbf16, #tpu.memory_space<vmem>>, vector<8x4x128xbf16>
    %c0_6 = arith.constant 0 : index
    %c0_7 = arith.constant 0 : index
    %c384 = arith.constant 384 : index
    %9 = vector.load %arg1[%c0_6, %c0_7, %c384] : memref<8x4x640xbf16, #tpu.memory_space<vmem>>, vector<8x4x128xbf16>
    %c0_8 = arith.constant 0 : index
    %c0_9 = arith.constant 0 : index
    %c512 = arith.constant 512 : index
    %10 = vector.load %arg1[%c0_8, %c0_9, %c512] : memref<8x4x640xbf16, #tpu.memory_space<vmem>>, vector<8x4x128xbf16>
    %cst = arith.constant 0.000000e+00 : bf16
    %11 = vector.shape_cast %5 : vector<8x1x1xi1> to vector<8x1x1xi1>
    %12 = vector.broadcast %11 : vector<8x1x1xi1> to vector<8x4x128xi1>
    %13 = vector.broadcast %cst : bf16 to vector<8x4x128xbf16>
    %14 = arith.select %12, %6, %13 : vector<8x4x128xi1>, vector<8x4x128xbf16>
    %15 = arith.extf %14 : vector<8x4x128xbf16> to vector<8x4x128xf32>
    %cst_10 = arith.constant dense<0.000000e+00> : vector<4x128xf32>
    %16 = vector.multi_reduction <add>, %15, %cst_10 [0] : vector<8x4x128xf32> to vector<4x128xf32>
    %cst_11 = arith.constant 0.000000e+00 : bf16
    %17 = vector.shape_cast %5 : vector<8x1x1xi1> to vector<8x1x1xi1>
    %18 = vector.broadcast %17 : vector<8x1x1xi1> to vector<8x4x128xi1>
    %19 = vector.broadcast %cst_11 : bf16 to vector<8x4x128xbf16>
    %20 = arith.select %18, %7, %19 : vector<8x4x128xi1>, vector<8x4x128xbf16>
    %21 = arith.extf %20 : vector<8x4x128xbf16> to vector<8x4x128xf32>
    %cst_12 = arith.constant dense<0.000000e+00> : vector<4x128xf32>
    %22 = vector.multi_reduction <add>, %21, %cst_12 [0] : vector<8x4x128xf32> to vector<4x128xf32>
    %23 = vector.extract_strided_slice %8 {offsets = [0, 0, 0], sizes = [8, 4, 8], strides = [1, 1, 1]} : vector<8x4x128xbf16> to vector<8x4x8xbf16>
    %24 = vector.extract_strided_slice %9 {offsets = [0, 0, 0], sizes = [8, 4, 8], strides = [1, 1, 1]} : vector<8x4x128xbf16> to vector<8x4x8xbf16>
    %25 = vector.extract_strided_slice %10 {offsets = [0, 0, 0], sizes = [8, 4, 8], strides = [1, 1, 1]} : vector<8x4x128xbf16> to vector<8x4x8xbf16>
    "tpu.trace_start"() <{level = 10 : i32, message = "nqd,nkd->nqk"}> : () -> ()
    %cst_13 = arith.constant dense<0.000000e+00> : vector<8x4x4xf32>
    %26 = tpu.matmul %23, %24, %cst_13 {dimension_numbers = #tpu.dot_dimension_numbers<[2], [2], [1], [1], [0, 0, 0, 1, 1, 1], [0], [0]>} : vector<8x4x8xbf16>, vector<8x4x8xbf16>, vector<8x4x4xf32> -> vector<8x4x4xf32>
    "tpu.trace_stop"() : () -> ()
    %cst_14 = arith.constant 0.353553385 : f32
    %27 = vector.broadcast %cst_14 : f32 to vector<8x4x4xf32>
    %28 = arith.mulf %26, %27 : vector<8x4x4xf32>
    %cst_15 = arith.constant dense<0xFF800000> : vector<8x4xf32>
    %29 = vector.multi_reduction <maximumf>, %28, %cst_15 [2] : vector<8x4x4xf32> to vector<8x4xf32>
    %30 = vector.shape_cast %29 : vector<8x4xf32> to vector<8x4x1xf32>
    %31 = vector.broadcast %30 : vector<8x4x1xf32> to vector<8x4x4xf32>
    %32 = arith.subf %28, %31 : vector<8x4x4xf32>
    %33 = math.exp %32 : vector<8x4x4xf32>
    %cst_16 = arith.constant dense<0.000000e+00> : vector<8x4xf32>
    %34 = vector.multi_reduction <add>, %33, %cst_16 [2] : vector<8x4x4xf32> to vector<8x4xf32>
    %35 = vector.shape_cast %34 : vector<8x4xf32> to vector<8x4x1xf32>
    %36 = tpu.reciprocal %35 {approx = true} : vector<8x4x1xf32> -> vector<8x4x1xf32>
    %37 = vector.broadcast %36 : vector<8x4x1xf32> to vector<8x4x4xf32>
    %38 = arith.mulf %33, %37 : vector<8x4x4xf32>
    %39 = arith.truncf %38 : vector<8x4x4xf32> to vector<8x4x4xbf16>
    "tpu.trace_start"() <{level = 10 : i32, message = "nqk,nkd->nqd"}> : () -> ()
    %cst_17 = arith.constant dense<0.000000e+00> : vector<8x4x8xf32>
    %40 = tpu.matmul %39, %25, %cst_17 {dimension_numbers = #tpu.dot_dimension_numbers<[2], [1], [1], [2], [0, 0, 0, 1, 1, 2], [0], [0]>} : vector<8x4x4xbf16>, vector<8x4x8xbf16>, vector<8x4x8xf32> -> vector<8x4x8xf32>
    %cst_18 = arith.constant 0.000000e+00 : f32
    "tpu.trace_stop"() : () -> ()
    %41 = vector.shape_cast %5 : vector<8x1x1xi1> to vector<8x1x1xi1>
    %42 = vector.broadcast %41 : vector<8x1x1xi1> to vector<8x4x8xi1>
    %43 = vector.broadcast %cst_18 : f32 to vector<8x4x8xf32>
    %44 = arith.select %42, %40, %43 : vector<8x4x8xi1>, vector<8x4x8xf32>
    %cst_19 = arith.constant dense<0.000000e+00> : vector<4x8xf32>
    %45 = vector.multi_reduction <add>, %44, %cst_19 [0] : vector<8x4x8xf32> to vector<4x8xf32>
    %46 = vector.extract_strided_slice %8 {offsets = [0, 0, 8], sizes = [8, 4, 8], strides = [1, 1, 1]} : vector<8x4x128xbf16> to vector<8x4x8xbf16>
    %47 = vector.extract_strided_slice %9 {offsets = [0, 0, 8], sizes = [8, 4, 8], strides = [1, 1, 1]} : vector<8x4x128xbf16> to vector<8x4x8xbf16>
    %48 = vector.extract_strided_slice %10 {offsets = [0, 0, 8], sizes = [8, 4, 8], strides = [1, 1, 1]} : vector<8x4x128xbf16> to vector<8x4x8xbf16>
    "tpu.trace_start"() <{level = 10 : i32, message = "nqd,nkd->nqk"}> : () -> ()
    %cst_20 = arith.constant dense<0.000000e+00> : vector<8x4x4xf32>
    %49 = tpu.matmul %46, %47, %cst_20 {dimension_numbers = #tpu.dot_dimension_numbers<[2], [2], [1], [1], [0, 0, 0, 1, 1, 1], [0], [0]>} : vector<8x4x8xbf16>, vector<8x4x8xbf16>, vector<8x4x4xf32> -> vector<8x4x4xf32>
    "tpu.trace_stop"() : () -> ()
    %cst_21 = arith.constant 0.353553385 : f32
    %50 = vector.broadcast %cst_21 : f32 to vector<8x4x4xf32>
    %51 = arith.mulf %49, %50 : vector<8x4x4xf32>
    %cst_22 = arith.constant dense<0xFF800000> : vector<8x4xf32>
    %52 = vector.multi_reduction <maximumf>, %51, %cst_22 [2] : vector<8x4x4xf32> to vector<8x4xf32>
    %53 = vector.shape_cast %52 : vector<8x4xf32> to vector<8x4x1xf32>
    %54 = vector.broadcast %53 : vector<8x4x1xf32> to vector<8x4x4xf32>
    %55 = arith.subf %51, %54 : vector<8x4x4xf32>
    %56 = math.exp %55 : vector<8x4x4xf32>
    %cst_23 = arith.constant dense<0.000000e+00> : vector<8x4xf32>
    %57 = vector.multi_reduction <add>, %56, %cst_23 [2] : vector<8x4x4xf32> to vector<8x4xf32>
    %58 = vector.shape_cast %57 : vector<8x4xf32> to vector<8x4x1xf32>
    %59 = tpu.reciprocal %58 {approx = true} : vector<8x4x1xf32> -> vector<8x4x1xf32>
    %60 = vector.broadcast %59 : vector<8x4x1xf32> to vector<8x4x4xf32>
    %61 = arith.mulf %56, %60 : vector<8x4x4xf32>
    %62 = arith.truncf %61 : vector<8x4x4xf32> to vector<8x4x4xbf16>
    "tpu.trace_start"() <{level = 10 : i32, message = "nqk,nkd->nqd"}> : () -> ()
    %cst_24 = arith.constant dense<0.000000e+00> : vector<8x4x8xf32>
    %63 = tpu.matmul %62, %48, %cst_24 {dimension_numbers = #tpu.dot_dimension_numbers<[2], [1], [1], [2], [0, 0, 0, 1, 1, 2], [0], [0]>} : vector<8x4x4xbf16>, vector<8x4x8xbf16>, vector<8x4x8xf32> -> vector<8x4x8xf32>
    %cst_25 = arith.constant 0.000000e+00 : f32
    "tpu.trace_stop"() : () -> ()
    %64 = vector.shape_cast %5 : vector<8x1x1xi1> to vector<8x1x1xi1>
    %65 = vector.broadcast %64 : vector<8x1x1xi1> to vector<8x4x8xi1>
    %66 = vector.broadcast %cst_25 : f32 to vector<8x4x8xf32>
    %67 = arith.select %65, %63, %66 : vector<8x4x8xi1>, vector<8x4x8xf32>
    %cst_26 = arith.constant dense<0.000000e+00> : vector<4x8xf32>
    %68 = vector.multi_reduction <add>, %67, %cst_26 [0] : vector<8x4x8xf32> to vector<4x8xf32>
    %69 = vector.extract_strided_slice %8 {offsets = [0, 0, 16], sizes = [8, 4, 8], strides = [1, 1, 1]} : vector<8x4x128xbf16> to vector<8x4x8xbf16>
    %70 = vector.extract_strided_slice %9 {offsets = [0, 0, 16], sizes = [8, 4, 8], strides = [1, 1, 1]} : vector<8x4x128xbf16> to vector<8x4x8xbf16>
    %71 = vector.extract_strided_slice %10 {offsets = [0, 0, 16], sizes = [8, 4, 8], strides = [1, 1, 1]} : vector<8x4x128xbf16> to vector<8x4x8xbf16>
    "tpu.trace_start"() <{level = 10 : i32, message = "nqd,nkd->nqk"}> : () -> ()
    %cst_27 = arith.constant dense<0.000000e+00> : vector<8x4x4xf32>
    %72 = tpu.matmul %69, %70, %cst_27 {dimension_numbers = #tpu.dot_dimension_numbers<[2], [2], [1], [1], [0, 0, 0, 1, 1, 1], [0], [0]>} : vector<8x4x8xbf16>, vector<8x4x8xbf16>, vector<8x4x4xf32> -> vector<8x4x4xf32>
    "tpu.trace_stop"() : () -> ()
    %cst_28 = arith.constant 0.353553385 : f32
    %73 = vector.broadcast %cst_28 : f32 to vector<8x4x4xf32>
    %74 = arith.mulf %72, %73 : vector<8x4x4xf32>
    %cst_29 = arith.constant dense<0xFF800000> : vector<8x4xf32>
    %75 = vector.multi_reduction <maximumf>, %74, %cst_29 [2] : vector<8x4x4xf32> to vector<8x4xf32>
    %76 = vector.shape_cast %75 : vector<8x4xf32> to vector<8x4x1xf32>
    %77 = vector.broadcast %76 : vector<8x4x1xf32> to vector<8x4x4xf32>
    %78 = arith.subf %74, %77 : vector<8x4x4xf32>
    %79 = math.exp %78 : vector<8x4x4xf32>
    %cst_30 = arith.constant dense<0.000000e+00> : vector<8x4xf32>
    %80 = vector.multi_reduction <add>, %79, %cst_30 [2] : vector<8x4x4xf32> to vector<8x4xf32>
    %81 = vector.shape_cast %80 : vector<8x4xf32> to vector<8x4x1xf32>
    %82 = tpu.reciprocal %81 {approx = true} : vector<8x4x1xf32> -> vector<8x4x1xf32>
    %83 = vector.broadcast %82 : vector<8x4x1xf32> to vector<8x4x4xf32>
    %84 = arith.mulf %79, %83 : vector<8x4x4xf32>
    %85 = arith.truncf %84 : vector<8x4x4xf32> to vector<8x4x4xbf16>
    "tpu.trace_start"() <{level = 10 : i32, message = "nqk,nkd->nqd"}> : () -> ()
    %cst_31 = arith.constant dense<0.000000e+00> : vector<8x4x8xf32>
    %86 = tpu.matmul %85, %71, %cst_31 {dimension_numbers = #tpu.dot_dimension_numbers<[2], [1], [1], [2], [0, 0, 0, 1, 1, 2], [0], [0]>} : vector<8x4x4xbf16>, vector<8x4x8xbf16>, vector<8x4x8xf32> -> vector<8x4x8xf32>
    %cst_32 = arith.constant 0.000000e+00 : f32
    "tpu.trace_stop"() : () -> ()
    %87 = vector.shape_cast %5 : vector<8x1x1xi1> to vector<8x1x1xi1>
    %88 = vector.broadcast %87 : vector<8x1x1xi1> to vector<8x4x8xi1>
    %89 = vector.broadcast %cst_32 : f32 to vector<8x4x8xf32>
    %90 = arith.select %88, %86, %89 : vector<8x4x8xi1>, vector<8x4x8xf32>
    %cst_33 = arith.constant dense<0.000000e+00> : vector<4x8xf32>
    %91 = vector.multi_reduction <add>, %90, %cst_33 [0] : vector<8x4x8xf32> to vector<4x8xf32>
    %92 = vector.extract_strided_slice %8 {offsets = [0, 0, 24], sizes = [8, 4, 8], strides = [1, 1, 1]} : vector<8x4x128xbf16> to vector<8x4x8xbf16>
    %93 = vector.extract_strided_slice %9 {offsets = [0, 0, 24], sizes = [8, 4, 8], strides = [1, 1, 1]} : vector<8x4x128xbf16> to vector<8x4x8xbf16>
    %94 = vector.extract_strided_slice %10 {offsets = [0, 0, 24], sizes = [8, 4, 8], strides = [1, 1, 1]} : vector<8x4x128xbf16> to vector<8x4x8xbf16>
    "tpu.trace_start"() <{level = 10 : i32, message = "nqd,nkd->nqk"}> : () -> ()
    %cst_34 = arith.constant dense<0.000000e+00> : vector<8x4x4xf32>
    %95 = tpu.matmul %92, %93, %cst_34 {dimension_numbers = #tpu.dot_dimension_numbers<[2], [2], [1], [1], [0, 0, 0, 1, 1, 1], [0], [0]>} : vector<8x4x8xbf16>, vector<8x4x8xbf16>, vector<8x4x4xf32> -> vector<8x4x4xf32>
    "tpu.trace_stop"() : () -> ()
    %cst_35 = arith.constant 0.353553385 : f32
    %96 = vector.broadcast %cst_35 : f32 to vector<8x4x4xf32>
    %97 = arith.mulf %95, %96 : vector<8x4x4xf32>
    %cst_36 = arith.constant dense<0xFF800000> : vector<8x4xf32>
    %98 = vector.multi_reduction <maximumf>, %97, %cst_36 [2] : vector<8x4x4xf32> to vector<8x4xf32>
    %99 = vector.shape_cast %98 : vector<8x4xf32> to vector<8x4x1xf32>
    %100 = vector.broadcast %99 : vector<8x4x1xf32> to vector<8x4x4xf32>
    %101 = arith.subf %97, %100 : vector<8x4x4xf32>
    %102 = math.exp %101 : vector<8x4x4xf32>
    %cst_37 = arith.constant dense<0.000000e+00> : vector<8x4xf32>
    %103 = vector.multi_reduction <add>, %102, %cst_37 [2] : vector<8x4x4xf32> to vector<8x4xf32>
    %104 = vector.shape_cast %103 : vector<8x4xf32> to vector<8x4x1xf32>
    %105 = tpu.reciprocal %104 {approx = true} : vector<8x4x1xf32> -> vector<8x4x1xf32>
    %106 = vector.broadcast %105 : vector<8x4x1xf32> to vector<8x4x4xf32>
    %107 = arith.mulf %102, %106 : vector<8x4x4xf32>
    %108 = arith.truncf %107 : vector<8x4x4xf32> to vector<8x4x4xbf16>
    "tpu.trace_start"() <{level = 10 : i32, message = "nqk,nkd->nqd"}> : () -> ()
    %cst_38 = arith.constant dense<0.000000e+00> : vector<8x4x8xf32>
    %109 = tpu.matmul %108, %94, %cst_38 {dimension_numbers = #tpu.dot_dimension_numbers<[2], [1], [1], [2], [0, 0, 0, 1, 1, 2], [0], [0]>} : vector<8x4x4xbf16>, vector<8x4x8xbf16>, vector<8x4x8xf32> -> vector<8x4x8xf32>
    %cst_39 = arith.constant 0.000000e+00 : f32
    "tpu.trace_stop"() : () -> ()
    %110 = vector.shape_cast %5 : vector<8x1x1xi1> to vector<8x1x1xi1>
    %111 = vector.broadcast %110 : vector<8x1x1xi1> to vector<8x4x8xi1>
    %112 = vector.broadcast %cst_39 : f32 to vector<8x4x8xf32>
    %113 = arith.select %111, %109, %112 : vector<8x4x8xi1>, vector<8x4x8xf32>
    %cst_40 = arith.constant dense<0.000000e+00> : vector<4x8xf32>
    %114 = vector.multi_reduction <add>, %113, %cst_40 [0] : vector<8x4x8xf32> to vector<4x8xf32>
    %115 = tpu.concatenate %45, %68, %91, %114 in 1 : vector<4x8xf32>, vector<4x8xf32>, vector<4x8xf32>, vector<4x8xf32> -> vector<4x32xf32>
    %cst_41 = arith.constant 0.000000e+00 : f32
    %116 = vector.broadcast %cst_41 : f32 to vector<4x96xf32>
    %117 = tpu.concatenate %115, %116 in 1 : vector<4x32xf32>, vector<4x96xf32> -> vector<4x128xf32>
    %118 = tpu.concatenate %16, %22, %117 in 1 : vector<4x128xf32>, vector<4x128xf32>, vector<4x128xf32> -> vector<4x384xf32>
    %c0_42 = arith.constant 0 : index
    %c0_43 = arith.constant 0 : index
    %c0_44 = arith.constant 0 : index
    %119 = vector.load %arg2[%c0_42, %c0_43, %c0_44] : memref<1x4x384xf32, #tpu.memory_space<vmem>>, vector<1x4x384xf32>
    %120 = vector.shape_cast %119 : vector<1x4x384xf32> to vector<4x384xf32>
    %121 = vector.shape_cast %118 : vector<4x384xf32> to vector<1x4x384xf32>
    tpu.vector_store %arg2[%c0_42, %c0_43, %c0_44], %121 {strides = array<i32>} : memref<1x4x384xf32, #tpu.memory_space<vmem>>, vector<1x4x384xf32>,
    return
  }
  func.func @transform_0(%arg0: i32) -> (i32, i32, i32) {
    %c0_i32 = arith.constant 0 : i32
    %c0_i32_0 = arith.constant 0 : i32
    %c0_i32_1 = arith.constant 0 : i32
    return %arg0, %c0_i32, %c0_i32_0 : i32, i32, i32
  }
  func.func @transform_1(%arg0: i32) -> (i32, i32, i32) {
    %c0_i32 = arith.constant 0 : i32
    %c0_i32_0 = arith.constant 0 : i32
    %c0_i32_1 = arith.constant 0 : i32
    return %arg0, %c0_i32, %c0_i32_0 : i32, i32, i32
  }
}

</mosaic_0001>

<bundles_post_ra>
// kernel: dama_forward.6
= control target key start
LH: loop header
LB: loop body
LE: loop exit
PB: predicated region body
PF: predicated region fallthrough
CT: control target
= control target key end

     0   :  { %s4919_s12 = smov 0   ;;  %s4921_s13 = smov 0   ;;  %s5995_s0 = inlined_call_operand.vmem [shape: bf16[4,8,3072], index: 0, kind: input, shape index: {}]   ;;  %s5996_s1 = inlined_call_operand.vmem [shape: bf16[3072,640], index: 1, kind: input, shape index: {}]   ;;  %s5997_s2 = inlined_call_operand.vmem [shape: f32[1,640], index: 2, kind: input, shape index: {}]   ;;  %s5998_s3 = inlined_call_operand.vmem [shape: bf16[8,2560], index: 3, kind: output, shape index: {}]  }
   0x1   :  { %s4923_s14 = smov 0   ;;  %s4925_s15 = smov 0  }
   0x2   :  { %s4927_s16 = smov 0   ;;  %s4929_s17 = smov 0  }
   0x3   :  { %s4931_s18 = smov 0  }
   0x4 LB: > { %s28_s19 = sadd.s32 1, %s4889_s16  ;;  %s32_s20 = sadd.s32 1, %s4893_s17  ;;  %s4897_s18 = sphi %s4931_s18, %s13_s18   ;;  %s4893_s17 = sphi %s4929_s17, %s6004_s17   ;;  %s4889_s16 = sphi %s4927_s16, %s6003_s16   ;;  %s4885_s15 = sphi %s4925_s15, %s6002_s15   ;;  %s4881_s14 = sphi %s4923_s14, %s6001_s14   ;;  %s4877_s13 = sphi %s4921_s13, %s6000_s13   ;;  %s4873_s12 = sphi %s4919_s12, %s5999_s12  }
   0x5   : > { %p30_p0 = scmp.ge.s32.totalorder %s28_s19, 4  ;;  %p74_p1 = scmp.ne.s32.totalorder %s4877_s13, %s4873_s12 }
   0x6   : > { %p75_p2 = scmp.eq.s32.totalorder %s4897_s18, 0  ;;  %s67_s22 = sadd.s32 1, %s4877_s13 }
   0x7   : > { %s6006_s19 = smov (%p30_p0, %s28_s19), 0  ;;  %s6008_s20 = smov (!%p30_p0, %s32_s20), %s4893_s17 }
   0x8   : > { %p76_p3 = por %p75_p2, %p74_p1  ;;  %p34_p4 = scmp.ge.s32.totalorder %s6008_s20, 5 }
   0x9   : > { %p4080_p6 = scmp.ge.s32.totalorder %s4897_s18, 20 }
   0xa   : > { %s6010_s20 = smov (%p34_p4, %s6008_s20), 0 }
   0xb   : > { %s64_s21 = ssub.s32 %s4893_s17, %s6010_s20  ;;  %158 = sbr.rel (%p4080_p6) target bundleno = 278 (0x116), region = 16 }
   0xc   : > { %p65_p5 = scmp.eq.s32.totalorder %s64_s21, 0 }
   0xe   : > { %s4968_s23 = scalar_select %p65_p5, %s4877_s13, %s67_s22  }
  0x12   : > { %173 = sbr.rel (!%p76_p3) target bundleno = 278 (0x116), region = 24  ;;  %s175_s24 = sand.u32 (%p76_p3), 1, %s4877_s13  }
  0x13   : > { %s4081_s25 = sshll.u32 (%p76_p3), %s4893_s17, 2  ;;  %s4568_s26 = smul.u32 (%p76_p3), 1536, %s175_s24 }
  0x14   : > { %s4976_s29 = scalar_lea.vmem (%p76_p3), %s5996_s1, %s4081_s25 }
  0x15   : > { %v195_v0 = vld [vmem:[%s4976_s29] sm:$0xf] (%p76_p3)  ;;  %v197_v1 = vld [vmem:[%s4976_s29 + $0x14] sm:$0xf] (%p76_p3)  ;;  %v199_v2 = vld [vmem:[%s4976_s29 + $0x28] sm:$0xf] (%p76_p3) }
  0x16   : > { %v201_v3 = vld [vmem:[%s4976_s29 + $0x3c] sm:$0xf] (%p76_p3)  ;;  %v203_v4 = vld [vmem:[%s4976_s29 + $0x50] sm:$0xf] (%p76_p3)  ;;  %s4983_s30 = scalar_lea.vmem (%p76_p3), [#allocation2], %s4568_s26 }
  0x17   : > { %196 = vst [vmem:[%s4983_s30] sm:$0xf] (%p76_p3), %v195_v0  ;;  %198 = vst [vmem:[%s4983_s30 + $0x4] sm:$0xf] (%p76_p3), %v197_v1  ;;  %v205_v5 = vld [vmem:[%s4976_s29 + $0x64] sm:$0xf] (%p76_p3) }
  0x18   : > { %200 = vst [vmem:[%s4983_s30 + $0x8] sm:$0xf] (%p76_p3), %v199_v2  ;;  %202 = vst [vmem:[%s4983_s30 + $0xc] sm:$0xf] (%p76_p3), %v201_v3  ;;  %v207_v6 = vld [vmem:[%s4976_s29 + $0x78] sm:$0xf] (%p76_p3) }
  0x19   : > { %204 = vst [vmem:[%s4983_s30 + $0x10] sm:$0xf] %v203_v4  ;;  %v209_v7 = vld [vmem:[%s4976_s29 + $0x8c] sm:$0xf]  ;;  %206 = vst [vmem:[%s4983_s30 + $0x14] sm:$0xf] %v205_v5 }
  0x1a   : > { %208 = vst [vmem:[%s4983_s30 + $0x18] sm:$0xf] %v207_v6  ;;  %210 = vst [vmem:[%s4983_s30 + $0x1c] sm:$0xf] %v209_v7  ;;  %v211_v8 = vld [vmem:[%s4976_s29 + $0xa0] sm:$0xf] }
  0x1b   : > { %v213_v9 = vld [vmem:[%s4976_s29 + $0xb4] sm:$0xf]  ;;  %v215_v10 = vld [vmem:[%s4976_s29 + $0xc8] sm:$0xf]  ;;  %212 = vst [vmem:[%s4983_s30 + $0x20] sm:$0xf] %v211_v8 }
  0x1c   : > { %214 = vst [vmem:[%s4983_s30 + $0x24] sm:$0xf] %v213_v9  ;;  %216 = vst [vmem:[%s4983_s30 + $0x28] sm:$0xf] %v215_v10  ;;  %v217_v11 = vld [vmem:[%s4976_s29 + $0xdc] sm:$0xf] }
  0x1d   : > { %v219_v12 = vld [vmem:[%s4976_s29 + $0xf0] sm:$0xf]  ;;  %v221_v13 = vld [vmem:[%s4976_s29 + $0x104] sm:$0xf]  ;;  %218 = vst [vmem:[%s4983_s30 + $0x2c] sm:$0xf] %v217_v11 }
  0x1e   : > { %220 = vst [vmem:[%s4983_s30 + $0x30] sm:$0xf] %v219_v12  ;;  %222 = vst [vmem:[%s4983_s30 + $0x34] sm:$0xf] %v221_v13  ;;  %v223_v14 = vld [vmem:[%s4976_s29 + $0x118] sm:$0xf] }
  0x1f   : > { %v225_v15 = vld [vmem:[%s4976_s29 + $0x12c] sm:$0xf]  ;;  %v227_v16 = vld [vmem:[%s4976_s29 + $0x140] sm:$0xf]  ;;  %224 = vst [vmem:[%s4983_s30 + $0x38] sm:$0xf] %v223_v14 }
  0x20   : > { %226 = vst [vmem:[%s4983_s30 + $0x3c] sm:$0xf] %v225_v15  ;;  %228 = vst [vmem:[%s4983_s30 + $0x40] sm:$0xf] %v227_v16  ;;  %v229_v17 = vld [vmem:[%s4976_s29 + $0x154] sm:$0xf] }
  0x21   : > { %v231_v18 = vld [vmem:[%s4976_s29 + $0x168] sm:$0xf]  ;;  %v233_v19 = vld [vmem:[%s4976_s29 + $0x17c] sm:$0xf]  ;;  %230 = vst [vmem:[%s4983_s30 + $0x44] sm:$0xf] %v229_v17 }
  0x22   : > { %232 = vst [vmem:[%s4983_s30 + $0x48] sm:$0xf] %v231_v18  ;;  %234 = vst [vmem:[%s4983_s30 + $0x4c] sm:$0xf] %v233_v19  ;;  %v235_v20 = vld [vmem:[%s4976_s29 + $0x190] sm:$0xf] }
  0x23   : > { %v237_v21 = vld [vmem:[%s4976_s29 + $0x1a4] sm:$0xf]  ;;  %v239_v22 = vld [vmem:[%s4976_s29 + $0x1b8] sm:$0xf]  ;;  %236 = vst [vmem:[%s4983_s30 + $0x50] sm:$0xf] %v235_v20 }
  0x24   : > { %238 = vst [vmem:[%s4983_s30 + $0x54] sm:$0xf] %v237_v21  ;;  %240 = vst [vmem:[%s4983_s30 + $0x58] sm:$0xf] %v239_v22  ;;  %v241_v23 = vld [vmem:[%s4976_s29 + $0x1cc] sm:$0xf] }
  0x25   : > { %v243_v24 = vld [vmem:[%s4976_s29 + $0x1e0] sm:$0xf]  ;;  %v245_v25 = vld [vmem:[%s4976_s29 + $0x1f4] sm:$0xf]  ;;  %242 = vst [vmem:[%s4983_s30 + $0x5c] sm:$0xf] %v241_v23 }
  0x26   : > { %244 = vst [vmem:[%s4983_s30 + $0x60] sm:$0xf] %v243_v24  ;;  %246 = vst [vmem:[%s4983_s30 + $0x64] sm:$0xf] %v245_v25  ;;  %v247_v26 = vld [vmem:[%s4976_s29 + $0x208] sm:$0xf] }
  0x27   : > { %v249_v27 = vld [vmem:[%s4976_s29 + $0x21c] sm:$0xf]  ;;  %v251_v28 = vld [vmem:[%s4976_s29 + $0x230] sm:$0xf]  ;;  %248 = vst [vmem:[%s4983_s30 + $0x68] sm:$0xf] %v247_v26 }
  0x28   : > { %250 = vst [vmem:[%s4983_s30 + $0x6c] sm:$0xf] %v249_v27  ;;  %252 = vst [vmem:[%s4983_s30 + $0x70] sm:$0xf] %v251_v28  ;;  %v253_v29 = vld [vmem:[%s4976_s29 + $0x244] sm:$0xf] }
  0x29   : > { %v255_v30 = vld [vmem:[%s4976_s29 + $0x258] sm:$0xf]  ;;  %v257_v31 = vld [vmem:[%s4976_s29 + $0x26c] sm:$0xf]  ;;  %254 = vst [vmem:[%s4983_s30 + $0x74] sm:$0xf] %v253_v29 }
  0x2a   : > { %256 = vst [vmem:[%s4983_s30 + $0x78] sm:$0xf] %v255_v30  ;;  %258 = vst [vmem:[%s4983_s30 + $0x7c] sm:$0xf] %v257_v31  ;;  %v259_v32 = vld [vmem:[%s4976_s29 + $0x280] sm:$0xf] }
  0x2b   : > { %v261_v33 = vld [vmem:[%s4976_s29 + $0x294] sm:$0xf]  ;;  %v263_v34 = vld [vmem:[%s4976_s29 + $0x2a8] sm:$0xf]  ;;  %260 = vst [vmem:[%s4983_s30 + $0x80] sm:$0xf] %v259_v32 }
  0x2c   : > { %262 = vst [vmem:[%s4983_s30 + $0x84] sm:$0xf] %v261_v33  ;;  %264 = vst [vmem:[%s4983_s30 + $0x88] sm:$0xf] %v263_v34  ;;  %v265_v35 = vld [vmem:[%s4976_s29 + $0x2bc] sm:$0xf] }
  0x2d   : > { %v267_v36 = vld [vmem:[%s4976_s29 + $0x2d0] sm:$0xf]  ;;  %v269_v37 = vld [vmem:[%s4976_s29 + $0x2e4] sm:$0xf]  ;;  %266 = vst [vmem:[%s4983_s30 + $0x8c] sm:$0xf] %v265_v35 }
  0x2e   : > { %268 = vst [vmem:[%s4983_s30 + $0x90] sm:$0xf] %v267_v36  ;;  %270 = vst [vmem:[%s4983_s30 + $0x94] sm:$0xf] %v269_v37  ;;  %v271_v38 = vld [vmem:[%s4976_s29 + $0x2f8] sm:$0xf] }
  0x2f   : > { %v273_v39 = vld [vmem:[%s4976_s29 + $0x30c] sm:$0xf]  ;;  %v275_v40 = vld [vmem:[%s4976_s29 + $0x320] sm:$0xf]  ;;  %272 = vst [vmem:[%s4983_s30 + $0x98] sm:$0xf] %v271_v38 }
  0x30   : > { %274 = vst [vmem:[%s4983_s30 + $0x9c] sm:$0xf] %v273_v39  ;;  %276 = vst [vmem:[%s4983_s30 + $0xa0] sm:$0xf] %v275_v40  ;;  %v277_v41 = vld [vmem:[%s4976_s29 + $0x334] sm:$0xf] }
  0x31   : > { %v279_v42 = vld [vmem:[%s4976_s29 + $0x348] sm:$0xf]  ;;  %v281_v43 = vld [vmem:[%s4976_s29 + $0x35c] sm:$0xf]  ;;  %278 = vst [vmem:[%s4983_s30 + $0xa4] sm:$0xf] %v277_v41 }
  0x32   : > { %280 = vst [vmem:[%s4983_s30 + $0xa8] sm:$0xf] %v279_v42  ;;  %282 = vst [vmem:[%s4983_s30 + $0xac] sm:$0xf] %v281_v43  ;;  %v283_v44 = vld [vmem:[%s4976_s29 + $0x370] sm:$0xf] }
  0x33   : > { %v285_v45 = vld [vmem:[%s4976_s29 + $0x384] sm:$0xf]  ;;  %v287_v46 = vld [vmem:[%s4976_s29 + $0x398] sm:$0xf]  ;;  %284 = vst [vmem:[%s4983_s30 + $0xb0] sm:$0xf] %v283_v44 }
  0x34   : > { %286 = vst [vmem:[%s4983_s30 + $0xb4] sm:$0xf] %v285_v45  ;;  %288 = vst [vmem:[%s4983_s30 + $0xb8] sm:$0xf] %v287_v46  ;;  %v289_v47 = vld [vmem:[%s4976_s29 + $0x3ac] sm:$0xf] }
  0x35   : > { %v291_v48 = vld [vmem:[%s4976_s29 + $0x3c0] sm:$0xf]  ;;  %v293_v49 = vld [vmem:[%s4976_s29 + $0x3d4] sm:$0xf]  ;;  %290 = vst [vmem:[%s4983_s30 + $0xbc] sm:$0xf] %v289_v47 }
  0x36   : > { %292 = vst [vmem:[%s4983_s30 + $0xc0] sm:$0xf] %v291_v48  ;;  %294 = vst [vmem:[%s4983_s30 + $0xc4] sm:$0xf] %v293_v49  ;;  %v295_v50 = vld [vmem:[%s4976_s29 + $0x3e8] sm:$0xf] }
  0x37   : > { %v297_v51 = vld [vmem:[%s4976_s29 + $0x3fc] sm:$0xf]  ;;  %v299_v52 = vld [vmem:[%s4976_s29 + $0x410] sm:$0xf]  ;;  %296 = vst [vmem:[%s4983_s30 + $0xc8] sm:$0xf] %v295_v50 }
  0x38   : > { %298 = vst [vmem:[%s4983_s30 + $0xcc] sm:$0xf] %v297_v51  ;;  %300 = vst [vmem:[%s4983_s30 + $0xd0] sm:$0xf] %v299_v52  ;;  %v301_v53 = vld [vmem:[%s4976_s29 + $0x424] sm:$0xf] }
  0x39   : > { %v303_v54 = vld [vmem:[%s4976_s29 + $0x438] sm:$0xf]  ;;  %v305_v55 = vld [vmem:[%s4976_s29 + $0x44c] sm:$0xf]  ;;  %302 = vst [vmem:[%s4983_s30 + $0xd4] sm:$0xf] %v301_v53 }
  0x3a   : > { %304 = vst [vmem:[%s4983_s30 + $0xd8] sm:$0xf] %v303_v54  ;;  %306 = vst [vmem:[%s4983_s30 + $0xdc] sm:$0xf] %v305_v55  ;;  %v307_v56 = vld [vmem:[%s4976_s29 + $0x460] sm:$0xf] }
  0x3b   : > { %v309_v57 = vld [vmem:[%s4976_s29 + $0x474] sm:$0xf]  ;;  %v311_v58 = vld [vmem:[%s4976_s29 + $0x488] sm:$0xf]  ;;  %308 = vst [vmem:[%s4983_s30 + $0xe0] sm:$0xf] %v307_v56 }
  0x3c   : > { %310 = vst [vmem:[%s4983_s30 + $0xe4] sm:$0xf] %v309_v57  ;;  %312 = vst [vmem:[%s4983_s30 + $0xe8] sm:$0xf] %v311_v58  ;;  %v313_v59 = vld [vmem:[%s4976_s29 + $0x49c] sm:$0xf] }
  0x3d   : > { %v315_v60 = vld [vmem:[%s4976_s29 + $0x4b0] sm:$0xf]  ;;  %v317_v61 = vld [vmem:[%s4976_s29 + $0x4c4] sm:$0xf]  ;;  %314 = vst [vmem:[%s4983_s30 + $0xec] sm:$0xf] %v313_v59 }
  0x3e   : > { %316 = vst [vmem:[%s4983_s30 + $0xf0] sm:$0xf] %v315_v60  ;;  %318 = vst [vmem:[%s4983_s30 + $0xf4] sm:$0xf] %v317_v61  ;;  %v319_v62 = vld [vmem:[%s4976_s29 + $0x4d8] sm:$0xf] }
  0x3f   : > { %v321_v63 = vld [vmem:[%s4976_s29 + $0x4ec] sm:$0xf]  ;;  %v323_v0 = vld [vmem:[%s4976_s29 + $0x500] sm:$0xf]  ;;  %320 = vst [vmem:[%s4983_s30 + $0xf8] sm:$0xf] %v319_v62 }
  0x40   : > { %322 = vst [vmem:[%s4983_s30 + $0xfc] sm:$0xf] %v321_v63  ;;  %324 = vst [vmem:[%s4983_s30 + $0x100] sm:$0xf] %v323_v0  ;;  %v325_v1 = vld [vmem:[%s4976_s29 + $0x514] sm:$0xf] }
  0x41   : > { %v327_v2 = vld [vmem:[%s4976_s29 + $0x528] sm:$0xf]  ;;  %v329_v3 = vld [vmem:[%s4976_s29 + $0x53c] sm:$0xf]  ;;  %326 = vst [vmem:[%s4983_s30 + $0x104] sm:$0xf] %v325_v1 }
  0x42   : > { %328 = vst [vmem:[%s4983_s30 + $0x108] sm:$0xf] %v327_v2  ;;  %330 = vst [vmem:[%s4983_s30 + $0x10c] sm:$0xf] %v329_v3  ;;  %v331_v4 = vld [vmem:[%s4976_s29 + $0x550] sm:$0xf] }
  0x43   : > { %v333_v5 = vld [vmem:[%s4976_s29 + $0x564] sm:$0xf]  ;;  %v335_v6 = vld [vmem:[%s4976_s29 + $0x578] sm:$0xf]  ;;  %332 = vst [vmem:[%s4983_s30 + $0x110] sm:$0xf] %v331_v4 }
  0x44   : > { %334 = vst [vmem:[%s4983_s30 + $0x114] sm:$0xf] %v333_v5  ;;  %336 = vst [vmem:[%s4983_s30 + $0x118] sm:$0xf] %v335_v6  ;;  %v337_v7 = vld [vmem:[%s4976_s29 + $0x58c] sm:$0xf] }
  0x45   : > { %v339_v8 = vld [vmem:[%s4976_s29 + $0x5a0] sm:$0xf]  ;;  %v341_v9 = vld [vmem:[%s4976_s29 + $0x5b4] sm:$0xf]  ;;  %338 = vst [vmem:[%s4983_s30 + $0x11c] sm:$0xf] %v337_v7 }
  0x46   : > { %340 = vst [vmem:[%s4983_s30 + $0x120] sm:$0xf] %v339_v8  ;;  %342 = vst [vmem:[%s4983_s30 + $0x124] sm:$0xf] %v341_v9  ;;  %v343_v10 = vld [vmem:[%s4976_s29 + $0x5c8] sm:$0xf] }
  0x47   : > { %v345_v11 = vld [vmem:[%s4976_s29 + $0x5dc] sm:$0xf]  ;;  %v347_v12 = vld [vmem:[%s4976_s29 + $0x5f0] sm:$0xf]  ;;  %344 = vst [vmem:[%s4983_s30 + $0x128] sm:$0xf] %v343_v10 }
  0x48   : > { %346 = vst [vmem:[%s4983_s30 + $0x12c] sm:$0xf] %v345_v11  ;;  %348 = vst [vmem:[%s4983_s30 + $0x130] sm:$0xf] %v347_v12  ;;  %v349_v13 = vld [vmem:[%s4976_s29 + $0x604] sm:$0xf] }
  0x49   : > { %v351_v14 = vld [vmem:[%s4976_s29 + $0x618] sm:$0xf]  ;;  %v353_v15 = vld [vmem:[%s4976_s29 + $0x62c] sm:$0xf]  ;;  %350 = vst [vmem:[%s4983_s30 + $0x134] sm:$0xf] %v349_v13 }
  0x4a   : > { %352 = vst [vmem:[%s4983_s30 + $0x138] sm:$0xf] %v351_v14  ;;  %354 = vst [vmem:[%s4983_s30 + $0x13c] sm:$0xf] %v353_v15  ;;  %v355_v16 = vld [vmem:[%s4976_s29 + $0x640] sm:$0xf] }
  0x4b   : > { %v357_v17 = vld [vmem:[%s4976_s29 + $0x654] sm:$0xf]  ;;  %v359_v18 = vld [vmem:[%s4976_s29 + $0x668] sm:$0xf]  ;;  %356 = vst [vmem:[%s4983_s30 + $0x140] sm:$0xf] %v355_v16 }
  0x4c   : > { %358 = vst [vmem:[%s4983_s30 + $0x144] sm:$0xf] %v357_v17  ;;  %360 = vst [vmem:[%s4983_s30 + $0x148] sm:$0xf] %v359_v18  ;;  %v361_v19 = vld [vmem:[%s4976_s29 + $0x67c] sm:$0xf] }
  0x4d   : > { %v363_v20 = vld [vmem:[%s4976_s29 + $0x690] sm:$0xf]  ;;  %v365_v21 = vld [vmem:[%s4976_s29 + $0x6a4] sm:$0xf]  ;;  %362 = vst [vmem:[%s4983_s30 + $0x14c] sm:$0xf] %v361_v19 }
  0x4e   : > { %364 = vst [vmem:[%s4983_s30 + $0x150] sm:$0xf] %v363_v20  ;;  %366 = vst [vmem:[%s4983_s30 + $0x154] sm:$0xf] %v365_v21  ;;  %v367_v22 = vld [vmem:[%s4976_s29 + $0x6b8] sm:$0xf] }
  0x4f   : > { %v369_v23 = vld [vmem:[%s4976_s29 + $0x6cc] sm:$0xf]  ;;  %v371_v24 = vld [vmem:[%s4976_s29 + $0x6e0] sm:$0xf]  ;;  %368 = vst [vmem:[%s4983_s30 + $0x158] sm:$0xf] %v367_v22 }
  0x50   : > { %370 = vst [vmem:[%s4983_s30 + $0x15c] sm:$0xf] %v369_v23  ;;  %372 = vst [vmem:[%s4983_s30 + $0x160] sm:$0xf] %v371_v24  ;;  %v373_v25 = vld [vmem:[%s4976_s29 + $0x6f4] sm:$0xf] }
  0x51   : > { %v375_v26 = vld [vmem:[%s4976_s29 + $0x708] sm:$0xf]  ;;  %v377_v27 = vld [vmem:[%s4976_s29 + $0x71c] sm:$0xf]  ;;  %374 = vst [vmem:[%s4983_s30 + $0x164] sm:$0xf] %v373_v25 }
  0x52   : > { %376 = vst [vmem:[%s4983_s30 + $0x168] sm:$0xf] %v375_v26  ;;  %378 = vst [vmem:[%s4983_s30 + $0x16c] sm:$0xf] %v377_v27  ;;  %v379_v28 = vld [vmem:[%s4976_s29 + $0x730] sm:$0xf] }
  0x53   : > { %v381_v29 = vld [vmem:[%s4976_s29 + $0x744] sm:$0xf]  ;;  %v383_v30 = vld [vmem:[%s4976_s29 + $0x758] sm:$0xf]  ;;  %380 = vst [vmem:[%s4983_s30 + $0x170] sm:$0xf] %v379_v28 }
  0x54   : > { %382 = vst [vmem:[%s4983_s30 + $0x174] sm:$0xf] %v381_v29  ;;  %384 = vst [vmem:[%s4983_s30 + $0x178] sm:$0xf] %v383_v30  ;;  %v385_v31 = vld [vmem:[%s4976_s29 + $0x76c] sm:$0xf] }
  0x55   : > { %v387_v32 = vld [vmem:[%s4976_s29 + $0x780] sm:$0xf]  ;;  %v389_v33 = vld [vmem:[%s4976_s29 + $0x794] sm:$0xf]  ;;  %386 = vst [vmem:[%s4983_s30 + $0x17c] sm:$0xf] %v385_v31 }
  0x56   : > { %388 = vst [vmem:[%s4983_s30 + $0x180] sm:$0xf] %v387_v32  ;;  %390 = vst [vmem:[%s4983_s30 + $0x184] sm:$0xf] %v389_v33  ;;  %v391_v34 = vld [vmem:[%s4976_s29 + $0x7a8] sm:$0xf] }
  0x57   : > { %v393_v35 = vld [vmem:[%s4976_s29 + $0x7bc] sm:$0xf]  ;;  %v395_v36 = vld [vmem:[%s4976_s29 + $0x7d0] sm:$0xf]  ;;  %392 = vst [vmem:[%s4983_s30 + $0x188] sm:$0xf] %v391_v34 }
  0x58   : > { %394 = vst [vmem:[%s4983_s30 + $0x18c] sm:$0xf] %v393_v35  ;;  %396 = vst [vmem:[%s4983_s30 + $0x190] sm:$0xf] %v395_v36  ;;  %v397_v37 = vld [vmem:[%s4976_s29 + $0x7e4] sm:$0xf] }
  0x59   : > { %v399_v38 = vld [vmem:[%s4976_s29 + $0x7f8] sm:$0xf]  ;;  %v401_v39 = vld [vmem:[%s4976_s29 + $0x80c] sm:$0xf]  ;;  %398 = vst [vmem:[%s4983_s30 + $0x194] sm:$0xf] %v397_v37 }
  0x5a   : > { %400 = vst [vmem:[%s4983_s30 + $0x198] sm:$0xf] %v399_v38  ;;  %402 = vst [vmem:[%s4983_s30 + $0x19c] sm:$0xf] %v401_v39  ;;  %v403_v40 = vld [vmem:[%s4976_s29 + $0x820] sm:$0xf] }
  0x5b   : > { %v405_v41 = vld [vmem:[%s4976_s29 + $0x834] sm:$0xf]  ;;  %v407_v42 = vld [vmem:[%s4976_s29 + $0x848] sm:$0xf]  ;;  %404 = vst [vmem:[%s4983_s30 + $0x1a0] sm:$0xf] %v403_v40 }
  0x5c   : > { %406 = vst [vmem:[%s4983_s30 + $0x1a4] sm:$0xf] %v405_v41  ;;  %408 = vst [vmem:[%s4983_s30 + $0x1a8] sm:$0xf] %v407_v42  ;;  %v409_v43 = vld [vmem:[%s4976_s29 + $0x85c] sm:$0xf] }
  0x5d   : > { %v411_v44 = vld [vmem:[%s4976_s29 + $0x870] sm:$0xf]  ;;  %v413_v45 = vld [vmem:[%s4976_s29 + $0x884] sm:$0xf]  ;;  %410 = vst [vmem:[%s4983_s30 + $0x1ac] sm:$0xf] %v409_v43 }
  0x5e   : > { %412 = vst [vmem:[%s4983_s30 + $0x1b0] sm:$0xf] %v411_v44  ;;  %414 = vst [vmem:[%s4983_s30 + $0x1b4] sm:$0xf] %v413_v45  ;;  %v415_v46 = vld [vmem:[%s4976_s29 + $0x898] sm:$0xf] }
  0x5f   : > { %v417_v47 = vld [vmem:[%s4976_s29 + $0x8ac] sm:$0xf]  ;;  %v419_v48 = vld [vmem:[%s4976_s29 + $0x8c0] sm:$0xf]  ;;  %416 = vst [vmem:[%s4983_s30 + $0x1b8] sm:$0xf] %v415_v46 }
  0x60   : > { %418 = vst [vmem:[%s4983_s30 + $0x1bc] sm:$0xf] %v417_v47  ;;  %420 = vst [vmem:[%s4983_s30 + $0x1c0] sm:$0xf] %v419_v48  ;;  %v421_v49 = vld [vmem:[%s4976_s29 + $0x8d4] sm:$0xf] }
  0x61   : > { %v423_v50 = vld [vmem:[%s4976_s29 + $0x8e8] sm:$0xf]  ;;  %v425_v51 = vld [vmem:[%s4976_s29 + $0x8fc] sm:$0xf]  ;;  %422 = vst [vmem:[%s4983_s30 + $0x1c4] sm:$0xf] %v421_v49 }
  0x62   : > { %424 = vst [vmem:[%s4983_s30 + $0x1c8] sm:$0xf] %v423_v50  ;;  %426 = vst [vmem:[%s4983_s30 + $0x1cc] sm:$0xf] %v425_v51  ;;  %v427_v52 = vld [vmem:[%s4976_s29 + $0x910] sm:$0xf] }
  0x63   : > { %v429_v53 = vld [vmem:[%s4976_s29 + $0x924] sm:$0xf]  ;;  %v431_v54 = vld [vmem:[%s4976_s29 + $0x938] sm:$0xf]  ;;  %428 = vst [vmem:[%s4983_s30 + $0x1d0] sm:$0xf] %v427_v52 }
  0x64   : > { %430 = vst [vmem:[%s4983_s30 + $0x1d4] sm:$0xf] %v429_v53  ;;  %432 = vst [vmem:[%s4983_s30 + $0x1d8] sm:$0xf] %v431_v54  ;;  %v433_v55 = vld [vmem:[%s4976_s29 + $0x94c] sm:$0xf] }
  0x65   : > { %v435_v56 = vld [vmem:[%s4976_s29 + $0x960] sm:$0xf]  ;;  %v437_v57 = vld [vmem:[%s4976_s29 + $0x974] sm:$0xf]  ;;  %434 = vst [vmem:[%s4983_s30 + $0x1dc] sm:$0xf] %v433_v55 }
  0x66   : > { %436 = vst [vmem:[%s4983_s30 + $0x1e0] sm:$0xf] %v435_v56  ;;  %438 = vst [vmem:[%s4983_s30 + $0x1e4] sm:$0xf] %v437_v57  ;;  %v439_v58 = vld [vmem:[%s4976_s29 + $0x988] sm:$0xf] }
  0x67   : > { %v441_v59 = vld [vmem:[%s4976_s29 + $0x99c] sm:$0xf]  ;;  %v443_v60 = vld [vmem:[%s4976_s29 + $0x9b0] sm:$0xf]  ;;  %440 = vst [vmem:[%s4983_s30 + $0x1e8] sm:$0xf] %v439_v58 }
  0x68   : > { %442 = vst [vmem:[%s4983_s30 + $0x1ec] sm:$0xf] %v441_v59  ;;  %444 = vst [vmem:[%s4983_s30 + $0x1f0] sm:$0xf] %v443_v60  ;;  %v445_v61 = vld [vmem:[%s4976_s29 + $0x9c4] sm:$0xf] }
  0x69   : > { %v447_v62 = vld [vmem:[%s4976_s29 + $0x9d8] sm:$0xf]  ;;  %v449_v63 = vld [vmem:[%s4976_s29 + $0x9ec] sm:$0xf]  ;;  %446 = vst [vmem:[%s4983_s30 + $0x1f4] sm:$0xf] %v445_v61 }
  0x6a   : > { %448 = vst [vmem:[%s4983_s30 + $0x1f8] sm:$0xf] %v447_v62  ;;  %450 = vst [vmem:[%s4983_s30 + $0x1fc] sm:$0xf] %v449_v63  ;;  %v451_v0 = vld [vmem:[%s4976_s29 + $0xa00] sm:$0xf] }
  0x6b   : > { %v453_v1 = vld [vmem:[%s4976_s29 + $0xa14] sm:$0xf]  ;;  %v455_v2 = vld [vmem:[%s4976_s29 + $0xa28] sm:$0xf]  ;;  %452 = vst [vmem:[%s4983_s30 + $0x200] sm:$0xf] %v451_v0 }
  0x6c   : > { %454 = vst [vmem:[%s4983_s30 + $0x204] sm:$0xf] %v453_v1  ;;  %456 = vst [vmem:[%s4983_s30 + $0x208] sm:$0xf] %v455_v2  ;;  %v457_v3 = vld [vmem:[%s4976_s29 + $0xa3c] sm:$0xf] }
  0x6d   : > { %v459_v4 = vld [vmem:[%s4976_s29 + $0xa50] sm:$0xf]  ;;  %v461_v5 = vld [vmem:[%s4976_s29 + $0xa64] sm:$0xf]  ;;  %458 = vst [vmem:[%s4983_s30 + $0x20c] sm:$0xf] %v457_v3 }
  0x6e   : > { %460 = vst [vmem:[%s4983_s30 + $0x210] sm:$0xf] %v459_v4  ;;  %462 = vst [vmem:[%s4983_s30 + $0x214] sm:$0xf] %v461_v5  ;;  %v463_v6 = vld [vmem:[%s4976_s29 + $0xa78] sm:$0xf] }
  0x6f   : > { %v465_v7 = vld [vmem:[%s4976_s29 + $0xa8c] sm:$0xf]  ;;  %v467_v8 = vld [vmem:[%s4976_s29 + $0xaa0] sm:$0xf]  ;;  %464 = vst [vmem:[%s4983_s30 + $0x218] sm:$0xf] %v463_v6 }
  0x70   : > { %466 = vst [vmem:[%s4983_s30 + $0x21c] sm:$0xf] %v465_v7  ;;  %468 = vst [vmem:[%s4983_s30 + $0x220] sm:$0xf] %v467_v8  ;;  %v469_v9 = vld [vmem:[%s4976_s29 + $0xab4] sm:$0xf] }
  0x71   : > { %v471_v10 = vld [vmem:[%s4976_s29 + $0xac8] sm:$0xf]  ;;  %v473_v11 = vld [vmem:[%s4976_s29 + $0xadc] sm:$0xf]  ;;  %470 = vst [vmem:[%s4983_s30 + $0x224] sm:$0xf] %v469_v9 }
  0x72   : > { %472 = vst [vmem:[%s4983_s30 + $0x228] sm:$0xf] %v471_v10  ;;  %474 = vst [vmem:[%s4983_s30 + $0x22c] sm:$0xf] %v473_v11  ;;  %v475_v12 = vld [vmem:[%s4976_s29 + $0xaf0] sm:$0xf] }
  0x73   : > { %v477_v13 = vld [vmem:[%s4976_s29 + $0xb04] sm:$0xf]  ;;  %v479_v14 = vld [vmem:[%s4976_s29 + $0xb18] sm:$0xf]  ;;  %476 = vst [vmem:[%s4983_s30 + $0x230] sm:$0xf] %v475_v12 }
  0x74   : > { %478 = vst [vmem:[%s4983_s30 + $0x234] sm:$0xf] %v477_v13  ;;  %480 = vst [vmem:[%s4983_s30 + $0x238] sm:$0xf] %v479_v14  ;;  %v481_v15 = vld [vmem:[%s4976_s29 + $0xb2c] sm:$0xf] }
  0x75   : > { %v483_v16 = vld [vmem:[%s4976_s29 + $0xb40] sm:$0xf]  ;;  %v485_v17 = vld [vmem:[%s4976_s29 + $0xb54] sm:$0xf]  ;;  %482 = vst [vmem:[%s4983_s30 + $0x23c] sm:$0xf] %v481_v15 }
  0x76   : > { %484 = vst [vmem:[%s4983_s30 + $0x240] sm:$0xf] %v483_v16  ;;  %486 = vst [vmem:[%s4983_s30 + $0x244] sm:$0xf] %v485_v17  ;;  %v487_v18 = vld [vmem:[%s4976_s29 + $0xb68] sm:$0xf] }
  0x77   : > { %v489_v19 = vld [vmem:[%s4976_s29 + $0xb7c] sm:$0xf]  ;;  %v491_v20 = vld [vmem:[%s4976_s29 + $0xb90] sm:$0xf]  ;;  %488 = vst [vmem:[%s4983_s30 + $0x248] sm:$0xf] %v487_v18 }
  0x78   : > { %490 = vst [vmem:[%s4983_s30 + $0x24c] sm:$0xf] %v489_v19  ;;  %492 = vst [vmem:[%s4983_s30 + $0x250] sm:$0xf] %v491_v20  ;;  %v493_v21 = vld [vmem:[%s4976_s29 + $0xba4] sm:$0xf] }
  0x79   : > { %v495_v22 = vld [vmem:[%s4976_s29 + $0xbb8] sm:$0xf]  ;;  %v497_v23 = vld [vmem:[%s4976_s29 + $0xbcc] sm:$0xf]  ;;  %494 = vst [vmem:[%s4983_s30 + $0x254] sm:$0xf] %v493_v21 }
  0x7a   : > { %496 = vst [vmem:[%s4983_s30 + $0x258] sm:$0xf] %v495_v22  ;;  %498 = vst [vmem:[%s4983_s30 + $0x25c] sm:$0xf] %v497_v23  ;;  %v499_v24 = vld [vmem:[%s4976_s29 + $0xbe0] sm:$0xf] }
  0x7b   : > { %v501_v25 = vld [vmem:[%s4976_s29 + $0xbf4] sm:$0xf]  ;;  %v503_v26 = vld [vmem:[%s4976_s29 + $0xc08] sm:$0xf]  ;;  %500 = vst [vmem:[%s4983_s30 + $0x260] sm:$0xf] %v499_v24 }
  0x7c   : > { %502 = vst [vmem:[%s4983_s30 + $0x264] sm:$0xf] %v501_v25  ;;  %504 = vst [vmem:[%s4983_s30 + $0x268] sm:$0xf] %v503_v26  ;;  %v505_v27 = vld [vmem:[%s4976_s29 + $0xc1c] sm:$0xf] }
  0x7d   : > { %v507_v28 = vld [vmem:[%s4976_s29 + $0xc30] sm:$0xf]  ;;  %v509_v29 = vld [vmem:[%s4976_s29 + $0xc44] sm:$0xf]  ;;  %506 = vst [vmem:[%s4983_s30 + $0x26c] sm:$0xf] %v505_v27 }
  0x7e   : > { %508 = vst [vmem:[%s4983_s30 + $0x270] sm:$0xf] %v507_v28  ;;  %510 = vst [vmem:[%s4983_s30 + $0x274] sm:$0xf] %v509_v29  ;;  %v511_v30 = vld [vmem:[%s4976_s29 + $0xc58] sm:$0xf] }
  0x7f   : > { %v513_v31 = vld [vmem:[%s4976_s29 + $0xc6c] sm:$0xf]  ;;  %v515_v32 = vld [vmem:[%s4976_s29 + $0xc80] sm:$0xf]  ;;  %512 = vst [vmem:[%s4983_s30 + $0x278] sm:$0xf] %v511_v30 }
  0x80   : > { %514 = vst [vmem:[%s4983_s30 + $0x27c] sm:$0xf] %v513_v31  ;;  %516 = vst [vmem:[%s4983_s30 + $0x280] sm:$0xf] %v515_v32  ;;  %v517_v33 = vld [vmem:[%s4976_s29 + $0xc94] sm:$0xf] }
  0x81   : > { %v519_v34 = vld [vmem:[%s4976_s29 + $0xca8] sm:$0xf]  ;;  %v521_v35 = vld [vmem:[%s4976_s29 + $0xcbc] sm:$0xf]  ;;  %518 = vst [vmem:[%s4983_s30 + $0x284] sm:$0xf] %v517_v33 }
  0x82   : > { %520 = vst [vmem:[%s4983_s30 + $0x288] sm:$0xf] %v519_v34  ;;  %522 = vst [vmem:[%s4983_s30 + $0x28c] sm:$0xf] %v521_v35  ;;  %v523_v36 = vld [vmem:[%s4976_s29 + $0xcd0] sm:$0xf] }
  0x83   : > { %v525_v37 = vld [vmem:[%s4976_s29 + $0xce4] sm:$0xf]  ;;  %v527_v38 = vld [vmem:[%s4976_s29 + $0xcf8] sm:$0xf]  ;;  %524 = vst [vmem:[%s4983_s30 + $0x290] sm:$0xf] %v523_v36 }
  0x84   : > { %526 = vst [vmem:[%s4983_s30 + $0x294] sm:$0xf] %v525_v37  ;;  %528 = vst [vmem:[%s4983_s30 + $0x298] sm:$0xf] %v527_v38  ;;  %v529_v39 = vld [vmem:[%s4976_s29 + $0xd0c] sm:$0xf] }
  0x85   : > { %v531_v40 = vld [vmem:[%s4976_s29 + $0xd20] sm:$0xf]  ;;  %v533_v41 = vld [vmem:[%s4976_s29 + $0xd34] sm:$0xf]  ;;  %530 = vst [vmem:[%s4983_s30 + $0x29c] sm:$0xf] %v529_v39 }
  0x86   : > { %532 = vst [vmem:[%s4983_s30 + $0x2a0] sm:$0xf] %v531_v40  ;;  %534 = vst [vmem:[%s4983_s30 + $0x2a4] sm:$0xf] %v533_v41  ;;  %v535_v42 = vld [vmem:[%s4976_s29 + $0xd48] sm:$0xf] }
  0x87   : > { %v537_v43 = vld [vmem:[%s4976_s29 + $0xd5c] sm:$0xf]  ;;  %v539_v44 = vld [vmem:[%s4976_s29 + $0xd70] sm:$0xf]  ;;  %536 = vst [vmem:[%s4983_s30 + $0x2a8] sm:$0xf] %v535_v42 }
  0x88   : > { %538 = vst [vmem:[%s4983_s30 + $0x2ac] sm:$0xf] %v537_v43  ;;  %540 = vst [vmem:[%s4983_s30 + $0x2b0] sm:$0xf] %v539_v44  ;;  %v541_v45 = vld [vmem:[%s4976_s29 + $0xd84] sm:$0xf] }
  0x89   : > { %v543_v46 = vld [vmem:[%s4976_s29 + $0xd98] sm:$0xf]  ;;  %v545_v47 = vld [vmem:[%s4976_s29 + $0xdac] sm:$0xf]  ;;  %542 = vst [vmem:[%s4983_s30 + $0x2b4] sm:$0xf] %v541_v45 }
  0x8a   : > { %544 = vst [vmem:[%s4983_s30 + $0x2b8] sm:$0xf] %v543_v46  ;;  %546 = vst [vmem:[%s4983_s30 + $0x2bc] sm:$0xf] %v545_v47  ;;  %v547_v48 = vld [vmem:[%s4976_s29 + $0xdc0] sm:$0xf] }
  0x8b   : > { %v549_v49 = vld [vmem:[%s4976_s29 + $0xdd4] sm:$0xf]  ;;  %v551_v50 = vld [vmem:[%s4976_s29 + $0xde8] sm:$0xf]  ;;  %548 = vst [vmem:[%s4983_s30 + $0x2c0] sm:$0xf] %v547_v48 }
  0x8c   : > { %550 = vst [vmem:[%s4983_s30 + $0x2c4] sm:$0xf] %v549_v49  ;;  %552 = vst [vmem:[%s4983_s30 + $0x2c8] sm:$0xf] %v551_v50  ;;  %v553_v51 = vld [vmem:[%s4976_s29 + $0xdfc] sm:$0xf] }
  0x8d   : > { %v555_v52 = vld [vmem:[%s4976_s29 + $0xe10] sm:$0xf]  ;;  %v557_v53 = vld [vmem:[%s4976_s29 + $0xe24] sm:$0xf]  ;;  %554 = vst [vmem:[%s4983_s30 + $0x2cc] sm:$0xf] %v553_v51 }
  0x8e   : > { %556 = vst [vmem:[%s4983_s30 + $0x2d0] sm:$0xf] %v555_v52  ;;  %558 = vst [vmem:[%s4983_s30 + $0x2d4] sm:$0xf] %v557_v53  ;;  %v559_v54 = vld [vmem:[%s4976_s29 + $0xe38] sm:$0xf] }
  0x8f   : > { %v561_v55 = vld [vmem:[%s4976_s29 + $0xe4c] sm:$0xf]  ;;  %v563_v56 = vld [vmem:[%s4976_s29 + $0xe60] sm:$0xf]  ;;  %560 = vst [vmem:[%s4983_s30 + $0x2d8] sm:$0xf] %v559_v54 }
  0x90   : > { %562 = vst [vmem:[%s4983_s30 + $0x2dc] sm:$0xf] %v561_v55  ;;  %564 = vst [vmem:[%s4983_s30 + $0x2e0] sm:$0xf] %v563_v56  ;;  %v565_v57 = vld [vmem:[%s4976_s29 + $0xe74] sm:$0xf] }
  0x91   : > { %v567_v58 = vld [vmem:[%s4976_s29 + $0xe88] sm:$0xf]  ;;  %v569_v59 = vld [vmem:[%s4976_s29 + $0xe9c] sm:$0xf]  ;;  %566 = vst [vmem:[%s4983_s30 + $0x2e4] sm:$0xf] %v565_v57 }
  0x92   : > { %568 = vst [vmem:[%s4983_s30 + $0x2e8] sm:$0xf] %v567_v58  ;;  %570 = vst [vmem:[%s4983_s30 + $0x2ec] sm:$0xf] %v569_v59  ;;  %v571_v60 = vld [vmem:[%s4976_s29 + $0xeb0] sm:$0xf] }
  0x93   : > { %v573_v61 = vld [vmem:[%s4976_s29 + $0xec4] sm:$0xf]  ;;  %v575_v62 = vld [vmem:[%s4976_s29 + $0xed8] sm:$0xf]  ;;  %572 = vst [vmem:[%s4983_s30 + $0x2f0] sm:$0xf] %v571_v60 }
  0x94   : > { %574 = vst [vmem:[%s4983_s30 + $0x2f4] sm:$0xf] %v573_v61  ;;  %576 = vst [vmem:[%s4983_s30 + $0x2f8] sm:$0xf] %v575_v62  ;;  %v577_v63 = vld [vmem:[%s4976_s29 + $0xeec] sm:$0xf] }
  0x95   : > { %v579_v0 = vld [vmem:[%s4976_s29 + $0xf00] sm:$0xf]  ;;  %v581_v1 = vld [vmem:[%s4976_s29 + $0xf14] sm:$0xf]  ;;  %578 = vst [vmem:[%s4983_s30 + $0x2fc] sm:$0xf] %v577_v63 }
  0x96   : > { %580 = vst [vmem:[%s4983_s30 + $0x300] sm:$0xf] %v579_v0  ;;  %582 = vst [vmem:[%s4983_s30 + $0x304] sm:$0xf] %v581_v1  ;;  %v583_v2 = vld [vmem:[%s4976_s29 + $0xf28] sm:$0xf] }
  0x97   : > { %v585_v3 = vld [vmem:[%s4976_s29 + $0xf3c] sm:$0xf]  ;;  %v587_v4 = vld [vmem:[%s4976_s29 + $0xf50] sm:$0xf]  ;;  %584 = vst [vmem:[%s4983_s30 + $0x308] sm:$0xf] %v583_v2 }
  0x98   : > { %586 = vst [vmem:[%s4983_s30 + $0x30c] sm:$0xf] %v585_v3  ;;  %588 = vst [vmem:[%s4983_s30 + $0x310] sm:$0xf] %v587_v4  ;;  %v589_v5 = vld [vmem:[%s4976_s29 + $0xf64] sm:$0xf] }
  0x99   : > { %v591_v6 = vld [vmem:[%s4976_s29 + $0xf78] sm:$0xf]  ;;  %v593_v7 = vld [vmem:[%s4976_s29 + $0xf8c] sm:$0xf]  ;;  %590 = vst [vmem:[%s4983_s30 + $0x314] sm:$0xf] %v589_v5 }
  0x9a   : > { %592 = vst [vmem:[%s4983_s30 + $0x318] sm:$0xf] %v591_v6  ;;  %594 = vst [vmem:[%s4983_s30 + $0x31c] sm:$0xf] %v593_v7  ;;  %v595_v8 = vld [vmem:[%s4976_s29 + $0xfa0] sm:$0xf] }
  0x9b   : > { %v597_v9 = vld [vmem:[%s4976_s29 + $0xfb4] sm:$0xf]  ;;  %v599_v10 = vld [vmem:[%s4976_s29 + $0xfc8] sm:$0xf]  ;;  %596 = vst [vmem:[%s4983_s30 + $0x320] sm:$0xf] %v595_v8 }
  0x9c   : > { %598 = vst [vmem:[%s4983_s30 + $0x324] sm:$0xf] %v597_v9  ;;  %600 = vst [vmem:[%s4983_s30 + $0x328] sm:$0xf] %v599_v10  ;;  %v601_v11 = vld [vmem:[%s4976_s29 + $0xfdc] sm:$0xf] }
  0x9d   : > { %v603_v12 = vld [vmem:[%s4976_s29 + $0xff0] sm:$0xf]  ;;  %v605_v13 = vld [vmem:[%s4976_s29 + $0x1004] sm:$0xf]  ;;  %602 = vst [vmem:[%s4983_s30 + $0x32c] sm:$0xf] %v601_v11 }
  0x9e   : > { %604 = vst [vmem:[%s4983_s30 + $0x330] sm:$0xf] %v603_v12  ;;  %606 = vst [vmem:[%s4983_s30 + $0x334] sm:$0xf] %v605_v13  ;;  %v607_v14 = vld [vmem:[%s4976_s29 + $0x1018] sm:$0xf] }
  0x9f   : > { %v609_v15 = vld [vmem:[%s4976_s29 + $0x102c] sm:$0xf]  ;;  %v611_v16 = vld [vmem:[%s4976_s29 + $0x1040] sm:$0xf]  ;;  %608 = vst [vmem:[%s4983_s30 + $0x338] sm:$0xf] %v607_v14 }
  0xa0   : > { %610 = vst [vmem:[%s4983_s30 + $0x33c] sm:$0xf] %v609_v15  ;;  %612 = vst [vmem:[%s4983_s30 + $0x340] sm:$0xf] %v611_v16  ;;  %v613_v17 = vld [vmem:[%s4976_s29 + $0x1054] sm:$0xf] }
  0xa1   : > { %v615_v18 = vld [vmem:[%s4976_s29 + $0x1068] sm:$0xf]  ;;  %v617_v19 = vld [vmem:[%s4976_s29 + $0x107c] sm:$0xf]  ;;  %614 = vst [vmem:[%s4983_s30 + $0x344] sm:$0xf] %v613_v17 }
  0xa2   : > { %616 = vst [vmem:[%s4983_s30 + $0x348] sm:$0xf] %v615_v18  ;;  %618 = vst [vmem:[%s4983_s30 + $0x34c] sm:$0xf] %v617_v19  ;;  %v619_v20 = vld [vmem:[%s4976_s29 + $0x1090] sm:$0xf] }
  0xa3   : > { %v621_v21 = vld [vmem:[%s4976_s29 + $0x10a4] sm:$0xf]  ;;  %v623_v22 = vld [vmem:[%s4976_s29 + $0x10b8] sm:$0xf]  ;;  %620 = vst [vmem:[%s4983_s30 + $0x350] sm:$0xf] %v619_v20 }
  0xa4   : > { %622 = vst [vmem:[%s4983_s30 + $0x354] sm:$0xf] %v621_v21  ;;  %624 = vst [vmem:[%s4983_s30 + $0x358] sm:$0xf] %v623_v22  ;;  %v625_v23 = vld [vmem:[%s4976_s29 + $0x10cc] sm:$0xf] }
  0xa5   : > { %v627_v24 = vld [vmem:[%s4976_s29 + $0x10e0] sm:$0xf]  ;;  %v629_v25 = vld [vmem:[%s4976_s29 + $0x10f4] sm:$0xf]  ;;  %626 = vst [vmem:[%s4983_s30 + $0x35c] sm:$0xf] %v625_v23 }
  0xa6   : > { %628 = vst [vmem:[%s4983_s30 + $0x360] sm:$0xf] %v627_v24  ;;  %630 = vst [vmem:[%s4983_s30 + $0x364] sm:$0xf] %v629_v25  ;;  %v631_v26 = vld [vmem:[%s4976_s29 + $0x1108] sm:$0xf] }
  0xa7   : > { %v633_v27 = vld [vmem:[%s4976_s29 + $0x111c] sm:$0xf]  ;;  %v635_v28 = vld [vmem:[%s4976_s29 + $0x1130] sm:$0xf]  ;;  %632 = vst [vmem:[%s4983_s30 + $0x368] sm:$0xf] %v631_v26 }
  0xa8   : > { %634 = vst [vmem:[%s4983_s30 + $0x36c] sm:$0xf] %v633_v27  ;;  %636 = vst [vmem:[%s4983_s30 + $0x370] sm:$0xf] %v635_v28  ;;  %v637_v29 = vld [vmem:[%s4976_s29 + $0x1144] sm:$0xf] }
  0xa9   : > { %v639_v30 = vld [vmem:[%s4976_s29 + $0x1158] sm:$0xf]  ;;  %v641_v31 = vld [vmem:[%s4976_s29 + $0x116c] sm:$0xf]  ;;  %638 = vst [vmem:[%s4983_s30 + $0x374] sm:$0xf] %v637_v29 }
  0xaa   : > { %640 = vst [vmem:[%s4983_s30 + $0x378] sm:$0xf] %v639_v30  ;;  %642 = vst [vmem:[%s4983_s30 + $0x37c] sm:$0xf] %v641_v31  ;;  %v643_v32 = vld [vmem:[%s4976_s29 + $0x1180] sm:$0xf] }
  0xab   : > { %v645_v33 = vld [vmem:[%s4976_s29 + $0x1194] sm:$0xf]  ;;  %v647_v34 = vld [vmem:[%s4976_s29 + $0x11a8] sm:$0xf]  ;;  %644 = vst [vmem:[%s4983_s30 + $0x380] sm:$0xf] %v643_v32 }
  0xac   : > { %646 = vst [vmem:[%s4983_s30 + $0x384] sm:$0xf] %v645_v33  ;;  %648 = vst [vmem:[%s4983_s30 + $0x388] sm:$0xf] %v647_v34  ;;  %v649_v35 = vld [vmem:[%s4976_s29 + $0x11bc] sm:$0xf] }
  0xad   : > { %v651_v36 = vld [vmem:[%s4976_s29 + $0x11d0] sm:$0xf]  ;;  %v653_v37 = vld [vmem:[%s4976_s29 + $0x11e4] sm:$0xf]  ;;  %650 = vst [vmem:[%s4983_s30 + $0x38c] sm:$0xf] %v649_v35 }
  0xae   : > { %652 = vst [vmem:[%s4983_s30 + $0x390] sm:$0xf] %v651_v36  ;;  %654 = vst [vmem:[%s4983_s30 + $0x394] sm:$0xf] %v653_v37  ;;  %v655_v38 = vld [vmem:[%s4976_s29 + $0x11f8] sm:$0xf] }
  0xaf   : > { %v657_v39 = vld [vmem:[%s4976_s29 + $0x120c] sm:$0xf]  ;;  %v659_v40 = vld [vmem:[%s4976_s29 + $0x1220] sm:$0xf]  ;;  %656 = vst [vmem:[%s4983_s30 + $0x398] sm:$0xf] %v655_v38 }
  0xb0   : > { %658 = vst [vmem:[%s4983_s30 + $0x39c] sm:$0xf] %v657_v39  ;;  %660 = vst [vmem:[%s4983_s30 + $0x3a0] sm:$0xf] %v659_v40  ;;  %v661_v41 = vld [vmem:[%s4976_s29 + $0x1234] sm:$0xf] }
  0xb1   : > { %v663_v42 = vld [vmem:[%s4976_s29 + $0x1248] sm:$0xf]  ;;  %v665_v43 = vld [vmem:[%s4976_s29 + $0x125c] sm:$0xf]  ;;  %662 = vst [vmem:[%s4983_s30 + $0x3a4] sm:$0xf] %v661_v41 }
  0xb2   : > { %664 = vst [vmem:[%s4983_s30 + $0x3a8] sm:$0xf] %v663_v42  ;;  %666 = vst [vmem:[%s4983_s30 + $0x3ac] sm:$0xf] %v665_v43  ;;  %v667_v44 = vld [vmem:[%s4976_s29 + $0x1270] sm:$0xf] }
  0xb3   : > { %v669_v45 = vld [vmem:[%s4976_s29 + $0x1284] sm:$0xf]  ;;  %v671_v46 = vld [vmem:[%s4976_s29 + $0x1298] sm:$0xf]  ;;  %668 = vst [vmem:[%s4983_s30 + $0x3b0] sm:$0xf] %v667_v44 }
  0xb4   : > { %670 = vst [vmem:[%s4983_s30 + $0x3b4] sm:$0xf] %v669_v45  ;;  %672 = vst [vmem:[%s4983_s30 + $0x3b8] sm:$0xf] %v671_v46  ;;  %v673_v47 = vld [vmem:[%s4976_s29 + $0x12ac] sm:$0xf] }
  0xb5   : > { %v675_v48 = vld [vmem:[%s4976_s29 + $0x12c0] sm:$0xf]  ;;  %v677_v49 = vld [vmem:[%s4976_s29 + $0x12d4] sm:$0xf]  ;;  %674 = vst [vmem:[%s4983_s30 + $0x3bc] sm:$0xf] %v673_v47 }
  0xb6   : > { %676 = vst [vmem:[%s4983_s30 + $0x3c0] sm:$0xf] %v675_v48  ;;  %678 = vst [vmem:[%s4983_s30 + $0x3c4] sm:$0xf] %v677_v49  ;;  %v679_v50 = vld [vmem:[%s4976_s29 + $0x12e8] sm:$0xf] }
  0xb7   : > { %v681_v51 = vld [vmem:[%s4976_s29 + $0x12fc] sm:$0xf]  ;;  %v683_v52 = vld [vmem:[%s4976_s29 + $0x1310] sm:$0xf]  ;;  %680 = vst [vmem:[%s4983_s30 + $0x3c8] sm:$0xf] %v679_v50 }
  0xb8   : > { %682 = vst [vmem:[%s4983_s30 + $0x3cc] sm:$0xf] %v681_v51  ;;  %684 = vst [vmem:[%s4983_s30 + $0x3d0] sm:$0xf] %v683_v52  ;;  %v685_v53 = vld [vmem:[%s4976_s29 + $0x1324] sm:$0xf] }
  0xb9   : > { %v687_v54 = vld [vmem:[%s4976_s29 + $0x1338] sm:$0xf]  ;;  %v689_v55 = vld [vmem:[%s4976_s29 + $0x134c] sm:$0xf]  ;;  %686 = vst [vmem:[%s4983_s30 + $0x3d4] sm:$0xf] %v685_v53 }
  0xba   : > { %688 = vst [vmem:[%s4983_s30 + $0x3d8] sm:$0xf] %v687_v54  ;;  %690 = vst [vmem:[%s4983_s30 + $0x3dc] sm:$0xf] %v689_v55  ;;  %v691_v56 = vld [vmem:[%s4976_s29 + $0x1360] sm:$0xf] }
  0xbb   : > { %v693_v57 = vld [vmem:[%s4976_s29 + $0x1374] sm:$0xf]  ;;  %v695_v58 = vld [vmem:[%s4976_s29 + $0x1388] sm:$0xf]  ;;  %692 = vst [vmem:[%s4983_s30 + $0x3e0] sm:$0xf] %v691_v56 }
  0xbc   : > { %694 = vst [vmem:[%s4983_s30 + $0x3e4] sm:$0xf] %v693_v57  ;;  %696 = vst [vmem:[%s4983_s30 + $0x3e8] sm:$0xf] %v695_v58  ;;  %v697_v59 = vld [vmem:[%s4976_s29 + $0x139c] sm:$0xf] }
  0xbd   : > { %v699_v60 = vld [vmem:[%s4976_s29 + $0x13b0] sm:$0xf]  ;;  %v701_v61 = vld [vmem:[%s4976_s29 + $0x13c4] sm:$0xf]  ;;  %698 = vst [vmem:[%s4983_s30 + $0x3ec] sm:$0xf] %v697_v59 }
  0xbe   : > { %700 = vst [vmem:[%s4983_s30 + $0x3f0] sm:$0xf] %v699_v60  ;;  %702 = vst [vmem:[%s4983_s30 + $0x3f4] sm:$0xf] %v701_v61  ;;  %v703_v62 = vld [vmem:[%s4976_s29 + $0x13d8] sm:$0xf] }
  0xbf   : > { %v705_v63 = vld [vmem:[%s4976_s29 + $0x13ec] sm:$0xf]  ;;  %v707_v0 = vld [vmem:[%s4976_s29 + $0x1400] sm:$0xf]  ;;  %704 = vst [vmem:[%s4983_s30 + $0x3f8] sm:$0xf] %v703_v62 }
  0xc0   : > { %706 = vst [vmem:[%s4983_s30 + $0x3fc] sm:$0xf] %v705_v63  ;;  %708 = vst [vmem:[%s4983_s30 + $0x400] sm:$0xf] %v707_v0  ;;  %v709_v1 = vld [vmem:[%s4976_s29 + $0x1414] sm:$0xf] }
  0xc1   : > { %v711_v2 = vld [vmem:[%s4976_s29 + $0x1428] sm:$0xf]  ;;  %v713_v3 = vld [vmem:[%s4976_s29 + $0x143c] sm:$0xf]  ;;  %710 = vst [vmem:[%s4983_s30 + $0x404] sm:$0xf] %v709_v1 }
  0xc2   : > { %712 = vst [vmem:[%s4983_s30 + $0x408] sm:$0xf] %v711_v2  ;;  %714 = vst [vmem:[%s4983_s30 + $0x40c] sm:$0xf] %v713_v3  ;;  %v715_v4 = vld [vmem:[%s4976_s29 + $0x1450] sm:$0xf] }
  0xc3   : > { %v717_v5 = vld [vmem:[%s4976_s29 + $0x1464] sm:$0xf]  ;;  %v719_v6 = vld [vmem:[%s4976_s29 + $0x1478] sm:$0xf]  ;;  %716 = vst [vmem:[%s4983_s30 + $0x410] sm:$0xf] %v715_v4 }
  0xc4   : > { %718 = vst [vmem:[%s4983_s30 + $0x414] sm:$0xf] %v717_v5  ;;  %720 = vst [vmem:[%s4983_s30 + $0x418] sm:$0xf] %v719_v6  ;;  %v721_v7 = vld [vmem:[%s4976_s29 + $0x148c] sm:$0xf] }
  0xc5   : > { %v723_v8 = vld [vmem:[%s4976_s29 + $0x14a0] sm:$0xf]  ;;  %v725_v9 = vld [vmem:[%s4976_s29 + $0x14b4] sm:$0xf]  ;;  %722 = vst [vmem:[%s4983_s30 + $0x41c] sm:$0xf] %v721_v7 }
  0xc6   : > { %724 = vst [vmem:[%s4983_s30 + $0x420] sm:$0xf] %v723_v8  ;;  %726 = vst [vmem:[%s4983_s30 + $0x424] sm:$0xf] %v725_v9  ;;  %v727_v10 = vld [vmem:[%s4976_s29 + $0x14c8] sm:$0xf] }
  0xc7   : > { %v729_v11 = vld [vmem:[%s4976_s29 + $0x14dc] sm:$0xf]  ;;  %v731_v12 = vld [vmem:[%s4976_s29 + $0x14f0] sm:$0xf]  ;;  %728 = vst [vmem:[%s4983_s30 + $0x428] sm:$0xf] %v727_v10 }
  0xc8   : > { %730 = vst [vmem:[%s4983_s30 + $0x42c] sm:$0xf] %v729_v11  ;;  %732 = vst [vmem:[%s4983_s30 + $0x430] sm:$0xf] %v731_v12  ;;  %v733_v13 = vld [vmem:[%s4976_s29 + $0x1504] sm:$0xf] }
  0xc9   : > { %v735_v14 = vld [vmem:[%s4976_s29 + $0x1518] sm:$0xf]  ;;  %v737_v15 = vld [vmem:[%s4976_s29 + $0x152c] sm:$0xf]  ;;  %734 = vst [vmem:[%s4983_s30 + $0x434] sm:$0xf] %v733_v13 }
  0xca   : > { %736 = vst [vmem:[%s4983_s30 + $0x438] sm:$0xf] %v735_v14  ;;  %738 = vst [vmem:[%s4983_s30 + $0x43c] sm:$0xf] %v737_v15  ;;  %v739_v16 = vld [vmem:[%s4976_s29 + $0x1540] sm:$0xf] }
  0xcb   : > { %v741_v17 = vld [vmem:[%s4976_s29 + $0x1554] sm:$0xf]  ;;  %v743_v18 = vld [vmem:[%s4976_s29 + $0x1568] sm:$0xf]  ;;  %740 = vst [vmem:[%s4983_s30 + $0x440] sm:$0xf] %v739_v16 }
  0xcc   : > { %742 = vst [vmem:[%s4983_s30 + $0x444] sm:$0xf] %v741_v17  ;;  %744 = vst [vmem:[%s4983_s30 + $0x448] sm:$0xf] %v743_v18  ;;  %v745_v19 = vld [vmem:[%s4976_s29 + $0x157c] sm:$0xf] }
  0xcd   : > { %v747_v20 = vld [vmem:[%s4976_s29 + $0x1590] sm:$0xf]  ;;  %v749_v21 = vld [vmem:[%s4976_s29 + $0x15a4] sm:$0xf]  ;;  %746 = vst [vmem:[%s4983_s30 + $0x44c] sm:$0xf] %v745_v19 }
  0xce   : > { %748 = vst [vmem:[%s4983_s30 + $0x450] sm:$0xf] %v747_v20  ;;  %750 = vst [vmem:[%s4983_s30 + $0x454] sm:$0xf] %v749_v21  ;;  %v751_v22 = vld [vmem:[%s4976_s29 + $0x15b8] sm:$0xf] }
  0xcf   : > { %v753_v23 = vld [vmem:[%s4976_s29 + $0x15cc] sm:$0xf]  ;;  %v755_v24 = vld [vmem:[%s4976_s29 + $0x15e0] sm:$0xf]  ;;  %752 = vst [vmem:[%s4983_s30 + $0x458] sm:$0xf] %v751_v22 }
  0xd0   : > { %754 = vst [vmem:[%s4983_s30 + $0x45c] sm:$0xf] %v753_v23  ;;  %756 = vst [vmem:[%s4983_s30 + $0x460] sm:$0xf] %v755_v24  ;;  %v757_v25 = vld [vmem:[%s4976_s29 + $0x15f4] sm:$0xf] }
  0xd1   : > { %v759_v26 = vld [vmem:[%s4976_s29 + $0x1608] sm:$0xf]  ;;  %v761_v27 = vld [vmem:[%s4976_s29 + $0x161c] sm:$0xf]  ;;  %758 = vst [vmem:[%s4983_s30 + $0x464] sm:$0xf] %v757_v25 }
  0xd2   : > { %760 = vst [vmem:[%s4983_s30 + $0x468] sm:$0xf] %v759_v26  ;;  %762 = vst [vmem:[%s4983_s30 + $0x46c] sm:$0xf] %v761_v27  ;;  %v763_v28 = vld [vmem:[%s4976_s29 + $0x1630] sm:$0xf] }
  0xd3   : > { %v765_v29 = vld [vmem:[%s4976_s29 + $0x1644] sm:$0xf]  ;;  %v767_v30 = vld [vmem:[%s4976_s29 + $0x1658] sm:$0xf]  ;;  %764 = vst [vmem:[%s4983_s30 + $0x470] sm:$0xf] %v763_v28 }
  0xd4   : > { %766 = vst [vmem:[%s4983_s30 + $0x474] sm:$0xf] %v765_v29  ;;  %768 = vst [vmem:[%s4983_s30 + $0x478] sm:$0xf] %v767_v30  ;;  %v769_v31 = vld [vmem:[%s4976_s29 + $0x166c] sm:$0xf] }
  0xd5   : > { %v771_v32 = vld [vmem:[%s4976_s29 + $0x1680] sm:$0xf]  ;;  %v773_v33 = vld [vmem:[%s4976_s29 + $0x1694] sm:$0xf]  ;;  %770 = vst [vmem:[%s4983_s30 + $0x47c] sm:$0xf] %v769_v31 }
  0xd6   : > { %772 = vst [vmem:[%s4983_s30 + $0x480] sm:$0xf] %v771_v32  ;;  %774 = vst [vmem:[%s4983_s30 + $0x484] sm:$0xf] %v773_v33  ;;  %v775_v34 = vld [vmem:[%s4976_s29 + $0x16a8] sm:$0xf] }
  0xd7   : > { %v777_v35 = vld [vmem:[%s4976_s29 + $0x16bc] sm:$0xf]  ;;  %v779_v36 = vld [vmem:[%s4976_s29 + $0x16d0] sm:$0xf]  ;;  %776 = vst [vmem:[%s4983_s30 + $0x488] sm:$0xf] %v775_v34 }
  0xd8   : > { %778 = vst [vmem:[%s4983_s30 + $0x48c] sm:$0xf] %v777_v35  ;;  %780 = vst [vmem:[%s4983_s30 + $0x490] sm:$0xf] %v779_v36  ;;  %v781_v37 = vld [vmem:[%s4976_s29 + $0x16e4] sm:$0xf] }
  0xd9   : > { %v783_v38 = vld [vmem:[%s4976_s29 + $0x16f8] sm:$0xf]  ;;  %v785_v39 = vld [vmem:[%s4976_s29 + $0x170c] sm:$0xf]  ;;  %782 = vst [vmem:[%s4983_s30 + $0x494] sm:$0xf] %v781_v37 }
  0xda   : > { %784 = vst [vmem:[%s4983_s30 + $0x498] sm:$0xf] %v783_v38  ;;  %786 = vst [vmem:[%s4983_s30 + $0x49c] sm:$0xf] %v785_v39  ;;  %v787_v40 = vld [vmem:[%s4976_s29 + $0x1720] sm:$0xf] }
  0xdb   : > { %v789_v41 = vld [vmem:[%s4976_s29 + $0x1734] sm:$0xf]  ;;  %v791_v42 = vld [vmem:[%s4976_s29 + $0x1748] sm:$0xf]  ;;  %788 = vst [vmem:[%s4983_s30 + $0x4a0] sm:$0xf] %v787_v40 }
  0xdc   : > { %790 = vst [vmem:[%s4983_s30 + $0x4a4] sm:$0xf] %v789_v41  ;;  %792 = vst [vmem:[%s4983_s30 + $0x4a8] sm:$0xf] %v791_v42  ;;  %v793_v43 = vld [vmem:[%s4976_s29 + $0x175c] sm:$0xf] }
  0xdd   : > { %v795_v44 = vld [vmem:[%s4976_s29 + $0x1770] sm:$0xf]  ;;  %v797_v45 = vld [vmem:[%s4976_s29 + $0x1784] sm:$0xf]  ;;  %794 = vst [vmem:[%s4983_s30 + $0x4ac] sm:$0xf] %v793_v43 }
  0xde   : > { %796 = vst [vmem:[%s4983_s30 + $0x4b0] sm:$0xf] %v795_v44  ;;  %798 = vst [vmem:[%s4983_s30 + $0x4b4] sm:$0xf] %v797_v45  ;;  %v799_v46 = vld [vmem:[%s4976_s29 + $0x1798] sm:$0xf] }
  0xdf   : > { %v801_v47 = vld [vmem:[%s4976_s29 + $0x17ac] sm:$0xf]  ;;  %v803_v48 = vld [vmem:[%s4976_s29 + $0x17c0] sm:$0xf]  ;;  %800 = vst [vmem:[%s4983_s30 + $0x4b8] sm:$0xf] %v799_v46 }
  0xe0   : > { %802 = vst [vmem:[%s4983_s30 + $0x4bc] sm:$0xf] %v801_v47  ;;  %804 = vst [vmem:[%s4983_s30 + $0x4c0] sm:$0xf] %v803_v48  ;;  %v805_v49 = vld [vmem:[%s4976_s29 + $0x17d4] sm:$0xf] }
  0xe1   : > { %v807_v50 = vld [vmem:[%s4976_s29 + $0x17e8] sm:$0xf]  ;;  %v809_v51 = vld [vmem:[%s4976_s29 + $0x17fc] sm:$0xf]  ;;  %806 = vst [vmem:[%s4983_s30 + $0x4c4] sm:$0xf] %v805_v49 }
  0xe2   : > { %808 = vst [vmem:[%s4983_s30 + $0x4c8] sm:$0xf] %v807_v50  ;;  %810 = vst [vmem:[%s4983_s30 + $0x4cc] sm:$0xf] %v809_v51  ;;  %v811_v52 = vld [vmem:[%s4976_s29 + $0x1810] sm:$0xf] }
  0xe3   : > { %v813_v53 = vld [vmem:[%s4976_s29 + $0x1824] sm:$0xf]  ;;  %v815_v54 = vld [vmem:[%s4976_s29 + $0x1838] sm:$0xf]  ;;  %812 = vst [vmem:[%s4983_s30 + $0x4d0] sm:$0xf] %v811_v52 }
  0xe4   : > { %814 = vst [vmem:[%s4983_s30 + $0x4d4] sm:$0xf] %v813_v53  ;;  %816 = vst [vmem:[%s4983_s30 + $0x4d8] sm:$0xf] %v815_v54  ;;  %v817_v55 = vld [vmem:[%s4976_s29 + $0x184c] sm:$0xf] }
  0xe5   : > { %v819_v56 = vld [vmem:[%s4976_s29 + $0x1860] sm:$0xf]  ;;  %v821_v57 = vld [vmem:[%s4976_s29 + $0x1874] sm:$0xf]  ;;  %818 = vst [vmem:[%s4983_s30 + $0x4dc] sm:$0xf] %v817_v55 }
  0xe6   : > { %820 = vst [vmem:[%s4983_s30 + $0x4e0] sm:$0xf] %v819_v56  ;;  %822 = vst [vmem:[%s4983_s30 + $0x4e4] sm:$0xf] %v821_v57  ;;  %v823_v58 = vld [vmem:[%s4976_s29 + $0x1888] sm:$0xf] }
  0xe7   : > { %v825_v59 = vld [vmem:[%s4976_s29 + $0x189c] sm:$0xf]  ;;  %v827_v60 = vld [vmem:[%s4976_s29 + $0x18b0] sm:$0xf]  ;;  %824 = vst [vmem:[%s4983_s30 + $0x4e8] sm:$0xf] %v823_v58 }
  0xe8   : > { %826 = vst [vmem:[%s4983_s30 + $0x4ec] sm:$0xf] %v825_v59  ;;  %828 = vst [vmem:[%s4983_s30 + $0x4f0] sm:$0xf] %v827_v60  ;;  %v829_v61 = vld [vmem:[%s4976_s29 + $0x18c4] sm:$0xf] }
  0xe9   : > { %v831_v62 = vld [vmem:[%s4976_s29 + $0x18d8] sm:$0xf]  ;;  %v833_v63 = vld [vmem:[%s4976_s29 + $0x18ec] sm:$0xf]  ;;  %830 = vst [vmem:[%s4983_s30 + $0x4f4] sm:$0xf] %v829_v61 }
  0xea   : > { %832 = vst [vmem:[%s4983_s30 + $0x4f8] sm:$0xf] %v831_v62  ;;  %834 = vst [vmem:[%s4983_s30 + $0x4fc] sm:$0xf] %v833_v63  ;;  %v835_v0 = vld [vmem:[%s4976_s29 + $0x1900] sm:$0xf] }
  0xeb   : > { %v837_v1 = vld [vmem:[%s4976_s29 + $0x1914] sm:$0xf]  ;;  %v839_v2 = vld [vmem:[%s4976_s29 + $0x1928] sm:$0xf]  ;;  %836 = vst [vmem:[%s4983_s30 + $0x500] sm:$0xf] %v835_v0 }
  0xec   : > { %838 = vst [vmem:[%s4983_s30 + $0x504] sm:$0xf] %v837_v1  ;;  %840 = vst [vmem:[%s4983_s30 + $0x508] sm:$0xf] %v839_v2  ;;  %v841_v3 = vld [vmem:[%s4976_s29 + $0x193c] sm:$0xf] }
  0xed   : > { %v843_v4 = vld [vmem:[%s4976_s29 + $0x1950] sm:$0xf]  ;;  %v845_v5 = vld [vmem:[%s4976_s29 + $0x1964] sm:$0xf]  ;;  %842 = vst [vmem:[%s4983_s30 + $0x50c] sm:$0xf] %v841_v3 }
  0xee   : > { %844 = vst [vmem:[%s4983_s30 + $0x510] sm:$0xf] %v843_v4  ;;  %846 = vst [vmem:[%s4983_s30 + $0x514] sm:$0xf] %v845_v5  ;;  %v847_v6 = vld [vmem:[%s4976_s29 + $0x1978] sm:$0xf] }
  0xef   : > { %v849_v7 = vld [vmem:[%s4976_s29 + $0x198c] sm:$0xf]  ;;  %v851_v8 = vld [vmem:[%s4976_s29 + $0x19a0] sm:$0xf]  ;;  %848 = vst [vmem:[%s4983_s30 + $0x518] sm:$0xf] %v847_v6 }
  0xf0   : > { %850 = vst [vmem:[%s4983_s30 + $0x51c] sm:$0xf] %v849_v7  ;;  %852 = vst [vmem:[%s4983_s30 + $0x520] sm:$0xf] %v851_v8  ;;  %v853_v9 = vld [vmem:[%s4976_s29 + $0x19b4] sm:$0xf] }
  0xf1   : > { %v855_v10 = vld [vmem:[%s4976_s29 + $0x19c8] sm:$0xf]  ;;  %v857_v11 = vld [vmem:[%s4976_s29 + $0x19dc] sm:$0xf]  ;;  %854 = vst [vmem:[%s4983_s30 + $0x524] sm:$0xf] %v853_v9 }
  0xf2   : > { %856 = vst [vmem:[%s4983_s30 + $0x528] sm:$0xf] %v855_v10  ;;  %858 = vst [vmem:[%s4983_s30 + $0x52c] sm:$0xf] %v857_v11  ;;  %v859_v12 = vld [vmem:[%s4976_s29 + $0x19f0] sm:$0xf] }
  0xf3   : > { %v861_v13 = vld [vmem:[%s4976_s29 + $0x1a04] sm:$0xf]  ;;  %v863_v14 = vld [vmem:[%s4976_s29 + $0x1a18] sm:$0xf]  ;;  %860 = vst [vmem:[%s4983_s30 + $0x530] sm:$0xf] %v859_v12 }
  0xf4   : > { %862 = vst [vmem:[%s4983_s30 + $0x534] sm:$0xf] %v861_v13  ;;  %864 = vst [vmem:[%s4983_s30 + $0x538] sm:$0xf] %v863_v14  ;;  %v865_v15 = vld [vmem:[%s4976_s29 + $0x1a2c] sm:$0xf] }
  0xf5   : > { %v867_v16 = vld [vmem:[%s4976_s29 + $0x1a40] sm:$0xf]  ;;  %v869_v17 = vld [vmem:[%s4976_s29 + $0x1a54] sm:$0xf]  ;;  %866 = vst [vmem:[%s4983_s30 + $0x53c] sm:$0xf] %v865_v15 }
  0xf6   : > { %868 = vst [vmem:[%s4983_s30 + $0x540] sm:$0xf] %v867_v16  ;;  %870 = vst [vmem:[%s4983_s30 + $0x544] sm:$0xf] %v869_v17  ;;  %v871_v18 = vld [vmem:[%s4976_s29 + $0x1a68] sm:$0xf] }
  0xf7   : > { %v873_v19 = vld [vmem:[%s4976_s29 + $0x1a7c] sm:$0xf]  ;;  %v875_v20 = vld [vmem:[%s4976_s29 + $0x1a90] sm:$0xf]  ;;  %872 = vst [vmem:[%s4983_s30 + $0x548] sm:$0xf] %v871_v18 }
  0xf8   : > { %874 = vst [vmem:[%s4983_s30 + $0x54c] sm:$0xf] %v873_v19  ;;  %876 = vst [vmem:[%s4983_s30 + $0x550] sm:$0xf] %v875_v20  ;;  %v877_v21 = vld [vmem:[%s4976_s29 + $0x1aa4] sm:$0xf] }
  0xf9   : > { %v879_v22 = vld [vmem:[%s4976_s29 + $0x1ab8] sm:$0xf]  ;;  %v881_v23 = vld [vmem:[%s4976_s29 + $0x1acc] sm:$0xf]  ;;  %878 = vst [vmem:[%s4983_s30 + $0x554] sm:$0xf] %v877_v21 }
  0xfa   : > { %880 = vst [vmem:[%s4983_s30 + $0x558] sm:$0xf] %v879_v22  ;;  %882 = vst [vmem:[%s4983_s30 + $0x55c] sm:$0xf] %v881_v23  ;;  %v883_v24 = vld [vmem:[%s4976_s29 + $0x1ae0] sm:$0xf] }
  0xfb   : > { %v885_v25 = vld [vmem:[%s4976_s29 + $0x1af4] sm:$0xf]  ;;  %v887_v26 = vld [vmem:[%s4976_s29 + $0x1b08] sm:$0xf]  ;;  %884 = vst [vmem:[%s4983_s30 + $0x560] sm:$0xf] %v883_v24 }
  0xfc   : > { %886 = vst [vmem:[%s4983_s30 + $0x564] sm:$0xf] %v885_v25  ;;  %888 = vst [vmem:[%s4983_s30 + $0x568] sm:$0xf] %v887_v26  ;;  %v889_v27 = vld [vmem:[%s4976_s29 + $0x1b1c] sm:$0xf] }
  0xfd   : > { %v891_v28 = vld [vmem:[%s4976_s29 + $0x1b30] sm:$0xf]  ;;  %v893_v29 = vld [vmem:[%s4976_s29 + $0x1b44] sm:$0xf]  ;;  %890 = vst [vmem:[%s4983_s30 + $0x56c] sm:$0xf] %v889_v27 }
  0xfe   : > { %892 = vst [vmem:[%s4983_s30 + $0x570] sm:$0xf] %v891_v28  ;;  %894 = vst [vmem:[%s4983_s30 + $0x574] sm:$0xf] %v893_v29  ;;  %v895_v30 = vld [vmem:[%s4976_s29 + $0x1b58] sm:$0xf] }
  0xff   : > { %v897_v31 = vld [vmem:[%s4976_s29 + $0x1b6c] sm:$0xf]  ;;  %v899_v32 = vld [vmem:[%s4976_s29 + $0x1b80] sm:$0xf]  ;;  %896 = vst [vmem:[%s4983_s30 + $0x578] sm:$0xf] %v895_v30 }
 0x100   : > { %898 = vst [vmem:[%s4983_s30 + $0x57c] sm:$0xf] %v897_v31  ;;  %900 = vst [vmem:[%s4983_s30 + $0x580] sm:$0xf] %v899_v32  ;;  %v901_v33 = vld [vmem:[%s4976_s29 + $0x1b94] sm:$0xf] }
 0x101   : > { %v903_v34 = vld [vmem:[%s4976_s29 + $0x1ba8] sm:$0xf]  ;;  %v905_v35 = vld [vmem:[%s4976_s29 + $0x1bbc] sm:$0xf]  ;;  %902 = vst [vmem:[%s4983_s30 + $0x584] sm:$0xf] %v901_v33 }
 0x102   : > { %904 = vst [vmem:[%s4983_s30 + $0x588] sm:$0xf] %v903_v34  ;;  %906 = vst [vmem:[%s4983_s30 + $0x58c] sm:$0xf] %v905_v35  ;;  %v907_v36 = vld [vmem:[%s4976_s29 + $0x1bd0] sm:$0xf] }
 0x103   : > { %v909_v37 = vld [vmem:[%s4976_s29 + $0x1be4] sm:$0xf]  ;;  %v911_v38 = vld [vmem:[%s4976_s29 + $0x1bf8] sm:$0xf]  ;;  %908 = vst [vmem:[%s4983_s30 + $0x590] sm:$0xf] %v907_v36 }
 0x104   : > { %910 = vst [vmem:[%s4983_s30 + $0x594] sm:$0xf] %v909_v37  ;;  %912 = vst [vmem:[%s4983_s30 + $0x598] sm:$0xf] %v911_v38  ;;  %v913_v39 = vld [vmem:[%s4976_s29 + $0x1c0c] sm:$0xf] }
 0x105   : > { %v915_v40 = vld [vmem:[%s4976_s29 + $0x1c20] sm:$0xf]  ;;  %v917_v41 = vld [vmem:[%s4976_s29 + $0x1c34] sm:$0xf]  ;;  %914 = vst [vmem:[%s4983_s30 + $0x59c] sm:$0xf] %v913_v39 }
 0x106   : > { %916 = vst [vmem:[%s4983_s30 + $0x5a0] sm:$0xf] %v915_v40  ;;  %918 = vst [vmem:[%s4983_s30 + $0x5a4] sm:$0xf] %v917_v41  ;;  %v919_v42 = vld [vmem:[%s4976_s29 + $0x1c48] sm:$0xf] }
 0x107   : > { %v921_v43 = vld [vmem:[%s4976_s29 + $0x1c5c] sm:$0xf]  ;;  %v923_v44 = vld [vmem:[%s4976_s29 + $0x1c70] sm:$0xf]  ;;  %920 = vst [vmem:[%s4983_s30 + $0x5a8] sm:$0xf] %v919_v42 }
 0x108   : > { %922 = vst [vmem:[%s4983_s30 + $0x5ac] sm:$0xf] %v921_v43  ;;  %924 = vst [vmem:[%s4983_s30 + $0x5b0] sm:$0xf] %v923_v44  ;;  %v925_v45 = vld [vmem:[%s4976_s29 + $0x1c84] sm:$0xf] }
 0x109   : > { %v927_v46 = vld [vmem:[%s4976_s29 + $0x1c98] sm:$0xf]  ;;  %v929_v47 = vld [vmem:[%s4976_s29 + $0x1cac] sm:$0xf]  ;;  %926 = vst [vmem:[%s4983_s30 + $0x5b4] sm:$0xf] %v925_v45 }
 0x10a   : > { %928 = vst [vmem:[%s4983_s30 + $0x5b8] sm:$0xf] %v927_v46  ;;  %930 = vst [vmem:[%s4983_s30 + $0x5bc] sm:$0xf] %v929_v47  ;;  %v931_v48 = vld [vmem:[%s4976_s29 + $0x1cc0] sm:$0xf] }
 0x10b   : > { %v933_v49 = vld [vmem:[%s4976_s29 + $0x1cd4] sm:$0xf]  ;;  %v935_v50 = vld [vmem:[%s4976_s29 + $0x1ce8] sm:$0xf]  ;;  %932 = vst [vmem:[%s4983_s30 + $0x5c0] sm:$0xf] %v931_v48 }
 0x10c   : > { %934 = vst [vmem:[%s4983_s30 + $0x5c4] sm:$0xf] %v933_v49  ;;  %936 = vst [vmem:[%s4983_s30 + $0x5c8] sm:$0xf] %v935_v50  ;;  %v937_v51 = vld [vmem:[%s4976_s29 + $0x1cfc] sm:$0xf] }
 0x10d   : > { %v939_v52 = vld [vmem:[%s4976_s29 + $0x1d10] sm:$0xf]  ;;  %v941_v53 = vld [vmem:[%s4976_s29 + $0x1d24] sm:$0xf]  ;;  %938 = vst [vmem:[%s4983_s30 + $0x5cc] sm:$0xf] %v937_v51 }
 0x10e   : > { %940 = vst [vmem:[%s4983_s30 + $0x5d0] sm:$0xf] %v939_v52  ;;  %942 = vst [vmem:[%s4983_s30 + $0x5d4] sm:$0xf] %v941_v53  ;;  %v943_v54 = vld [vmem:[%s4976_s29 + $0x1d38] sm:$0xf] }
 0x10f   : > { %v945_v55 = vld [vmem:[%s4976_s29 + $0x1d4c] sm:$0xf]  ;;  %v947_v56 = vld [vmem:[%s4976_s29 + $0x1d60] sm:$0xf]  ;;  %944 = vst [vmem:[%s4983_s30 + $0x5d8] sm:$0xf] %v943_v54 }
 0x110   : > { %946 = vst [vmem:[%s4983_s30 + $0x5dc] sm:$0xf] %v945_v55  ;;  %948 = vst [vmem:[%s4983_s30 + $0x5e0] sm:$0xf] %v947_v56  ;;  %v949_v57 = vld [vmem:[%s4976_s29 + $0x1d74] sm:$0xf] }
 0x111   : > { %v951_v58 = vld [vmem:[%s4976_s29 + $0x1d88] sm:$0xf]  ;;  %v953_v59 = vld [vmem:[%s4976_s29 + $0x1d9c] sm:$0xf]  ;;  %950 = vst [vmem:[%s4983_s30 + $0x5e4] sm:$0xf] %v949_v57 }
 0x112   : > { %952 = vst [vmem:[%s4983_s30 + $0x5e8] sm:$0xf] %v951_v58  ;;  %954 = vst [vmem:[%s4983_s30 + $0x5ec] sm:$0xf] %v953_v59  ;;  %v955_v60 = vld [vmem:[%s4976_s29 + $0x1db0] sm:$0xf] }
 0x113   : > { %v957_v61 = vld [vmem:[%s4976_s29 + $0x1dc4] sm:$0xf]  ;;  %v959_v62 = vld [vmem:[%s4976_s29 + $0x1dd8] sm:$0xf]  ;;  %956 = vst [vmem:[%s4983_s30 + $0x5f0] sm:$0xf] %v955_v60 }
 0x114   : > { %958 = vst [vmem:[%s4983_s30 + $0x5f4] sm:$0xf] %v957_v61  ;;  %960 = vst [vmem:[%s4983_s30 + $0x5f8] sm:$0xf] %v959_v62  ;;  %v961_v63 = vld [vmem:[%s4976_s29 + $0x1dec] sm:$0xf] }
 0x115   : > { %962 = vst [vmem:[%s4983_s30 + $0x5fc] sm:$0xf] %v961_v63 }
 0x116 PF: > { %p4082_p7 = scmp.ge.s32.totalorder %s4897_s18, 1  ;;  %p1758_p8 = scmp.lt.s32.totalorder %s4897_s18, 21 }
 0x118   : > { %p1759_p9 = pnand %p4082_p7, %p1758_p8 }
 0x119   : > { %s1765_s4 = sand.u32 (!%p1759_p9), 1, %s4873_s12   ;;  %p1805_p10 = scmp.lt.s32.totalorder (!%p1759_p9), %s4881_s14, 3 }
 0x11a   : > { %1762 = sbr.rel (%p1759_p9) target bundleno = 702 (0x2be), region = 69  ;;  %p1814_p11 = scmp.lt.s32.totalorder (!%p1759_p9), %s4885_s15, 4 }
 0x11b   : > { %s4569_s5 = smul.u32 (!%p1759_p9), 1536, %s1765_s4 }
 0x11c   : > { %s1817_s25 = smul.u32 (!%p1759_p9), 5, %s4881_s14 }
 0x11d   : > { %s5751_s6 = scalar_lea.vmem (!%p1759_p9), [#allocation2], %s4569_s5 }
 0x11e   : > { %v4627_v0 = vld [vmem:[%s5751_s6 + $0x40] sm:$0xff] (!%p1759_p9)   ;;  %v4631_v4 = vld [vmem:[%s5751_s6 + $0x48] sm:$0xff] (!%p1759_p9)   ;;  %v4635_v8 = vld [vmem:[%s5751_s6 + $0x50] sm:$0xff] (!%p1759_p9)   ;;  %s1818_s26 = sadd.s32 (!%p1759_p9), %s4885_s15, %s1817_s25 }
 0x11f   : > { %v4628_v1 = vld [vmem:[%s5751_s6 + $0xc0] sm:$0xff] (!%p1759_p9)   ;;  %4304 = vmatprep.subr.bf16.mxu0 (!%p1759_p9), %v4627_v0  ;;  %v4632_v5 = vld [vmem:[%s5751_s6 + $0xc8] sm:$0xff] (!%p1759_p9)   ;;  %v4636_v9 = vld [vmem:[%s5751_s6 + $0xd0] sm:$0xff] (!%p1759_p9)   ;;  %p1821_p12 = scmp.lt.s32.totalorder (!%p1759_p9), %s1818_s26, 19 }
 0x120   : > { %v4629_v2 = vld [vmem:[%s5751_s6] sm:$0xff] (!%p1759_p9)   ;;  %4326 = vmatprep.subr.bf16.mxu1 (!%p1759_p9), %v4628_v1  ;;  %v4633_v6 = vld [vmem:[%s5751_s6 + $0x8] sm:$0xff] (!%p1759_p9)   ;;  %v4637_v10 = vld [vmem:[%s5751_s6 + $0x10] sm:$0xff] (!%p1759_p9)  }
 0x121   : > { %v4630_v3 = vld [vmem:[%s5751_s6 + $0x80] sm:$0xff]   ;;  %4305 = vmatpush3.bf16.msra.mxu0 %v4629_v2  ;;  %v4634_v7 = vld [vmem:[%s5751_s6 + $0x88] sm:$0xff]   ;;  %v4638_v11 = vld [vmem:[%s5751_s6 + $0x90] sm:$0xff]   ;;  %s1806_s7 = scalar_select %p1805_p10, %s4881_s14, 3 }
 0x122   : > { %4327 = vmatpush3.bf16.msra.mxu1 %v4630_v3  ;;  %4306 = vmatprep.subr.bf16.mxu0 %v4631_v4  ;;  %v4639_v12 = vld [vmem:[%s5751_s6 + $0x58] sm:$0xff]   ;;  %v4643_v16 = vld [vmem:[%s5751_s6 + $0x60] sm:$0xff]   ;;  %v4647_v20 = vld [vmem:[%s5751_s6 + $0x68] sm:$0xff]   ;;  %s1815_s12 = scalar_select %p1814_p11, %s4885_s15, 4 }
 0x123   : > { %4328 = vmatprep.subr.bf16.mxu1 %v4632_v5  ;;  %v4640_v13 = vld [vmem:[%s5751_s6 + $0xd8] sm:$0xff]   ;;  %v4644_v17 = vld [vmem:[%s5751_s6 + $0xe0] sm:$0xff]   ;;  %v4648_v21 = vld [vmem:[%s5751_s6 + $0xe8] sm:$0xff]   ;;  %s4570_s8 = smul.u32 96, %s1806_s7  ;;  %s6012_s26 = smov (!%p1821_p12, %s1818_s26), 19 }
 0x124   : > { %v4641_v14 = vld [vmem:[%s5751_s6 + $0x18] sm:$0xff]   ;;  %v4645_v18 = vld [vmem:[%s5751_s6 + $0x20] sm:$0xff]   ;;  %v4649_v22 = vld [vmem:[%s5751_s6 + $0x28] sm:$0xff]   ;;  %s1816_s24 = scalar_lea.vmem %s5997_s2, %s1815_s12  ;;  %s4084_s27 = sshll.u32 %s6012_s26, 2 }
 0x125   : > { %4307 = vmatpush3.bf16.msra.mxu0 %v4633_v6  ;;  %v4642_v15 = vld [vmem:[%s5751_s6 + $0x98] sm:$0xff]   ;;  %v4646_v19 = vld [vmem:[%s5751_s6 + $0xa0] sm:$0xff]   ;;  %v4650_v23 = vld [vmem:[%s5751_s6 + $0xa8] sm:$0xff]   ;;  %s5788_s11 = scalar_lea.vmem %s5995_s0, %s4570_s8  ;;  %s1826_s14 = scalar_lea.vmem %s5998_s3, %s4084_s27 }
 0x126   : > { %4329 = vmatpush3.bf16.msra.mxu1 %v4634_v7  ;;  %4308 = vmatprep.subr.bf16.mxu0 %v4635_v8  ;;  %v4651_v24 = vld [vmem:[%s5751_s6 + $0x70] sm:$0xff]   ;;  %v4655_v28 = vld [vmem:[%s5751_s6 + $0x78] sm:$0xff]   ;;  %v1830_v32 = vld [vmem:[%s5788_s11] sm:$0xff] }
 0x127   : > { %4330 = vmatprep.subr.bf16.mxu1 %v4636_v9  ;;  %v4652_v25 = vld [vmem:[%s5751_s6 + $0xf0] sm:$0xff]   ;;  %v4656_v29 = vld [vmem:[%s5751_s6 + $0xf8] sm:$0xff]   ;;  %v1831_v33 = vld [vmem:[%s5788_s11 + $0x8] sm:$0xff]  ;;  %v4086_v34 = vcombine.low %v1830_v32, %v1830_v32  ;;  %v4087_v35 = vcombine.high %v1830_v32, %v1830_v32 }
 0x128   : > { %v4653_v26 = vld [vmem:[%s5751_s6 + $0x30] sm:$0xff]   ;;  %v4657_v30 = vld [vmem:[%s5751_s6 + $0x38] sm:$0xff]   ;;  %v4088_v36 = vcombine.low %v1831_v33, %v1831_v33  ;;  %v4089_v37 = vcombine.high %v1831_v33, %v1831_v33  ;;  %v4663_v38 = vld [vmem:[%s5751_s6 + $0x140] sm:$0xff]  }
 0x129   : > { %4309 = vmatpush3.bf16.msra.mxu0 %v4637_v10  ;;  %v4654_v27 = vld [vmem:[%s5751_s6 + $0xb0] sm:$0xff]   ;;  %v4658_v31 = vld [vmem:[%s5751_s6 + $0xb8] sm:$0xff]   ;;  %v4664_v39 = vld [vmem:[%s5751_s6 + $0x1c0] sm:$0xff]   ;;  %3501 = vmatprep.mubr.bf16.mxu0 %v4087_v35 }
 0x12a   : > { %4331 = vmatpush3.bf16.msra.mxu1 %v4638_v11  ;;  %4310 = vmatprep.subr.bf16.mxu0 %v4639_v12  ;;  %v4665_v40 = vld [vmem:[%s5751_s6 + $0x100] sm:$0xff]   ;;  %v4667_v42 = vld [vmem:[%s5751_s6 + $0x148] sm:$0xff]   ;;  %v4671_v46 = vld [vmem:[%s5751_s6 + $0x150] sm:$0xff]  }
 0x12b   : > { %4332 = vmatprep.subr.bf16.mxu1 %v4640_v13  ;;  %3541 = vmatprep.mubr.bf16.mxu1 %v4089_v37  ;;  %v4666_v41 = vld [vmem:[%s5751_s6 + $0x180] sm:$0xff]   ;;  %v4668_v43 = vld [vmem:[%s5751_s6 + $0x1c8] sm:$0xff]   ;;  %v4672_v47 = vld [vmem:[%s5751_s6 + $0x1d0] sm:$0xff]  }
 0x12c   : > { %v4669_v44 = vld [vmem:[%s5751_s6 + $0x108] sm:$0xff]   ;;  %v4673_v48 = vld [vmem:[%s5751_s6 + $0x110] sm:$0xff]   ;;  %v4675_v50 = vld [vmem:[%s5751_s6 + $0x158] sm:$0xff]  }
 0x12d   : > { %4311 = vmatpush3.bf16.msra.mxu0 %v4641_v14  ;;  %v4670_v45 = vld [vmem:[%s5751_s6 + $0x188] sm:$0xff]   ;;  %v4674_v49 = vld [vmem:[%s5751_s6 + $0x190] sm:$0xff]   ;;  %v4676_v51 = vld [vmem:[%s5751_s6 + $0x1d8] sm:$0xff]  }
 0x12e   : > { %4333 = vmatpush3.bf16.msra.mxu1 %v4642_v15  ;;  %4312 = vmatprep.subr.bf16.mxu0 %v4643_v16  ;;  %v4677_v52 = vld [vmem:[%s5751_s6 + $0x118] sm:$0xff]   ;;  %v4679_v54 = vld [vmem:[%s5751_s6 + $0x160] sm:$0xff]   ;;  %v4683_v58 = vld [vmem:[%s5751_s6 + $0x168] sm:$0xff]  }
 0x12f   : > { %4334 = vmatprep.subr.bf16.mxu1 %v4644_v17  ;;  %v4678_v53 = vld [vmem:[%s5751_s6 + $0x198] sm:$0xff]   ;;  %v4680_v55 = vld [vmem:[%s5751_s6 + $0x1e0] sm:$0xff]   ;;  %v4684_v59 = vld [vmem:[%s5751_s6 + $0x1e8] sm:$0xff]  }
 0x130   : > { %v4681_v56 = vld [vmem:[%s5751_s6 + $0x120] sm:$0xff]   ;;  %v4685_v60 = vld [vmem:[%s5751_s6 + $0x128] sm:$0xff]   ;;  %v4687_v62 = vld [vmem:[%s5751_s6 + $0x170] sm:$0xff]  }
 0x131   : > { %4313 = vmatpush3.bf16.msra.mxu0 %v4645_v18  ;;  %v4682_v57 = vld [vmem:[%s5751_s6 + $0x1a0] sm:$0xff]   ;;  %v4686_v61 = vld [vmem:[%s5751_s6 + $0x1a8] sm:$0xff]   ;;  %v4688_v63 = vld [vmem:[%s5751_s6 + $0x1f0] sm:$0xff]  }
 0x132   : > { %4335 = vmatpush3.bf16.msra.mxu1 %v4646_v19  ;;  %4314 = vmatprep.subr.bf16.mxu0 %v4647_v20  ;;  %v4689_v0 = vld [vmem:[%s5751_s6 + $0x130] sm:$0xff]   ;;  %v4691_v2 = vld [vmem:[%s5751_s6 + $0x178] sm:$0xff]   ;;  %v4699_v12 = vld [vmem:[%s5751_s6 + $0x240] sm:$0xff]  }
 0x133   : > { %4336 = vmatprep.subr.bf16.mxu1 %v4648_v21  ;;  %v4690_v1 = vld [vmem:[%s5751_s6 + $0x1b0] sm:$0xff]   ;;  %v4692_v3 = vld [vmem:[%s5751_s6 + $0x1f8] sm:$0xff]   ;;  %v4700_v13 = vld [vmem:[%s5751_s6 + $0x2c0] sm:$0xff]  }
 0x134   : > { %v4693_v4 = vld [vmem:[%s5751_s6 + $0x138] sm:$0xff]   ;;  %v1832_v6 = vld [vmem:[%s5788_s11 + $0x10] sm:$0xff]  ;;  %v4701_v14 = vld [vmem:[%s5751_s6 + $0x200] sm:$0xff]  }
 0x135   : > { %4315 = vmatpush3.bf16.msra.mxu0 %v4649_v22  ;;  %v4694_v5 = vld [vmem:[%s5751_s6 + $0x1b8] sm:$0xff]   ;;  %v4090_v7 = vcombine.low %v1832_v6, %v1832_v6  ;;  %v4091_v8 = vcombine.high %v1832_v6, %v1832_v6  ;;  %v4702_v15 = vld [vmem:[%s5751_s6 + $0x280] sm:$0xff]   ;;  %v4703_v16 = vld [vmem:[%s5751_s6 + $0x248] sm:$0xff]  }
 0x136   : > { %4337 = vmatpush3.bf16.msra.mxu1 %v4650_v23  ;;  %4316 = vmatprep.subr.bf16.mxu0 %v4651_v24  ;;  %v1833_v9 = vld [vmem:[%s5788_s11 + $0x18] sm:$0xff]  ;;  %v4704_v17 = vld [vmem:[%s5751_s6 + $0x2c8] sm:$0xff]   ;;  %v4707_v20 = vld [vmem:[%s5751_s6 + $0x250] sm:$0xff]  }
 0x137   : > { %4338 = vmatprep.subr.bf16.mxu1 %v4652_v25  ;;  %v4092_v10 = vcombine.low %v1833_v9, %v1833_v9  ;;  %v4093_v11 = vcombine.high %v1833_v9, %v1833_v9  ;;  %v4705_v18 = vld [vmem:[%s5751_s6 + $0x208] sm:$0xff]   ;;  %v4708_v21 = vld [vmem:[%s5751_s6 + $0x2d0] sm:$0xff]   ;;  %v4711_v24 = vld [vmem:[%s5751_s6 + $0x258] sm:$0xff]  }
 0x138   : > { %v4706_v19 = vld [vmem:[%s5751_s6 + $0x288] sm:$0xff]   ;;  %v4709_v22 = vld [vmem:[%s5751_s6 + $0x210] sm:$0xff]   ;;  %v4712_v25 = vld [vmem:[%s5751_s6 + $0x2d8] sm:$0xff]  }
 0x139   : > { %4317 = vmatpush3.bf16.msra.mxu0 %v4653_v26  ;;  %v4710_v23 = vld [vmem:[%s5751_s6 + $0x290] sm:$0xff]   ;;  %v4713_v26 = vld [vmem:[%s5751_s6 + $0x218] sm:$0xff]   ;;  %v4719_v32 = vld [vmem:[%s5751_s6 + $0x268] sm:$0xff]  }
 0x13a   : > { %4339 = vmatpush3.bf16.msra.mxu1 %v4654_v27  ;;  %4318 = vmatprep.subr.bf16.mxu0 %v4655_v28  ;;  %v4714_v27 = vld [vmem:[%s5751_s6 + $0x298] sm:$0xff]   ;;  %v4715_v28 = vld [vmem:[%s5751_s6 + $0x260] sm:$0xff]   ;;  %v4720_v33 = vld [vmem:[%s5751_s6 + $0x2e8] sm:$0xff]  }
 0x13b   : > { %4340 = vmatprep.subr.bf16.mxu1 %v4656_v29  ;;  %v4716_v29 = vld [vmem:[%s5751_s6 + $0x2e0] sm:$0xff]   ;;  %v4722_v35 = vld [vmem:[%s5751_s6 + $0x2a8] sm:$0xff]   ;;  %v4724_v37 = vld [vmem:[%s5751_s6 + $0x2f0] sm:$0xff]  }
 0x13c   : > { %v4755_v6 = vld [vmem:[%s5751_s6 + $0x368] sm:$0xff]  }
 0x13d   : > { %4319 = vmatpush3.bf16.msra.mxu0 %v4657_v30  ;;  %v4717_v30 = vld [vmem:[%s5751_s6 + $0x220] sm:$0xff]   ;;  %v4758_v9 = vld [vmem:[%s5751_s6 + $0x3a8] sm:$0xff]  }
 0x13e   : > { %4341 = vmatpush3.bf16.msra.mxu1 %v4658_v31  ;;  %4348 = vmatprep.subr.bf16.mxu0 %v4663_v38  ;;  %v4718_v31 = vld [vmem:[%s5751_s6 + $0x2a0] sm:$0xff]   ;;  %v4725_v38 = vld [vmem:[%s5751_s6 + $0x230] sm:$0xff]  }
 0x13f   : > { %4370 = vmatprep.subr.bf16.mxu1 %v4664_v39  ;;  %v4726_v39 = vld [vmem:[%s5751_s6 + $0x2b0] sm:$0xff]  }
 0x140   : > { %3502 = vmatmul.mubr.bf16.vlgmr.msra.gmra.mrb[0].mxu0 %v4086_v34  ;;  %v4721_v34 = vld [vmem:[%s5751_s6 + $0x228] sm:$0xff]  }
 0x141   : > { %3542 = vmatmul.mubr.bf16.vlgmr.msra.gmra.mrb[0].mxu1 %v4088_v36  ;;  %4349 = vmatpush3.bf16.msra.mxu0 %v4665_v40  ;;  %v4723_v36 = vld [vmem:[%s5751_s6 + $0x270] sm:$0xff]   ;;  %v4727_v40 = vld [vmem:[%s5751_s6 + $0x278] sm:$0xff]  }
 0x142   : > { %4371 = vmatpush3.bf16.msra.mxu1 %v4666_v41  ;;  %4350 = vmatprep.subr.bf16.mxu0 %v4667_v42  ;;  %v4728_v41 = vld [vmem:[%s5751_s6 + $0x2f8] sm:$0xff]  }
 0x143   : > { %4372 = vmatprep.subr.bf16.mxu1 %v4668_v43  ;;  %3581 = vmatprep.mubr.bf16.mxu0 %v4091_v8  ;;  %v4729_v42 = vld [vmem:[%s5751_s6 + $0x238] sm:$0xff]   ;;  %v4757_v8 = vld [vmem:[%s5751_s6 + $0x328] sm:$0xff]  }
 0x144   : > { %3621 = vmatprep.mubr.bf16.mxu1 %v4093_v11  ;;  %v4730_v43 = vld [vmem:[%s5751_s6 + $0x2b8] sm:$0xff]   ;;  %v4760_v11 = vld [vmem:[%s5751_s6 + $0x3f0] sm:$0xff]  }
 0x145   : > { %4351 = vmatpush3.bf16.msra.mxu0 %v4669_v44  ;;  %v1834_v44 = vld [vmem:[%s5788_s11 + $0x20] sm:$0xff] }
 0x146   : > { %4373 = vmatpush3.bf16.msra.mxu1 %v4670_v45  ;;  %4352 = vmatprep.subr.bf16.mxu0 %v4671_v46  ;;  %v1835_v45 = vld [vmem:[%s5788_s11 + $0x28] sm:$0xff]  ;;  %v4094_v46 = vcombine.low %v1834_v44, %v1834_v44 }
 0x147   : > { %4374 = vmatprep.subr.bf16.mxu1 %v4672_v47  ;;  %v4095_v47 = vcombine.high %v1834_v44, %v1834_v44  ;;  %v4791_v44 = vld [vmem:[%s5751_s6 + $0x468] sm:$0xff]  }
 0x149   : > { %4353 = vmatpush3.bf16.msra.mxu0 %v4673_v48  ;;  %v4096_v48 = vcombine.low %v1835_v45, %v1835_v45 }
 0x14a   : > { %4375 = vmatpush3.bf16.msra.mxu1 %v4674_v49  ;;  %4354 = vmatprep.subr.bf16.mxu0 %v4675_v50  ;;  %v4097_v49 = vcombine.high %v1835_v45, %v1835_v45  ;;  %v4735_v50 = vld [vmem:[%s5751_s6 + $0x340] sm:$0xff]   ;;  %v4792_v45 = vld [vmem:[%s5751_s6 + $0x4e8] sm:$0xff]  }
 0x14b   : > { %4376 = vmatprep.subr.bf16.mxu1 %v4676_v51  ;;  %v4736_v51 = vld [vmem:[%s5751_s6 + $0x3c0] sm:$0xff]  }
 0x14d   : > { %4355 = vmatpush3.bf16.msra.mxu0 %v4677_v52  ;;  %v4737_v52 = vld [vmem:[%s5751_s6 + $0x300] sm:$0xff]  }
 0x14e   : > { %4377 = vmatpush3.bf16.msra.mxu1 %v4678_v53  ;;  %4356 = vmatprep.subr.bf16.mxu0 %v4679_v54  ;;  %v4738_v53 = vld [vmem:[%s5751_s6 + $0x380] sm:$0xff]   ;;  %v4739_v54 = vld [vmem:[%s5751_s6 + $0x348] sm:$0xff]  }
 0x14f   : > { %4378 = vmatprep.subr.bf16.mxu1 %v4680_v55  ;;  %v4740_v55 = vld [vmem:[%s5751_s6 + $0x3c8] sm:$0xff]  }
 0x151   : > { %4357 = vmatpush3.bf16.msra.mxu0 %v4681_v56  ;;  %v4741_v56 = vld [vmem:[%s5751_s6 + $0x308] sm:$0xff]  }
 0x152   : > { %4379 = vmatpush3.bf16.msra.mxu1 %v4682_v57  ;;  %4358 = vmatprep.subr.bf16.mxu0 %v4683_v58  ;;  %v4742_v57 = vld [vmem:[%s5751_s6 + $0x388] sm:$0xff]   ;;  %v4743_v58 = vld [vmem:[%s5751_s6 + $0x350] sm:$0xff]  }
 0x153   : > { %4380 = vmatprep.subr.bf16.mxu1 %v4684_v59  ;;  %v4744_v59 = vld [vmem:[%s5751_s6 + $0x3d0] sm:$0xff]  }
 0x155   : > { %4359 = vmatpush3.bf16.msra.mxu0 %v4685_v60  ;;  %v4745_v60 = vld [vmem:[%s5751_s6 + $0x310] sm:$0xff]  }
 0x156   : > { %4381 = vmatpush3.bf16.msra.mxu1 %v4686_v61  ;;  %4360 = vmatprep.subr.bf16.mxu0 %v4687_v62  ;;  %v4746_v61 = vld [vmem:[%s5751_s6 + $0x390] sm:$0xff]   ;;  %v4747_v62 = vld [vmem:[%s5751_s6 + $0x358] sm:$0xff]  }
 0x157   : > { %4382 = vmatprep.subr.bf16.mxu1 %v4688_v63  ;;  %v4748_v63 = vld [vmem:[%s5751_s6 + $0x3d8] sm:$0xff]  }
 0x159   : > { %4361 = vmatpush3.bf16.msra.mxu0 %v4689_v0  ;;  %v4749_v0 = vld [vmem:[%s5751_s6 + $0x318] sm:$0xff]  }
 0x15a   : > { %4383 = vmatpush3.bf16.msra.mxu1 %v4690_v1  ;;  %4362 = vmatprep.subr.bf16.mxu0 %v4691_v2  ;;  %v4750_v1 = vld [vmem:[%s5751_s6 + $0x398] sm:$0xff]   ;;  %v4751_v2 = vld [vmem:[%s5751_s6 + $0x360] sm:$0xff]  }
 0x15b   : > { %4384 = vmatprep.subr.bf16.mxu1 %v4692_v3  ;;  %v4752_v3 = vld [vmem:[%s5751_s6 + $0x3e0] sm:$0xff]  }
 0x15d   : > { %4363 = vmatpush3.bf16.msra.mxu0 %v4693_v4  ;;  %v4753_v4 = vld [vmem:[%s5751_s6 + $0x320] sm:$0xff]  }
 0x15e   : > { %4385 = vmatpush3.bf16.msra.mxu1 %v4694_v5  ;;  %4392 = vmatprep.subr.bf16.mxu0 %v4699_v12  ;;  %v4754_v5 = vld [vmem:[%s5751_s6 + $0x3a0] sm:$0xff]   ;;  %v4761_v12 = vld [vmem:[%s5751_s6 + $0x330] sm:$0xff]  }
 0x15f   : > { %4414 = vmatprep.subr.bf16.mxu1 %v4700_v13  ;;  %v4762_v13 = vld [vmem:[%s5751_s6 + $0x3b0] sm:$0xff]  }
 0x160   : > { %3582 = vmatmul.mubr.bf16.vlgmr.msra.gmra.mrb[4].mxu0 %v4090_v7  ;;  %v4756_v7 = vld [vmem:[%s5751_s6 + $0x3e8] sm:$0xff]  }
 0x161   : > { %3622 = vmatmul.mubr.bf16.vlgmr.msra.gmra.mrb[4].mxu1 %v4092_v10  ;;  %4393 = vmatpush3.bf16.msra.mxu0 %v4701_v14  ;;  %v4759_v10 = vld [vmem:[%s5751_s6 + $0x370] sm:$0xff]   ;;  %v4763_v14 = vld [vmem:[%s5751_s6 + $0x378] sm:$0xff]  }
 0x162   : > { %4415 = vmatpush3.bf16.msra.mxu1 %v4702_v15  ;;  %4394 = vmatprep.subr.bf16.mxu0 %v4703_v16  ;;  %v4764_v15 = vld [vmem:[%s5751_s6 + $0x3f8] sm:$0xff]  }
 0x163   : > { %4416 = vmatprep.subr.bf16.mxu1 %v4704_v17  ;;  %3661 = vmatprep.mubr.bf16.mxu0 %v4095_v47  ;;  %v4765_v16 = vld [vmem:[%s5751_s6 + $0x338] sm:$0xff]   ;;  %v4794_v47 = vld [vmem:[%s5751_s6 + $0x4a8] sm:$0xff]  }
 0x164   : > { %3701 = vmatprep.mubr.bf16.mxu1 %v4097_v49  ;;  %v4766_v17 = vld [vmem:[%s5751_s6 + $0x3b8] sm:$0xff]   ;;  %v4796_v49 = vld [vmem:[%s5751_s6 + $0x4f0] sm:$0xff]  }
 0x165   : > { %4395 = vmatpush3.bf16.msra.mxu0 %v4705_v18  ;;  %v1836_v18 = vld [vmem:[%s5788_s11 + $0x30] sm:$0xff] }
 0x166   : > { %4417 = vmatpush3.bf16.msra.mxu1 %v4706_v19  ;;  %4396 = vmatprep.subr.bf16.mxu0 %v4707_v20  ;;  %v1837_v19 = vld [vmem:[%s5788_s11 + $0x38] sm:$0xff]  ;;  %v4098_v20 = vcombine.low %v1836_v18, %v1836_v18 }
 0x167   : > { %4418 = vmatprep.subr.bf16.mxu1 %v4708_v21  ;;  %v4099_v21 = vcombine.high %v1836_v18, %v1836_v18  ;;  %v4827_v18 = vld [vmem:[%s5751_s6 + $0x568] sm:$0xff]  }
 0x169   : > { %4397 = vmatpush3.bf16.msra.mxu0 %v4709_v22  ;;  %v4100_v22 = vcombine.low %v1837_v19, %v1837_v19 }
 0x16a   : > { %4419 = vmatpush3.bf16.msra.mxu1 %v4710_v23  ;;  %4398 = vmatprep.subr.bf16.mxu0 %v4711_v24  ;;  %v4771_v23 = vld [vmem:[%s5751_s6 + $0x440] sm:$0xff]   ;;  %v4101_v24 = vcombine.high %v1837_v19, %v1837_v19  ;;  %v4828_v19 = vld [vmem:[%s5751_s6 + $0x5e8] sm:$0xff]  }
 0x16b   : > { %4420 = vmatprep.subr.bf16.mxu1 %v4712_v25  ;;  %v4772_v25 = vld [vmem:[%s5751_s6 + $0x4c0] sm:$0xff]  }
 0x16d   : > { %4399 = vmatpush3.bf16.msra.mxu0 %v4713_v26  ;;  %v4773_v26 = vld [vmem:[%s5751_s6 + $0x400] sm:$0xff]  }
 0x16e   : > { %4421 = vmatpush3.bf16.msra.mxu1 %v4714_v27  ;;  %4400 = vmatprep.subr.bf16.mxu0 %v4715_v28  ;;  %v4774_v27 = vld [vmem:[%s5751_s6 + $0x480] sm:$0xff]   ;;  %v4775_v28 = vld [vmem:[%s5751_s6 + $0x448] sm:$0xff]  }
 0x16f   : > { %4422 = vmatprep.subr.bf16.mxu1 %v4716_v29  ;;  %v4776_v29 = vld [vmem:[%s5751_s6 + $0x4c8] sm:$0xff]  }
 0x171   : > { %4401 = vmatpush3.bf16.msra.mxu0 %v4717_v30  ;;  %v4777_v30 = vld [vmem:[%s5751_s6 + $0x408] sm:$0xff]  }
 0x172   : > { %4423 = vmatpush3.bf16.msra.mxu1 %v4718_v31  ;;  %4402 = vmatprep.subr.bf16.mxu0 %v4719_v32  ;;  %v4778_v31 = vld [vmem:[%s5751_s6 + $0x488] sm:$0xff]   ;;  %v4779_v32 = vld [vmem:[%s5751_s6 + $0x450] sm:$0xff]  }
 0x173   : > { %4424 = vmatprep.subr.bf16.mxu1 %v4720_v33  ;;  %v4780_v33 = vld [vmem:[%s5751_s6 + $0x4d0] sm:$0xff]  }
 0x175   : > { %4403 = vmatpush3.bf16.msra.mxu0 %v4721_v34  ;;  %v4781_v34 = vld [vmem:[%s5751_s6 + $0x410] sm:$0xff]  }
 0x176   : > { %4425 = vmatpush3.bf16.msra.mxu1 %v4722_v35  ;;  %4404 = vmatprep.subr.bf16.mxu0 %v4723_v36  ;;  %v4782_v35 = vld [vmem:[%s5751_s6 + $0x490] sm:$0xff]   ;;  %v4783_v36 = vld [vmem:[%s5751_s6 + $0x458] sm:$0xff]  }
 0x177   : > { %4426 = vmatprep.subr.bf16.mxu1 %v4724_v37  ;;  %v4784_v37 = vld [vmem:[%s5751_s6 + $0x4d8] sm:$0xff]  }
 0x179   : > { %4405 = vmatpush3.bf16.msra.mxu0 %v4725_v38  ;;  %v4785_v38 = vld [vmem:[%s5751_s6 + $0x418] sm:$0xff]  }
 0x17a   : > { %4427 = vmatpush3.bf16.msra.mxu1 %v4726_v39  ;;  %4406 = vmatprep.subr.bf16.mxu0 %v4727_v40  ;;  %v4786_v39 = vld [vmem:[%s5751_s6 + $0x498] sm:$0xff]   ;;  %v4787_v40 = vld [vmem:[%s5751_s6 + $0x460] sm:$0xff]  }
 0x17b   : > { %4428 = vmatprep.subr.bf16.mxu1 %v4728_v41  ;;  %v4788_v41 = vld [vmem:[%s5751_s6 + $0x4e0] sm:$0xff]  }
 0x17d   : > { %4407 = vmatpush3.bf16.msra.mxu0 %v4729_v42  ;;  %v4789_v42 = vld [vmem:[%s5751_s6 + $0x420] sm:$0xff]  }
 0x17e   : > { %4429 = vmatpush3.bf16.msra.mxu1 %v4730_v43  ;;  %4436 = vmatprep.subr.bf16.mxu0 %v4735_v50  ;;  %v4790_v43 = vld [vmem:[%s5751_s6 + $0x4a0] sm:$0xff]   ;;  %v4797_v50 = vld [vmem:[%s5751_s6 + $0x430] sm:$0xff]  }
 0x17f   : > { %4458 = vmatprep.subr.bf16.mxu1 %v4736_v51  ;;  %v4798_v51 = vld [vmem:[%s5751_s6 + $0x4b0] sm:$0xff]  }
 0x180   : > { %3662 = vmatmul.mubr.bf16.vlgmr.msra.gmra.mrb[8].mxu0 %v4094_v46  ;;  %v4793_v46 = vld [vmem:[%s5751_s6 + $0x428] sm:$0xff]  }
 0x181   : > { %3702 = vmatmul.mubr.bf16.vlgmr.msra.gmra.mrb[8].mxu1 %v4096_v48  ;;  %4437 = vmatpush3.bf16.msra.mxu0 %v4737_v52  ;;  %v4795_v48 = vld [vmem:[%s5751_s6 + $0x470] sm:$0xff]   ;;  %v4799_v52 = vld [vmem:[%s5751_s6 + $0x478] sm:$0xff]  }
 0x182   : > { %4459 = vmatpush3.bf16.msra.mxu1 %v4738_v53  ;;  %4438 = vmatprep.subr.bf16.mxu0 %v4739_v54  ;;  %v4800_v53 = vld [vmem:[%s5751_s6 + $0x4f8] sm:$0xff]  }
 0x183   : > { %4460 = vmatprep.subr.bf16.mxu1 %v4740_v55  ;;  %3741 = vmatprep.mubr.bf16.mxu0 %v4099_v21  ;;  %v4801_v54 = vld [vmem:[%s5751_s6 + $0x438] sm:$0xff]   ;;  %v4830_v21 = vld [vmem:[%s5751_s6 + $0x5a8] sm:$0xff]  }
 0x184   : > { %3781 = vmatprep.mubr.bf16.mxu1 %v4101_v24  ;;  %v4802_v55 = vld [vmem:[%s5751_s6 + $0x4b8] sm:$0xff]   ;;  %v4833_v24 = vld [vmem:[%s5751_s6 + $0x530] sm:$0xff]  }
 0x185   : > { %4439 = vmatpush3.bf16.msra.mxu0 %v4741_v56  ;;  %v1838_v56 = vld [vmem:[%s5788_s11 + $0x40] sm:$0xff] }
 0x186   : > { %4461 = vmatpush3.bf16.msra.mxu1 %v4742_v57  ;;  %4440 = vmatprep.subr.bf16.mxu0 %v4743_v58  ;;  %v4102_v57 = vcombine.low %v1838_v56, %v1838_v56  ;;  %v4103_v58 = vcombine.high %v1838_v56, %v1838_v56 }
 0x187   : > { %4462 = vmatprep.subr.bf16.mxu1 %v4744_v59  ;;  %v1839_v59 = vld [vmem:[%s5788_s11 + $0x48] sm:$0xff] }
 0x189   : > { %4441 = vmatpush3.bf16.msra.mxu0 %v4745_v60  ;;  %v4104_v60 = vcombine.low %v1839_v59, %v1839_v59 }
 0x18a   : > { %4463 = vmatpush3.bf16.msra.mxu1 %v4746_v61  ;;  %4442 = vmatprep.subr.bf16.mxu0 %v4747_v62  ;;  %v4105_v61 = vcombine.high %v1839_v59, %v1839_v59  ;;  %v4807_v62 = vld [vmem:[%s5751_s6 + $0x540] sm:$0xff]  }
 0x18b   : > { %4464 = vmatprep.subr.bf16.mxu1 %v4748_v63  ;;  %v4808_v63 = vld [vmem:[%s5751_s6 + $0x5c0] sm:$0xff]  }
 0x18d   : > { %4443 = vmatpush3.bf16.msra.mxu0 %v4749_v0  ;;  %v4809_v0 = vld [vmem:[%s5751_s6 + $0x500] sm:$0xff]  }
 0x18e   : > { %4465 = vmatpush3.bf16.msra.mxu1 %v4750_v1  ;;  %4444 = vmatprep.subr.bf16.mxu0 %v4751_v2  ;;  %v4810_v1 = vld [vmem:[%s5751_s6 + $0x580] sm:$0xff]   ;;  %v4811_v2 = vld [vmem:[%s5751_s6 + $0x548] sm:$0xff]  }
 0x18f   : > { %4466 = vmatprep.subr.bf16.mxu1 %v4752_v3  ;;  %v4812_v3 = vld [vmem:[%s5751_s6 + $0x5c8] sm:$0xff]  }
 0x191   : > { %4445 = vmatpush3.bf16.msra.mxu0 %v4753_v4  ;;  %v4813_v4 = vld [vmem:[%s5751_s6 + $0x508] sm:$0xff]  }
 0x192   : > { %4467 = vmatpush3.bf16.msra.mxu1 %v4754_v5  ;;  %4446 = vmatprep.subr.bf16.mxu0 %v4755_v6  ;;  %v4814_v5 = vld [vmem:[%s5751_s6 + $0x588] sm:$0xff]   ;;  %v4815_v6 = vld [vmem:[%s5751_s6 + $0x550] sm:$0xff]  }
 0x193   : > { %4468 = vmatprep.subr.bf16.mxu1 %v4756_v7  ;;  %v4816_v7 = vld [vmem:[%s5751_s6 + $0x5d0] sm:$0xff]  }
 0x195   : > { %4447 = vmatpush3.bf16.msra.mxu0 %v4757_v8  ;;  %v4817_v8 = vld [vmem:[%s5751_s6 + $0x510] sm:$0xff]  }
 0x196   : > { %4469 = vmatpush3.bf16.msra.mxu1 %v4758_v9  ;;  %4448 = vmatprep.subr.bf16.mxu0 %v4759_v10  ;;  %v4818_v9 = vld [vmem:[%s5751_s6 + $0x590] sm:$0xff]   ;;  %v4819_v10 = vld [vmem:[%s5751_s6 + $0x558] sm:$0xff]  }
 0x197   : > { %4470 = vmatprep.subr.bf16.mxu1 %v4760_v11  ;;  %v4820_v11 = vld [vmem:[%s5751_s6 + $0x5d8] sm:$0xff]  }
 0x199   : > { %4449 = vmatpush3.bf16.msra.mxu0 %v4761_v12  ;;  %v4821_v12 = vld [vmem:[%s5751_s6 + $0x518] sm:$0xff]  }
 0x19a   : > { %4471 = vmatpush3.bf16.msra.mxu1 %v4762_v13  ;;  %4450 = vmatprep.subr.bf16.mxu0 %v4763_v14  ;;  %v4822_v13 = vld [vmem:[%s5751_s6 + $0x598] sm:$0xff]   ;;  %v4823_v14 = vld [vmem:[%s5751_s6 + $0x560] sm:$0xff]  }
 0x19b   : > { %4472 = vmatprep.subr.bf16.mxu1 %v4764_v15  ;;  %v4824_v15 = vld [vmem:[%s5751_s6 + $0x5e0] sm:$0xff]  }
 0x19d   : > { %4451 = vmatpush3.bf16.msra.mxu0 %v4765_v16  ;;  %v4825_v16 = vld [vmem:[%s5751_s6 + $0x520] sm:$0xff]  }
 0x19e   : > { %4473 = vmatpush3.bf16.msra.mxu1 %v4766_v17  ;;  %4480 = vmatprep.subr.bf16.mxu0 %v4771_v23  ;;  %v4826_v17 = vld [vmem:[%s5751_s6 + $0x5a0] sm:$0xff]   ;;  %v4832_v23 = vld [vmem:[%s5751_s6 + $0x5f0] sm:$0xff]  }
 0x19f   : > { %4502 = vmatprep.subr.bf16.mxu1 %v4772_v25  ;;  %v4834_v25 = vld [vmem:[%s5751_s6 + $0x5b0] sm:$0xff]  }
 0x1a0   : > { %3742 = vmatmul.mubr.bf16.vlgmr.msra.gmra.mrb[12].mxu0 %v4098_v20  ;;  %v4829_v20 = vld [vmem:[%s5751_s6 + $0x528] sm:$0xff]  }
 0x1a1   : > { %3782 = vmatmul.mubr.bf16.vlgmr.msra.gmra.mrb[12].mxu1 %v4100_v22  ;;  %4481 = vmatpush3.bf16.msra.mxu0 %v4773_v26  ;;  %v4831_v22 = vld [vmem:[%s5751_s6 + $0x570] sm:$0xff]   ;;  %v4835_v26 = vld [vmem:[%s5751_s6 + $0x578] sm:$0xff]  }
 0x1a2   : > { %4503 = vmatpush3.bf16.msra.mxu1 %v4774_v27  ;;  %4482 = vmatprep.subr.bf16.mxu0 %v4775_v28  ;;  %v4836_v27 = vld [vmem:[%s5751_s6 + $0x5f8] sm:$0xff]  }
 0x1a3   : > { %4504 = vmatprep.subr.bf16.mxu1 %v4776_v29  ;;  %3821 = vmatprep.mubr.bf16.mxu0 %v4103_v58  ;;  %v4837_v28 = vld [vmem:[%s5751_s6 + $0x538] sm:$0xff]  }
 0x1a4   : > { %3861 = vmatprep.mubr.bf16.mxu1 %v4105_v61  ;;  %v4838_v29 = vld [vmem:[%s5751_s6 + $0x5b8] sm:$0xff]  }
 0x1a5   : > { %4483 = vmatpush3.bf16.msra.mxu0 %v4777_v30  ;;  %v1840_v30 = vld [vmem:[%s5788_s11 + $0x50] sm:$0xff] }
 0x1a6   : > { %4505 = vmatpush3.bf16.msra.mxu1 %v4778_v31  ;;  %4484 = vmatprep.subr.bf16.mxu0 %v4779_v32  ;;  %v1841_v31 = vld [vmem:[%s5788_s11 + $0x58] sm:$0xff]  ;;  %v4106_v32 = vcombine.low %v1840_v30, %v1840_v30 }
 0x1a7   : > { %4506 = vmatprep.subr.bf16.mxu1 %v4780_v33  ;;  %v4107_v33 = vcombine.high %v1840_v30, %v1840_v30 }
 0x1a9   : > { %4485 = vmatpush3.bf16.msra.mxu0 %v4781_v34  ;;  %v4108_v34 = vcombine.low %v1841_v31, %v1841_v31 }
 0x1aa   : > { %4507 = vmatpush3.bf16.msra.mxu1 %v4782_v35  ;;  %4486 = vmatprep.subr.bf16.mxu0 %v4783_v36  ;;  %v4109_v35 = vcombine.high %v1841_v31, %v1841_v31 }
 0x1ab   : > { %4508 = vmatprep.subr.bf16.mxu1 %v4784_v37 }
 0x1ad   : > { %4487 = vmatpush3.bf16.msra.mxu0 %v4785_v38  ;;  %v4085_v38 = vld [vmem:[%s1816_s24] ss:$0 sm:$0xff] }
 0x1ae   : > { %4509 = vmatpush3.bf16.msra.mxu1 %v4786_v39  ;;  %4488 = vmatprep.subr.bf16.mxu0 %v4787_v40 }
 0x1af   : > { %4510 = vmatprep.subr.bf16.mxu1 %v4788_v41 }
 0x1b1   : > { %4489 = vmatpush3.bf16.msra.mxu0 %v4789_v42 }
 0x1b2   : > { %4511 = vmatpush3.bf16.msra.mxu1 %v4790_v43  ;;  %4490 = vmatprep.subr.bf16.mxu0 %v4791_v44 }
 0x1b3   : > { %4512 = vmatprep.subr.bf16.mxu1 %v4792_v45 }
 0x1b5   : > { %4491 = vmatpush3.bf16.msra.mxu0 %v4793_v46 }
 0x1b6   : > { %4513 = vmatpush3.bf16.msra.mxu1 %v4794_v47  ;;  %4492 = vmatprep.subr.bf16.mxu0 %v4795_v48 }
 0x1b7   : > { %4514 = vmatprep.subr.bf16.mxu1 %v4796_v49 }
 0x1b9   : > { %4493 = vmatpush3.bf16.msra.mxu0 %v4797_v50 }
 0x1ba   : > { %4515 = vmatpush3.bf16.msra.mxu1 %v4798_v51  ;;  %4494 = vmatprep.subr.bf16.mxu0 %v4799_v52 }
 0x1bb   : > { %4516 = vmatprep.subr.bf16.mxu1 %v4800_v53 }
 0x1bd   : > { %4495 = vmatpush3.bf16.msra.mxu0 %v4801_v54 }
 0x1be   : > { %4517 = vmatpush3.bf16.msra.mxu1 %v4802_v55  ;;  %4524 = vmatprep.subr.bf16.mxu0 %v4807_v62 }
 0x1bf   : > { %4546 = vmatprep.subr.bf16.mxu1 %v4808_v63 }
 0x1c0   : > { %3822 = vmatmul.mubr.bf16.vlgmr.msra.gmra.mrb[16].mxu0 %v4102_v57 }
 0x1c1   : > { %3862 = vmatmul.mubr.bf16.vlgmr.msra.gmra.mrb[16].mxu1 %v4104_v60  ;;  %4525 = vmatpush3.bf16.msra.mxu0 %v4809_v0 }
 0x1c2   : > { %4547 = vmatpush3.bf16.msra.mxu1 %v4810_v1  ;;  %4526 = vmatprep.subr.bf16.mxu0 %v4811_v2 }
 0x1c3   : > { %4548 = vmatprep.subr.bf16.mxu1 %v4812_v3  ;;  %3901 = vmatprep.mubr.bf16.mxu0 %v4107_v33 }
 0x1c4   : > { %3941 = vmatprep.mubr.bf16.mxu1 %v4109_v35 }
 0x1c5   : > { %4527 = vmatpush3.bf16.msra.mxu0 %v4813_v4 }
 0x1c6   : > { %4549 = vmatpush3.bf16.msra.mxu1 %v4814_v5  ;;  %4528 = vmatprep.subr.bf16.mxu0 %v4815_v6 }
 0x1c7   : > { %4550 = vmatprep.subr.bf16.mxu1 %v4816_v7 }
 0x1c9   : > { %4529 = vmatpush3.bf16.msra.mxu0 %v4817_v8 }
 0x1ca   : > { %4551 = vmatpush3.bf16.msra.mxu1 %v4818_v9  ;;  %4530 = vmatprep.subr.bf16.mxu0 %v4819_v10 }
 0x1cb   : > { %4552 = vmatprep.subr.bf16.mxu1 %v4820_v11 }
 0x1cd   : > { %4531 = vmatpush3.bf16.msra.mxu0 %v4821_v12 }
 0x1ce   : > { %4553 = vmatpush3.bf16.msra.mxu1 %v4822_v13  ;;  %4532 = vmatprep.subr.bf16.mxu0 %v4823_v14 }
 0x1cf   : > { %4554 = vmatprep.subr.bf16.mxu1 %v4824_v15 }
 0x1d1   : > { %4533 = vmatpush3.bf16.msra.mxu0 %v4825_v16 }
 0x1d2   : > { %4555 = vmatpush3.bf16.msra.mxu1 %v4826_v17  ;;  %4534 = vmatprep.subr.bf16.mxu0 %v4827_v18 }
 0x1d3   : > { %4556 = vmatprep.subr.bf16.mxu1 %v4828_v19 }
 0x1d5   : > { %4535 = vmatpush3.bf16.msra.mxu0 %v4829_v20 }
 0x1d6   : > { %4557 = vmatpush3.bf16.msra.mxu1 %v4830_v21  ;;  %4536 = vmatprep.subr.bf16.mxu0 %v4831_v22 }
 0x1d7   : > { %4558 = vmatprep.subr.bf16.mxu1 %v4832_v23 }
 0x1d9   : > { %4537 = vmatpush3.bf16.msra.mxu0 %v4833_v24 }
 0x1da   : > { %4559 = vmatpush3.bf16.msra.mxu1 %v4834_v25  ;;  %4538 = vmatprep.subr.bf16.mxu0 %v4835_v26 }
 0x1db   : > { %4560 = vmatprep.subr.bf16.mxu1 %v4836_v27 }
 0x1dd   : > { %4539 = vmatpush3.bf16.msra.mxu0 %v4837_v28 }
 0x1de   : > { %4561 = vmatpush3.bf16.msra.mxu1 %v4838_v29 }
 0x1e0   : > { %3902 = vmatmul.mubr.bf16.vlgmr.msra.gmra.mrb[20].mxu0 %v4106_v32 }
 0x1e1   : > { %3942 = vmatmul.mubr.bf16.vlgmr.msra.gmra.mrb[20].mxu1 %v4108_v34 }
 0x213   : > { %v4320_v36 = vpop.f32.mrb[0].mxu0 }
 0x214   : > { %v4342_v37 = vpop.f32.mrb[0].mxu1  ;;  %v4321_v39 = vpop.f32.mrb[1].mxu0 }
 0x215   : > { %v4343_v40 = vpop.f32.mrb[1].mxu1  ;;  %v4322_v41 = vadd.f32 %v4321_v39, %v4320_v36  ;;  %v4323_v43 = vpop.f32.mrb[2].mxu0 }
 0x216   : > { %v4344_v42 = vadd.f32 %v4343_v40, %v4342_v37  ;;  %v4345_v44 = vpop.f32.mrb[2].mxu1  ;;  %v4324_v45 = vpop.f32.mrb[3].mxu0 }
 0x217   : > { %v4346_v46 = vpop.f32.mrb[3].mxu1  ;;  %v3504_v47 = vadd.f32 %v4322_v41, %v4085_v38 }
 0x219   : > { %v3544_v48 = vadd.f32 %v4344_v42, %v3504_v47 }
 0x233   : > { %v4364_v49 = vpop.f32.mrb[4].mxu0 }
 0x234   : > { %v4386_v50 = vpop.f32.mrb[4].mxu1  ;;  %v4365_v51 = vpop.f32.mrb[5].mxu0 }
 0x235   : > { %v4387_v52 = vpop.f32.mrb[5].mxu1  ;;  %v4366_v53 = vadd.f32 %v4365_v51, %v4364_v49  ;;  %v4367_v55 = vpop.f32.mrb[6].mxu0 }
 0x236   : > { %v4388_v54 = vadd.f32 %v4387_v52, %v4386_v50  ;;  %v4389_v56 = vpop.f32.mrb[6].mxu1  ;;  %v4368_v57 = vpop.f32.mrb[7].mxu0 }
 0x237   : > { %v4390_v58 = vpop.f32.mrb[7].mxu1  ;;  %v3584_v59 = vadd.f32 %v4366_v53, %v3544_v48 }
 0x239   : > { %v3624_v60 = vadd.f32 %v4388_v54, %v3584_v59 }
 0x253   : > { %v4408_v61 = vpop.f32.mrb[8].mxu0 }
 0x254   : > { %v4430_v62 = vpop.f32.mrb[8].mxu1  ;;  %v4409_v63 = vpop.f32.mrb[9].mxu0 }
 0x255   : > { %v4410_v0 = vadd.f32 %v4409_v63, %v4408_v61  ;;  %v4431_v1 = vpop.f32.mrb[9].mxu1  ;;  %v4411_v2 = vpop.f32.mrb[10].mxu0 }
 0x256   : > { %v4432_v3 = vadd.f32 %v4431_v1, %v4430_v62  ;;  %v4433_v4 = vpop.f32.mrb[10].mxu1  ;;  %v4412_v5 = vpop.f32.mrb[11].mxu0 }
 0x257   : > { %v3664_v6 = vadd.f32 %v4410_v0, %v3624_v60  ;;  %v4434_v7 = vpop.f32.mrb[11].mxu1 }
 0x259   : > { %v3704_v8 = vadd.f32 %v4432_v3, %v3664_v6 }
 0x273   : > { %v4452_v9 = vpop.f32.mrb[12].mxu0 }
 0x274   : > { %v4474_v10 = vpop.f32.mrb[12].mxu1  ;;  %v4453_v11 = vpop.f32.mrb[13].mxu0 }
 0x275   : > { %v4454_v12 = vadd.f32 %v4453_v11, %v4452_v9  ;;  %v4475_v13 = vpop.f32.mrb[13].mxu1  ;;  %v4455_v14 = vpop.f32.mrb[14].mxu0 }
 0x276   : > { %v4476_v15 = vadd.f32 %v4475_v13, %v4474_v10  ;;  %v4477_v16 = vpop.f32.mrb[14].mxu1  ;;  %v4456_v17 = vpop.f32.mrb[15].mxu0 }
 0x277   : > { %v3744_v18 = vadd.f32 %v4454_v12, %v3704_v8  ;;  %v4478_v19 = vpop.f32.mrb[15].mxu1 }
 0x279   : > { %v3784_v20 = vadd.f32 %v4476_v15, %v3744_v18 }
 0x293   : > { %v4496_v21 = vpop.f32.mrb[16].mxu0 }
 0x294   : > { %v4518_v22 = vpop.f32.mrb[16].mxu1  ;;  %v4497_v23 = vpop.f32.mrb[17].mxu0 }
 0x295   : > { %v4519_v24 = vpop.f32.mrb[17].mxu1  ;;  %v4498_v25 = vadd.f32 %v4497_v23, %v4496_v21  ;;  %v4499_v27 = vpop.f32.mrb[18].mxu0 }
 0x296   : > { %v4520_v26 = vadd.f32 %v4519_v24, %v4518_v22  ;;  %v4521_v28 = vpop.f32.mrb[18].mxu1  ;;  %v4500_v29 = vpop.f32.mrb[19].mxu0 }
 0x297   : > { %v4522_v30 = vpop.f32.mrb[19].mxu1  ;;  %v3824_v31 = vadd.f32 %v4498_v25, %v3784_v20 }
 0x299   : > { %v3864_v32 = vadd.f32 %v4520_v26, %v3824_v31 }
 0x2b3   : > { %v4540_v33 = vpop.f32.mrb[20].mxu0 }
 0x2b4   : > { %v4562_v34 = vpop.f32.mrb[20].mxu1  ;;  %v4541_v35 = vpop.f32.mrb[21].mxu0 }
 0x2b5   : > { %v4542_v36 = vadd.f32 %v4541_v35, %v4540_v33  ;;  %v4563_v37 = vpop.f32.mrb[21].mxu1  ;;  %v4543_v38 = vpop.f32.mrb[22].mxu0 }
 0x2b6   : > { %v4564_v39 = vadd.f32 %v4563_v37, %v4562_v34  ;;  %v4565_v40 = vpop.f32.mrb[22].mxu1  ;;  %v4544_v41 = vpop.f32.mrb[23].mxu0 }
 0x2b7   : > { %v3904_v42 = vadd.f32 %v4542_v36, %v3864_v32  ;;  %v4566_v43 = vpop.f32.mrb[23].mxu1 }
 0x2b9   : > { %v3944_v44 = vadd.f32 %v4564_v39, %v3904_v42 }
 0x2bb   : > { %v3949_v45 = vpack.c.bf16 %v3944_v44, %v3944_v44 }
 0x2bd   : > { %3950 = vst [vmem:[%s1826_s14] sm:$0xf] %v3949_v45 }
 0x2be PF: > { %s13_s18 = sadd.s32 1, %s4897_s18   ;;  %s5999_s12 = smov %s4877_s13 }
 0x2bf   : > { %p10_p13 = scmp.ge.s32.totalorder %s13_s18, 22   ;;  %s6000_s13 = smov %s4968_s23 }
 0x2c0   : > { %s6001_s14 = smov %s4889_s16  ;;  %s6002_s15 = smov %s4893_s17 }
 0x2c1   : > { %s6003_s16 = smov %s6006_s19  ;;  %s6004_s17 = smov %s6010_s20 }
 0x2c2   :  { %12 = sbr.rel (!%p10_p13) target bundleno = 4 (0x4), region = 114 }

// kernel: dama_forward.7
= control target key start
LH: loop header
LB: loop body
LE: loop exit
PB: predicated region body
PF: predicated region fallthrough
CT: control target
= control target key end

     0   :  { %vm170_vm0 = vcmask 64512   ;;  %v4707_v0 = vmov 0.0   ;;  %vm4708_vm1 = vmmov 0   ;;  %vm547_vm2 = vcmask 27648   ;;  %s4710_s13 = smov 120   ;;  %s4711_s26 = smov 112   ;;  %s5750_s0 = inlined_call_operand.vmem [shape: bf16[8,4,640], index: 0, kind: input, shape index: {}]   ;;  %s5751_s1 = inlined_call_operand.vmem [shape: f32[1,4,384], index: 1, kind: output, shape index: {}]  }
   0x1   :  { %4184 = vmatprep.subr.bf16.mxu0 %v4707_v0  ;;  %4190 = vmatprep.subr.bf16.mxu1 %v4707_v0  ;;  %v4733_v1 = vld [vmem:[%s5750_s0 + $0x6] sm:$0x3]  ;;  %v4738_v2 = vld [vmem:[%s5750_s0 + $0x10] sm:$0x3]  ;;  %v4753_v5 = vld [vmem:[%s5750_s0 + $0x1a] sm:$0x3] }
   0x2   :  { %v175_v3 = vsel %vm170_vm0, %v4733_v1, 0  ;;  %v221_v4 = vsel %vm170_vm0, %v4738_v2, 0  ;;  %4186 = vmatprep.mubr.msk.bf16.mxu0 %vm4708_vm1, %v4707_v0  ;;  %4192 = vmatprep.mubr.msk.bf16.mxu1 %vm4708_vm1, %v4707_v0  ;;  %v4758_v6 = vld [vmem:[%s5750_s0 + $0x24] sm:$0x3]  ;;  %v4768_v8 = vld [vmem:[%s5750_s0 + $0xe] sm:$0x3] }
   0x3   :  { %4185 = vmatpush3.bf16.xpose.msra.mxu0 %v175_v3  ;;  %4191 = vmatpush3.bf16.xpose.msra.mxu1 %v221_v4  ;;  %v4763_v7 = vld [vmem:[%s5750_s0 + $0x4] sm:$0x3]  ;;  %v267_v9 = vsel %vm170_vm0, %v4753_v5, 0  ;;  %v313_v10 = vsel %vm170_vm0, %v4758_v6, 0  ;;  %v4787_v11 = vld [vmem:[%s5750_s0 + $0x2e] sm:$0x3] }
   0x4   :  { %4196 = vmatprep.subr.bf16.mxu0 %v4707_v0  ;;  %4202 = vmatprep.subr.bf16.mxu1 %v4707_v0  ;;  %v4792_v12 = vld [vmem:[%s5750_s0 + $0x38] sm:$0x3]  ;;  %v4802_v14 = vld [vmem:[%s5750_s0 + $0x22] sm:$0x3]  ;;  %v359_v15 = vsel %vm170_vm0, %v4787_v11, 0  ;;  %vm648_vm3 = vcmask 1041408  }
   0x5   :  { %v4797_v13 = vld [vmem:[%s5750_s0 + $0x18] sm:$0x3]  ;;  %v405_v16 = vsel %vm170_vm0, %v4792_v12, 0  ;;  %v4821_v17 = vld [vmem:[%s5750_s0 + $0x42] sm:$0x3]  ;;  %vm644_vm4 = vcmask 31744  }
   0x6   :  { %v4826_v18 = vld [vmem:[%s5750_s0 + $0x4c] sm:$0x3]  ;;  %v4836_v20 = vld [vmem:[%s5750_s0 + $0x36] sm:$0x3]  ;;  %v451_v21 = vsel %vm170_vm0, %v4821_v17, 0  ;;  %vm1022_vm5 = vcmask 60416  }
   0x7   :  { %v4831_v19 = vld [vmem:[%s5750_s0 + $0x2c] sm:$0x3]  ;;  %v497_v22 = vsel %vm170_vm0, %v4826_v18, 0  ;;  %v4855_v23 = vld [vmem:[%s5750_s0 + $0x40] sm:$0x3]  ;;  %s4712_s27 = smov 104  }
   0x8   :  { %v4860_v24 = vld [vmem:[%s5750_s0 + $0x4a] sm:$0x3]  ;;  %s4713_s28 = smov 8   ;;  %s4714_s29 = smov 16   ;;  %vm123_vm7 = vcmask 1043456   ;;  %vm3976_vm8 = vcmask 130048  }
   0x9   :  { %s4717_s18 = smov 24   ;;  %vm3978_vm9 = vcmask 195584   ;;  %vm3980_vm10 = vcmask 261120  }
   0xa   :  { %4187 = vmatmul.mubr.msk.bf16.vlgmr.msra.gmra.mrb[0].mxu0 %vm170_vm0, %v4763_v7  ;;  %4193 = vmatmul.mubr.msk.bf16.vlgmr.msra.gmra.mrb[0].mxu1 %vm170_vm0, %v4768_v8 }
   0xb   :  { %4197 = vmatpush3.bf16.xpose.msra.mxu0 %v267_v9  ;;  %4203 = vmatpush3.bf16.xpose.msra.mxu1 %v313_v10 }
   0xc   :  { %4198 = vmatprep.mubr.msk.bf16.mxu0 %vm4708_vm1, %v4707_v0  ;;  %4204 = vmatprep.mubr.msk.bf16.mxu1 %vm4708_vm1, %v4707_v0 }
   0xd   :  { %4208 = vmatprep.subr.bf16.mxu0 %v4707_v0  ;;  %4214 = vmatprep.subr.bf16.mxu1 %v4707_v0 }
  0x12   :  { %4199 = vmatmul.mubr.msk.bf16.vlgmr.msra.gmra.mrb[4].mxu0 %vm170_vm0, %v4797_v13  ;;  %4205 = vmatmul.mubr.msk.bf16.vlgmr.msra.gmra.mrb[4].mxu1 %vm170_vm0, %v4802_v14 }
  0x13   :  { %4209 = vmatpush3.bf16.xpose.msra.mxu0 %v359_v15  ;;  %4215 = vmatpush3.bf16.xpose.msra.mxu1 %v405_v16 }
  0x14   :  { %4210 = vmatprep.mubr.msk.bf16.mxu0 %vm4708_vm1, %v4707_v0  ;;  %4216 = vmatprep.mubr.msk.bf16.mxu1 %vm4708_vm1, %v4707_v0 }
  0x15   :  { %4220 = vmatprep.subr.bf16.mxu0 %v4707_v0  ;;  %4226 = vmatprep.subr.bf16.mxu1 %v4707_v0 }
  0x1a   :  { %4211 = vmatmul.mubr.msk.bf16.vlgmr.msra.gmra.mrb[8].mxu0 %vm170_vm0, %v4831_v19  ;;  %4217 = vmatmul.mubr.msk.bf16.vlgmr.msra.gmra.mrb[8].mxu1 %vm170_vm0, %v4836_v20 }
  0x1b   :  { %4221 = vmatpush3.bf16.xpose.msra.mxu0 %v451_v21  ;;  %4227 = vmatpush3.bf16.xpose.msra.mxu1 %v497_v22 }
  0x1c   :  { %4222 = vmatprep.mubr.msk.bf16.mxu0 %vm4708_vm1, %v4707_v0  ;;  %4228 = vmatprep.mubr.msk.bf16.mxu1 %vm4708_vm1, %v4707_v0 }
  0x1d   :  { %4232 = vmatprep.subr.bf16.mxu0 %v4707_v0  ;;  %4238 = vmatprep.subr.bf16.mxu1 %v4707_v0 }
  0x22   :  { %4223 = vmatmul.mubr.msk.bf16.vlgmr.msra.gmra.mrb[12].mxu0 %vm170_vm0, %v4855_v23  ;;  %4229 = vmatmul.mubr.msk.bf16.vlgmr.msra.gmra.mrb[12].mxu1 %vm170_vm0, %v4860_v24 }
  0x23   :  { %4234 = vmatprep.mubr.msk.bf16.mxu0 %vm4708_vm1, %v4707_v0  ;;  %4240 = vmatprep.mubr.msk.bf16.mxu1 %vm4708_vm1, %v4707_v0 }
  0xdd   :  { %v211_v25 = vpop.f32.mrb[0].mxu0  ;;  %v257_v26 = vpop.f32.mrb[0].mxu1 }
  0xde   :  { %v539_v27 = vmul.f32 0.35355338, %v211_v25  ;;  %v4188_v28 = vpop.f32.mrb[1].mxu0  ;;  %v4194_v29 = vpop.f32.mrb[1].mxu1  ;;  %v540_v32 = vmul.f32 0.35355338, %v257_v26 }
  0xdf   :  { %v214_v30 = vpop.f32.mrb[2].mxu0  ;;  %v260_v31 = vpop.f32.mrb[2].mxu1 }
  0xe0   :  { %v4189_v33 = vpop.f32.mrb[3].mxu0  ;;  %v4195_v34 = vpop.f32.mrb[3].mxu1  ;;  %v548_v35 = vsel %vm547_vm2, %v539_v27, -inf  ;;  %v551_v36 = vsel %vm547_vm2, %v540_v32, -inf }
  0xe1   :  { %549 = vmax.xlane.f32.xlu0 %v548_v35 }
  0xe5   :  { %v349_v37 = vpop.f32.mrb[4].mxu1  ;;  %552 = vmax.xlane.f32.xlu0 %v551_v36  ;;  %v303_v38 = vpop.f32.mrb[4].mxu0 }
  0xe6   :  { %v541_v39 = vmul.f32 0.35355338, %v303_v38  ;;  %v4200_v40 = vpop.f32.mrb[5].mxu0  ;;  %v4206_v41 = vpop.f32.mrb[5].mxu1  ;;  %v542_v44 = vmul.f32 0.35355338, %v349_v37 }
  0xe7   :  { %v306_v42 = vpop.f32.mrb[6].mxu0  ;;  %v352_v43 = vpop.f32.mrb[6].mxu1 }
  0xe8   :  { %v4201_v45 = vpop.f32.mrb[7].mxu0  ;;  %v4207_v46 = vpop.f32.mrb[7].mxu1  ;;  %v554_v47 = vsel %vm547_vm2, %v541_v39, -inf  ;;  %v557_v48 = vsel %vm547_vm2, %v542_v44, -inf }
  0xe9   :  { %555 = vmax.xlane.f32.xlu1 %v554_v47 }
  0xed   :  { %v441_v49 = vpop.f32.mrb[8].mxu1  ;;  %558 = vmax.xlane.f32.xlu1 %v557_v48  ;;  %v395_v50 = vpop.f32.mrb[8].mxu0 }
  0xee   :  { %v544_v51 = vmul.f32 0.35355338, %v441_v49  ;;  %v543_v52 = vmul.f32 0.35355338, %v395_v50  ;;  %v4218_v53 = vpop.f32.mrb[9].mxu1  ;;  %v4212_v54 = vpop.f32.mrb[9].mxu0 }
  0xef   :  { %v444_v55 = vpop.f32.mrb[10].mxu1  ;;  %v398_v56 = vpop.f32.mrb[10].mxu0 }
  0xf0   :  { %v4219_v57 = vpop.f32.mrb[11].mxu1  ;;  %v563_v58 = vsel %vm547_vm2, %v544_v51, -inf  ;;  %v560_v59 = vsel %vm547_vm2, %v543_v52, -inf  ;;  %v4213_v60 = vpop.f32.mrb[11].mxu0 }
  0xf1   :  { %564 = vmax.xlane.f32.xlu1 %v563_v58  ;;  %561 = vmax.xlane.f32.xlu0 %v560_v59  ;;  %v4709_v59 = vmov 1983009808  }
  0xf2   :  { %v1040_v60 = vunpack.c.l.s4 %v4709_v59 }
  0xf5   :  { %v487_v61 = vpop.f32.mrb[12].mxu0  ;;  %v533_v62 = vpop.f32.mrb[12].mxu1 }
  0xf6   :  { %v545_v63 = vmul.f32 0.35355338, %v487_v61  ;;  %v4876_v3 = vmul.f32 0.35355338, %v533_v62  ;;  %v4224_v4 = vpop.f32.mrb[13].mxu0  ;;  %v4230_v9 = vpop.f32.mrb[13].mxu1  ;;  %v1042_v61 = vlaneseq  ;;  %v1041_v62 = vunpack.c.0.s8 %v1040_v60 }
  0xf7   :  { %v490_v10 = vpop.f32.mrb[14].mxu0  ;;  %v536_v15 = vpop.f32.mrb[14].mxu1 }
  0xf8   :  { %v569_v16 = vsel %vm547_vm2, %v4876_v3, -inf  ;;  %v566_v21 = vsel %vm547_vm2, %v545_v63, -inf  ;;  %v4225_v22 = vpop.f32.mrb[15].mxu0  ;;  %v4231_v25 = vpop.f32.mrb[15].mxu1  ;;  %v4914_v15 = vld [vmem:[%s5750_s0 + $0x8] sm:$0x3] }
  0xf9   :  { %570 = vmax.xlane.f32.xlu1 %v569_v16  ;;  %567 = vmax.xlane.f32.xlu0 %v566_v21  ;;  %v650_v16 = vsel %vm648_vm3, %v4914_v15, 0  ;;  %v4926_v22 = vld [vmem:[%s5750_s0 + $0x12] sm:$0x3] }
  0xfa   :  { %4233 = vmatpush3.bf16.msra.mxu0 %v650_v16  ;;  %v696_v25 = vsel %vm648_vm3, %v4926_v22, 0  ;;  %v5088_v16 = vld [vmem:[%s5750_s0 + $0x4e] sm:$0x3] }
  0xfb   :  { %4244 = vmatprep.subr.bf16.mxu0 %v4707_v0  ;;  %4239 = vmatpush3.bf16.msra.mxu1 %v696_v25 }
  0xfc   :  { %4250 = vmatprep.subr.bf16.mxu1 %v4707_v0 }
 0x16e   :  { %v550_v26 = vpop.xlane.xlu0 %549 }
 0x16f   :  { %v572_v28 = vsub.f32 %v539_v27, %v550_v26 }
 0x171   :  { %v580_v29 = vmul.f32 1.442695, %v572_v28 }
 0x172   :  { %v553_v30 = vpop.xlane.xlu0 %552 }
 0x173   :  { %4579 = vpow2.f32 %v580_v29  ;;  %v573_v31 = vsub.f32 %v540_v32, %v553_v30 }
 0x175   :  { %v582_v33 = vmul.f32 1.442695, %v573_v31 }
 0x176   :  { %v556_v34 = vpop.xlane.xlu1 %555 }
 0x177   :  { %4581 = vpow2.f32 %v582_v33  ;;  %v574_v35 = vsub.f32 %v541_v39, %v556_v34 }
 0x179   :  { %v584_v36 = vmul.f32 1.442695, %v574_v35 }
 0x17a   :  { %v559_v37 = vpop.xlane.xlu1 %558 }
 0x17b   :  { %4583 = vpow2.f32 %v584_v36  ;;  %v575_v38 = vsub.f32 %v542_v44, %v559_v37 }
 0x17d   :  { %v4881_v40 = vpop.eup %4579  ;;  %v586_v41 = vmul.f32 1.442695, %v575_v38 }
 0x17e   :  { %v565_v42 = vpop.xlane.xlu1 %564  ;;  %v562_v43 = vpop.xlane.xlu0 %561  ;;  %v596_v27 = vsel %vm547_vm2, %v4881_v40, 0.0 }
 0x17f   :  { %4585 = vpow2.f32 %v586_v41  ;;  %v577_v45 = vsub.f32 %v544_v51, %v565_v42  ;;  %v576_v46 = vsub.f32 %v543_v52, %v562_v43  ;;  %597 = vadd.xlane.f32.xlu0 %v596_v27  ;;  %v5039_v43 = vld [vmem:[%s5750_s0 + $0x26] sm:$0x3] }
 0x181   :  { %v4885_v32 = vpop.eup %4581  ;;  %v590_v47 = vmul.f32 1.442695, %v577_v45  ;;  %v588_v39 = vmul.f32 1.442695, %v576_v46 }
 0x182   :  { %v599_v48 = vsel %vm547_vm2, %v4885_v32, 0.0 }
 0x183   :  { %4587 = vpow2.f32 %v590_v47  ;;  %600 = vadd.xlane.f32.xlu1 %v599_v48  ;;  %v788_v47 = vsel %vm648_vm3, %v5039_v43, 0  ;;  %v5051_v48 = vld [vmem:[%s5750_s0 + $0x30] sm:$0x3] }
 0x184   :  { %4589 = vpow2.f32 %v588_v39 }
 0x185   :  { %v4889_v44 = vpop.eup %4583 }
 0x186   :  { %v568_v49 = vpop.xlane.xlu0 %567  ;;  %v602_v50 = vsel %vm547_vm2, %v4889_v44, 0.0  ;;  %v571_v29 = vpop.xlane.xlu1 %570 }
 0x187   :  { %v578_v53 = vsub.f32 %v545_v63, %v568_v49  ;;  %603 = vadd.xlane.f32.xlu0 %v602_v50  ;;  %v1043_v63 = vshrl.u32 %v1042_v61, 7  ;;  %v579_v30 = vsub.f32 %v4876_v3, %v571_v29  ;;  %v834_v50 = vsel %vm648_vm3, %v5051_v48, 0 }
 0x189   :  { %v4893_v51 = vpop.eup %4585  ;;  %v592_v52 = vmul.f32 1.442695, %v578_v53  ;;  %v4909_v10 = vsub.s32 %v1041_v62, %v1043_v63  ;;  %v594_v31 = vmul.f32 1.442695, %v579_v30 }
 0x18a   :  { %v605_v54 = vsel %vm547_vm2, %v4893_v51, 0.0 }
 0x18b   :  { %606 = vadd.xlane.f32.xlu1 %v605_v54  ;;  %4591 = vpow2.f32 %v592_v52  ;;  %v4921_v21 = vrot.slane %v4738_v2, %v4909_v10  ;;  %v4935_v26 = vrot.slane %v4763_v7, %v4909_v10  ;;  %v4941_v2 = vrot.slane %v4733_v1, %v4909_v10  ;;  %v5063_v52 = vld [vmem:[%s5750_s0 + $0x3a] sm:$0x3] }
 0x18c   :  { %v4947_v28 = vrot.slane %v4768_v8, %v4909_v10  ;;  %v4954_v7 = vrot.slane %v4797_v13, %v4909_v10  ;;  %v4960_v1 = vrot.slane %v4802_v14, %v4909_v10  ;;  %4593 = vpow2.f32 %v594_v31 }
 0x18d   :  { %v4897_v55 = vpop.eup %4587  ;;  %v4966_v8 = vrot.slane %v4831_v19, %v4909_v10  ;;  %v4972_v13 = vrot.slane %v4836_v20, %v4909_v10  ;;  %v4978_v14 = vrot.slane %v4855_v23, %v4909_v10  ;;  %v4988_v20 = vrot.slane %v4753_v5, %v4909_v10 }
 0x18e   :  { %v4899_v56 = vpop.eup %4589  ;;  %v611_v57 = vsel %vm547_vm2, %v4897_v55, 0.0  ;;  %v4994_v23 = vrot.slane %v4758_v6, %v4909_v10  ;;  %v5000_v33 = vrot.slane %v4787_v11, %v4909_v10  ;;  %v5006_v5 = vrot.slane %v4792_v12, %v4909_v10 }
 0x18f   :  { %612 = vadd.xlane.f32.xlu1 %v611_v57  ;;  %v608_v58 = vsel %vm547_vm2, %v4899_v56, 0.0  ;;  %v5012_v6 = vrot.slane %v4821_v17, %v4909_v10  ;;  %v5018_v11 = vrot.slane %v4826_v18, %v4909_v10  ;;  %v5024_v12 = vrot.slane %v4860_v24, %v4909_v10  ;;  %v5031_v18 = vld [vmem:[%s5750_s0 + $0x1c] sm:$0x3] }
 0x190   :  { %609 = vadd.xlane.f32.xlu0 %v608_v58  ;;  %v742_v41 = vsel %vm648_vm3, %v5031_v18, 0  ;;  %v880_v58 = vsel %vm648_vm3, %v5063_v52, 0 }
 0x195   :  { %v4905_v4 = vpop.eup %4591 }
 0x196   :  { %v614_v9 = vsel %vm547_vm2, %v4905_v4, 0.0  ;;  %v4980_v3 = vpop.eup %4593 }
 0x197   :  { %615 = vadd.xlane.f32.xlu0 %v614_v9  ;;  %v617_v19 = vsel %vm547_vm2, %v4980_v3, 0.0 }
 0x1a0   :  { %1122 = vrot.lane.b32.xlu1 %v4921_v21, %s4710_s13 }
 0x1a4   :  { %1046 = vrot.lane.b32.xlu1 %v4935_v26, %s4710_s13 }
 0x1ad   :  { %1056 = vrot.lane.b32.xlu0 %v4941_v2, %s4710_s13 }
 0x1b1   :  { %1112 = vrot.lane.b32.xlu0 %v4947_v28, %s4710_s13 }
 0x1b5   :  { %1178 = vrot.lane.b32.xlu0 %v4954_v7, %s4710_s13 }
 0x1b9   :  { %1244 = vrot.lane.b32.xlu0 %v4960_v1, %s4710_s13 }
 0x1bd   :  { %1310 = vrot.lane.b32.xlu0 %v4966_v8, %s4710_s13 }
 0x1c1   :  { %1376 = vrot.lane.b32.xlu0 %v4972_v13, %s4710_s13 }
 0x1c5   :  { %1442 = vrot.lane.b32.xlu0 %v4978_v14, %s4710_s13 }
 0x1c8   :  { %618 = vadd.xlane.f32.xlu1 %v617_v19 }
 0x1d9   :  { %1188 = vrot.lane.b32.xlu1 %v4988_v20, %s4710_s13 }
 0x1dd   :  { %1254 = vrot.lane.b32.xlu1 %v4994_v23, %s4710_s13 }
 0x1e1   :  { %1320 = vrot.lane.b32.xlu1 %v5000_v33, %s4710_s13 }
 0x1e5   :  { %1386 = vrot.lane.b32.xlu1 %v5006_v5, %s4710_s13 }
 0x1e9   :  { %1452 = vrot.lane.b32.xlu1 %v5012_v6, %s4710_s13 }
 0x1ed   :  { %1518 = vrot.lane.b32.xlu1 %v5018_v11, %s4710_s13 }
 0x1f1   :  { %1508 = vrot.lane.b32.xlu1 %v5024_v12, %s4710_s13 }
 0x20c   :  { %v598_v34 = vpop.xlane.xlu0 %597 }
 0x20d   :  { %4595 = vrcp.f32 %v598_v34 }
 0x210   :  { %v601_v17 = vpop.xlane.xlu1 %600 }
 0x211   :  { %4597 = vrcp.f32 %v601_v17 }
 0x214   :  { %v604_v35 = vpop.xlane.xlu0 %603 }
 0x215   :  { %4599 = vrcp.f32 %v604_v35 }
 0x217   :  { %v4596_v36 = vpop.eup %4595 }
 0x218   :  { %v607_v37 = vpop.xlane.xlu1 %606  ;;  %v628_v38 = vmul.f32 %v4596_v36, %v4881_v40 }
 0x219   :  { %4601 = vrcp.f32 %v607_v37 }
 0x21a   :  { %v636_v24 = vpack.c.bf16 %v628_v38, %v628_v38 }
 0x21b   :  { %v4598_v42 = vpop.eup %4597 }
 0x21c   :  { %v613_v27 = vpop.xlane.xlu1 %612  ;;  %4235 = vmatmul.mubr.msk.bf16.vlgmr.msra.gmra.mrb[16].mxu0 %vm644_vm4, %v636_v24  ;;  %v629_v45 = vmul.f32 %v4598_v42, %v4885_v32 }
 0x21d   :  { %4603 = vrcp.f32 %v613_v27  ;;  %v610_v46 = vpop.xlane.xlu0 %609  ;;  %4245 = vmatpush3.bf16.msra.mxu0 %v742_v41  ;;  %4246 = vmatprep.mubr.msk.bf16.mxu0 %vm4708_vm1, %v4707_v0 }
 0x21e   :  { %4605 = vrcp.f32 %v610_v46  ;;  %v637_v40 = vpack.c.bf16 %v629_v45, %v629_v45  ;;  %4256 = vmatprep.subr.bf16.mxu0 %v4707_v0 }
 0x21f   :  { %v4600_v39 = vpop.eup %4599 }
 0x220   :  { %4241 = vmatmul.mubr.msk.bf16.vlgmr.msra.gmra.mrb[16].mxu1 %vm644_vm4, %v637_v40  ;;  %v630_v32 = vmul.f32 %v4600_v39, %v4889_v44  ;;  %v1123_v34 = vpop.permute.xlu1 %1122 }
 0x221   :  { %4251 = vmatpush3.bf16.msra.mxu1 %v788_v47  ;;  %4252 = vmatprep.mubr.msk.bf16.mxu1 %vm4708_vm1, %v4707_v0  ;;  %v1128_v39 = vsel %vm170_vm0, %v1123_v34, 0 }
 0x222   :  { %v638_v49 = vpack.c.bf16 %v630_v32, %v630_v32  ;;  %4262 = vmatprep.subr.bf16.mxu1 %v4707_v0 }
 0x223   :  { %v4602_v53 = vpop.eup %4601 }
 0x224   :  { %4247 = vmatmul.mubr.msk.bf16.vlgmr.msra.gmra.mrb[20].mxu0 %vm644_vm4, %v638_v49  ;;  %v631_v44 = vmul.f32 %v4602_v53, %v4893_v51  ;;  %v616_v54 = vpop.xlane.xlu0 %615  ;;  %v5076_v51 = vld [vmem:[%s5750_s0 + $0x44] sm:$0x3]  ;;  %v1047_v17 = vpop.permute.xlu1 %1046 }
 0x225   :  { %4257 = vmatpush3.bf16.msra.mxu0 %v834_v50  ;;  %4258 = vmatprep.mubr.msk.bf16.mxu0 %vm4708_vm1, %v4707_v0  ;;  %4607 = vrcp.f32 %v616_v54  ;;  %v926_v9 = vsel %vm648_vm3, %v5076_v51, 0 }
 0x226   :  { %v639_v57 = vpack.c.bf16 %v631_v44, %v631_v44  ;;  %4268 = vmatprep.subr.bf16.mxu0 %v4707_v0 }
 0x227   :  { %v4604_v59 = vpop.eup %4603 }
 0x228   :  { %v4606_v60 = vpop.eup %4605  ;;  %4253 = vmatmul.mubr.msk.bf16.vlgmr.msra.gmra.mrb[20].mxu1 %vm644_vm4, %v639_v57  ;;  %v633_v62 = vmul.f32 %v4604_v59, %v4897_v55  ;;  %v972_v55 = vsel %vm648_vm3, %v5088_v16, 0  ;;  %v1057_v29 = vpop.permute.xlu0 %1056 }
 0x229   :  { %v632_v61 = vmul.f32 %v4606_v60, %v4899_v56  ;;  %4263 = vmatpush3.bf16.msra.mxu1 %v880_v58  ;;  %4264 = vmatprep.mubr.msk.bf16.mxu1 %vm4708_vm1, %v4707_v0  ;;  %v1062_v19 = vsel %vm170_vm0, %v1057_v29, 0 }
 0x22a   :  { %4274 = vmatprep.subr.bf16.mxu1 %v4707_v0  ;;  %v641_v56 = vpack.c.bf16 %v633_v62, %v633_v62 }
 0x22b   :  { %v640_v63 = vpack.c.bf16 %v632_v61, %v632_v61 }
 0x22d   :  { %4259 = vmatmul.mubr.msk.bf16.vlgmr.msra.gmra.mrb[24].mxu0 %vm644_vm4, %v640_v63 }
 0x22e   :  { %4269 = vmatpush3.bf16.msra.mxu0 %v926_v9  ;;  %4270 = vmatprep.mubr.msk.bf16.mxu0 %vm4708_vm1, %v4707_v0 }
 0x22f   :  { %4280 = vmatprep.subr.bf16.mxu0 %v4707_v0  ;;  %v4608_v25 = vpop.eup %4607 }
 0x230   :  { %4265 = vmatmul.mubr.msk.bf16.vlgmr.msra.gmra.mrb[24].mxu1 %vm644_vm4, %v641_v56  ;;  %v634_v30 = vmul.f32 %v4608_v25, %v4905_v4  ;;  %v1113_v4 = vpop.permute.xlu0 %1112 }
 0x231   :  { %4275 = vmatpush3.bf16.msra.mxu1 %v972_v55  ;;  %4276 = vmatprep.mubr.msk.bf16.mxu1 %vm4708_vm1, %v4707_v0 }
 0x232   :  { %4286 = vmatprep.subr.bf16.mxu1 %v4707_v0  ;;  %v642_v31 = vpack.c.bf16 %v634_v30, %v634_v30 }
 0x234   :  { %v1179_v37 = vpop.permute.xlu0 %1178 }
 0x235   :  { %4271 = vmatmul.mubr.msk.bf16.vlgmr.msra.gmra.mrb[28].mxu0 %vm644_vm4, %v642_v31 }
 0x236   :  { %4282 = vmatprep.mubr.msk.bf16.mxu0 %vm4708_vm1, %v4707_v0 }
 0x237   :  { %4281 = vmatpush3.bf16.xpose.msra.mxu0 %v1062_v19 }
 0x238   :  { %4292 = vmatprep.subr.bf16.mxu0 %v4707_v0  ;;  %v1245_v41 = vpop.permute.xlu0 %1244 }
 0x23c   :  { %v1311_v47 = vpop.permute.xlu0 %1310 }
 0x23e   :  { %4283 = vmatmul.mubr.msk.bf16.vlgmr.msra.gmra.mrb[32].mxu0 %vm170_vm0, %v1047_v17 }
 0x23f   :  { %4294 = vmatprep.mubr.msk.bf16.mxu0 %vm4708_vm1, %v4707_v0 }
 0x240   :  { %v1377_v49 = vpop.permute.xlu0 %1376 }
 0x244   :  { %v1443_v44 = vpop.permute.xlu0 %1442 }
 0x255   :  { %v619_v35 = vpop.xlane.xlu1 %618 }
 0x256   :  { %4609 = vrcp.f32 %v619_v35 }
 0x259   :  { %v1189_v36 = vpop.permute.xlu1 %1188 }
 0x25a   :  { %v1194_v38 = vsel %vm170_vm0, %v1189_v36, 0 }
 0x25b   :  { %4293 = vmatpush3.bf16.xpose.msra.mxu0 %v1194_v38 }
 0x25c   :  { %4304 = vmatprep.subr.bf16.mxu0 %v4707_v0 }
 0x25d   :  { %v1255_v24 = vpop.permute.xlu1 %1254 }
 0x25e   :  { %v1260_v53 = vsel %vm170_vm0, %v1255_v24, 0 }
 0x260   :  { %v4610_v42 = vpop.eup %4609 }
 0x261   :  { %v635_v27 = vmul.f32 %v4610_v42, %v4980_v3  ;;  %v1321_v45 = vpop.permute.xlu1 %1320 }
 0x262   :  { %4295 = vmatmul.mubr.msk.bf16.vlgmr.msra.gmra.mrb[36].mxu0 %vm170_vm0, %v1179_v37  ;;  %v1326_v46 = vsel %vm170_vm0, %v1321_v45, 0 }
 0x263   :  { %v643_v40 = vpack.c.bf16 %v635_v27, %v635_v27  ;;  %4305 = vmatpush3.bf16.xpose.msra.mxu0 %v1326_v46  ;;  %4306 = vmatprep.mubr.msk.bf16.mxu0 %vm4708_vm1, %v4707_v0 }
 0x264   :  { %4316 = vmatprep.subr.bf16.mxu0 %v4707_v0 }
 0x265   :  { %4277 = vmatmul.mubr.msk.bf16.vlgmr.msra.gmra.mrb[28].mxu1 %vm644_vm4, %v643_v40  ;;  %v1387_v32 = vpop.permute.xlu1 %1386 }
 0x266   :  { %4287 = vmatpush3.bf16.xpose.msra.mxu1 %v1128_v39  ;;  %4288 = vmatprep.mubr.msk.bf16.mxu1 %vm4708_vm1, %v4707_v0  ;;  %v1392_v54 = vsel %vm170_vm0, %v1387_v32, 0 }
 0x267   :  { %4298 = vmatprep.subr.bf16.mxu1 %v4707_v0 }
 0x269   :  { %v1453_v3 = vpop.permute.xlu1 %1452 }
 0x26a   :  { %v1458_v50 = vsel %vm170_vm0, %v1453_v3, 0  ;;  %4307 = vmatmul.mubr.msk.bf16.vlgmr.msra.gmra.mrb[40].mxu0 %vm170_vm0, %v1311_v47 }
 0x26b   :  { %4317 = vmatpush3.bf16.xpose.msra.mxu0 %v1458_v50  ;;  %4318 = vmatprep.mubr.msk.bf16.mxu0 %vm4708_vm1, %v4707_v0 }
 0x26c   :  { %4328 = vmatprep.subr.bf16.mxu0 %v4707_v0 }
 0x26d   :  { %4289 = vmatmul.mubr.msk.bf16.vlgmr.msra.gmra.mrb[32].mxu1 %vm170_vm0, %v1113_v4  ;;  %v1519_v57 = vpop.permute.xlu1 %1518 }
 0x26e   :  { %4299 = vmatpush3.bf16.xpose.msra.mxu1 %v1260_v53  ;;  %4300 = vmatprep.mubr.msk.bf16.mxu1 %vm4708_vm1, %v4707_v0  ;;  %v1524_v58 = vsel %vm170_vm0, %v1519_v57, 0 }
 0x26f   :  { %4310 = vmatprep.subr.bf16.mxu1 %v4707_v0 }
 0x271   :  { %v1509_v59 = vpop.permute.xlu1 %1508 }
 0x272   :  { %4319 = vmatmul.mubr.msk.bf16.vlgmr.msra.gmra.mrb[44].mxu0 %vm170_vm0, %v1443_v44 }
 0x273   :  { %4330 = vmatprep.mubr.msk.bf16.mxu0 %vm4708_vm1, %v4707_v0 }
 0x275   :  { %4301 = vmatmul.mubr.msk.bf16.vlgmr.msra.gmra.mrb[36].mxu1 %vm170_vm0, %v1245_v41 }
 0x276   :  { %4311 = vmatpush3.bf16.xpose.msra.mxu1 %v1392_v54  ;;  %4312 = vmatprep.mubr.msk.bf16.mxu1 %vm4708_vm1, %v4707_v0 }
 0x277   :  { %4322 = vmatprep.subr.bf16.mxu1 %v4707_v0 }
 0x27d   :  { %4313 = vmatmul.mubr.msk.bf16.vlgmr.msra.gmra.mrb[40].mxu1 %vm170_vm0, %v1377_v49 }
 0x27e   :  { %4323 = vmatpush3.bf16.xpose.msra.mxu1 %v1524_v58  ;;  %4324 = vmatprep.mubr.msk.bf16.mxu1 %vm4708_vm1, %v4707_v0 }
 0x27f   :  { %4334 = vmatprep.subr.bf16.mxu1 %v4707_v0 }
 0x285   :  { %4325 = vmatmul.mubr.msk.bf16.vlgmr.msra.gmra.mrb[44].mxu1 %vm170_vm0, %v1509_v59 }
 0x286   :  { %4336 = vmatprep.mubr.msk.bf16.mxu1 %vm4708_vm1, %v4707_v0 }
 0x2ef   :  { %v686_v60 = vpop.f32.mrb[16].mxu0 }
 0x2f0   :  { %v4236_v61 = vpop.f32.mrb[17].mxu0  ;;  %v1023_v56 = vsel %vm1022_vm5, %v686_v60, 0.0 }
 0x2f1   :  { %v689_v62 = vpop.f32.mrb[18].mxu0 }
 0x2f2   :  { %v4237_v63 = vpop.f32.mrb[19].mxu0 }
 0x2f3   :  { %v732_v9 = vpop.f32.mrb[16].mxu1 }
 0x2f4   :  { %v1024_v55 = vsel %vm1022_vm5, %v732_v9, 0.0  ;;  %v4242_v25 = vpop.f32.mrb[17].mxu1 }
 0x2f5   :  { %v1025_v29 = vadd.f32 %v1024_v55, %v1023_v56  ;;  %v735_v30 = vpop.f32.mrb[18].mxu1 }
 0x2f6   :  { %v4243_v31 = vpop.f32.mrb[19].mxu1 }
 0x2f7   :  { %v778_v19 = vpop.f32.mrb[20].mxu0 }
 0x2f8   :  { %v1026_v34 = vsel %vm1022_vm5, %v778_v19, 0.0  ;;  %v4248_v17 = vpop.f32.mrb[21].mxu0 }
 0x2f9   :  { %v1027_v4 = vadd.f32 %v1026_v34, %v1025_v29  ;;  %v781_v35 = vpop.f32.mrb[22].mxu0 }
 0x2fa   :  { %v4249_v36 = vpop.f32.mrb[23].mxu0 }
 0x2fb   :  { %v824_v37 = vpop.f32.mrb[20].mxu1 }
 0x2fc   :  { %v1028_v38 = vsel %vm1022_vm5, %v824_v37, 0.0  ;;  %v4254_v24 = vpop.f32.mrb[21].mxu1 }
 0x2fd   :  { %v5152_v41 = vadd.f32 %v1028_v38, %v1027_v4  ;;  %v827_v42 = vpop.f32.mrb[22].mxu1 }
 0x2fe   :  { %v4255_v27 = vpop.f32.mrb[23].mxu1 }
 0x300   :  { %v870_v45 = vpop.f32.mrb[24].mxu0 }
 0x301   :  { %v4260_v46 = vpop.f32.mrb[25].mxu0 }
 0x302   :  { %v873_v40 = vpop.f32.mrb[26].mxu0 }
 0x303   :  { %v4261_v47 = vpop.f32.mrb[27].mxu0  ;;  %v916_v39 = vpop.f32.mrb[24].mxu1 }
 0x304   :  { %v4266_v32 = vpop.f32.mrb[25].mxu1 }
 0x305   :  { %v919_v3 = vpop.f32.mrb[26].mxu1 }
 0x306   :  { %v4267_v49 = vpop.f32.mrb[27].mxu1 }
 0x308   :  { %v962_v50 = vpop.f32.mrb[28].mxu0 }
 0x309   :  { %v4272_v53 = vpop.f32.mrb[29].mxu0 }
 0x30a   :  { %v965_v44 = vpop.f32.mrb[30].mxu0 }
 0x30b   :  { %v4273_v54 = vpop.f32.mrb[31].mxu0 }
 0x311   :  { %v1098_v57 = vpop.f32.mrb[32].mxu0 }
 0x312   :  { %v5154_v58 = vmul.f32 0.35355338, %v1098_v57  ;;  %v4284_v59 = vpop.f32.mrb[33].mxu0 }
 0x313   :  { %v1101_v60 = vpop.f32.mrb[34].mxu0 }
 0x314   :  { %v4285_v61 = vpop.f32.mrb[35].mxu0  ;;  %v1574_v62 = vsel %vm547_vm2, %v5154_v58, -inf }
 0x315   :  { %1575 = vmax.xlane.f32.xlu0 %v1574_v62 }
 0x335   :  { %v1230_v63 = vpop.f32.mrb[36].mxu0 }
 0x336   :  { %v5158_v9 = vmul.f32 0.35355338, %v1230_v63  ;;  %v4296_v56 = vpop.f32.mrb[37].mxu0 }
 0x337   :  { %v1233_v55 = vpop.f32.mrb[38].mxu0 }
 0x338   :  { %v1008_v25 = vpop.f32.mrb[28].mxu1  ;;  %v1580_v29 = vsel %vm547_vm2, %v5158_v9, -inf  ;;  %v4297_v30 = vpop.f32.mrb[39].mxu0 }
 0x339   :  { %v4278_v31 = vpop.f32.mrb[29].mxu1  ;;  %1581 = vmax.xlane.f32.xlu0 %v1580_v29 }
 0x33a   :  { %v1011_v19 = vpop.f32.mrb[30].mxu1 }
 0x33b   :  { %v4279_v34 = vpop.f32.mrb[31].mxu1 }
 0x33c   :  { %v5175_v34 = vrot.slane %v4914_v15, %v4909_v10  ;;  %v5191_v15 = vrot.slane %v5031_v18, %v4909_v10  ;;  %v5209_v18 = vrot.slane %v5063_v52, %v4909_v10 }
 0x33d   :  { %v1362_v17 = vpop.f32.mrb[40].mxu0 }
 0x33e   :  { %v4308_v4 = vpop.f32.mrb[41].mxu0  ;;  %v5163_v50 = vmul.f32 0.35355338, %v1362_v17  ;;  %v5181_v17 = vrot.slane %v4926_v22, %v4909_v10  ;;  %v5197_v22 = vrot.slane %v5039_v43, %v4909_v10 }
 0x33f   :  { %v1365_v35 = vpop.f32.mrb[42].mxu0 }
 0x340   :  { %v1164_v36 = vpop.f32.mrb[32].mxu1  ;;  %v4309_v37 = vpop.f32.mrb[43].mxu0  ;;  %v1586_v57 = vsel %vm547_vm2, %v5163_v50, -inf }
 0x341   :  { %v1567_v38 = vmul.f32 0.35355338, %v1164_v36  ;;  %v4290_v24 = vpop.f32.mrb[33].mxu1  ;;  %v5203_v36 = vrot.slane %v5051_v48, %v4909_v10 }
 0x342   :  { %v1167_v42 = vpop.f32.mrb[34].mxu1 }
 0x343   :  { %v4291_v27 = vpop.f32.mrb[35].mxu1  ;;  %v1577_v45 = vsel %vm547_vm2, %v1567_v38, -inf }
 0x344   :  { %1578 = vmax.xlane.f32.xlu1 %v1577_v45 }
 0x345   :  { %v1494_v46 = vpop.f32.mrb[44].mxu0 }
 0x346   :  { %v4320_v40 = vpop.f32.mrb[45].mxu0  ;;  %v5168_v59 = vmul.f32 0.35355338, %v1494_v46 }
 0x347   :  { %v1497_v47 = vpop.f32.mrb[46].mxu0 }
 0x348   :  { %v1296_v39 = vpop.f32.mrb[36].mxu1  ;;  %v4321_v32 = vpop.f32.mrb[47].mxu0  ;;  %v1592_v63 = vsel %vm547_vm2, %v5168_v59, -inf }
 0x349   :  { %v1569_v3 = vmul.f32 0.35355338, %v1296_v39  ;;  %v4302_v49 = vpop.f32.mrb[37].mxu1 }
 0x34a   :  { %v1299_v53 = vpop.f32.mrb[38].mxu1 }
 0x34b   :  { %v4303_v44 = vpop.f32.mrb[39].mxu1  ;;  %v1583_v54 = vsel %vm547_vm2, %v1569_v3, -inf }
 0x34c   :  { %1584 = vmax.xlane.f32.xlu0 %v1583_v54 }
 0x350   :  { %v1428_v60 = vpop.f32.mrb[40].mxu1  ;;  %1587 = vmax.xlane.f32.xlu0 %v1586_v57 }
 0x351   :  { %v1571_v61 = vmul.f32 0.35355338, %v1428_v60  ;;  %v4314_v62 = vpop.f32.mrb[41].mxu1 }
 0x352   :  { %v1431_v56 = vpop.f32.mrb[42].mxu1 }
 0x353   :  { %v4315_v55 = vpop.f32.mrb[43].mxu1  ;;  %v1589_v25 = vsel %vm547_vm2, %v1571_v61, -inf }
 0x354   :  { %1590 = vmax.xlane.f32.xlu1 %v1589_v25  ;;  %1593 = vmax.xlane.f32.xlu0 %v1592_v63 }
 0x358   :  { %v1560_v29 = vpop.f32.mrb[44].mxu1 }
 0x359   :  { %v4326_v30 = vpop.f32.mrb[45].mxu1  ;;  %v5185_v4 = vmul.f32 0.35355338, %v1560_v29  ;;  %v5237_v29 = vrot.slane %v5076_v51, %v4909_v10  ;;  %v5249_v51 = vrot.slane %v5088_v16, %v4909_v10 }
 0x35a   :  { %v1563_v31 = vpop.f32.mrb[46].mxu1 }
 0x35b   :  { %v4327_v19 = vpop.f32.mrb[47].mxu1  ;;  %v1595_v35 = vsel %vm547_vm2, %v5185_v4, -inf }
 0x365   :  { %1678 = vrot.lane.b32.xlu1 %v5175_v34, %s4710_s13 }
 0x36a   :  { %1734 = vrot.lane.b32.xlu0 %v5181_v17, %s4710_s13 }
 0x389   :  { %1596 = vmax.xlane.f32.xlu1 %v1595_v35 }
 0x39a   :  { %1790 = vrot.lane.b32.xlu1 %v5191_v15, %s4710_s13 }
 0x39e   :  { %1846 = vrot.lane.b32.xlu1 %v5197_v22, %s4710_s13 }
 0x3a2   :  { %v1576_v37 = vpop.xlane.xlu0 %1575  ;;  %1902 = vrot.lane.b32.xlu1 %v5203_v36, %s4710_s13 }
 0x3a3   :  { %v1598_v24 = vsub.f32 %v5154_v58, %v1576_v37 }
 0x3a5   :  { %v1606_v42 = vmul.f32 1.442695, %v1598_v24 }
 0x3a6   :  { %1958 = vrot.lane.b32.xlu1 %v5209_v18, %s4710_s13 }
 0x3a7   :  { %4611 = vpow2.f32 %v1606_v42 }
 0x3b1   :  { %v5214_v43 = vpop.eup %4611 }
 0x3b2   :  { %v1622_v48 = vsel %vm547_vm2, %v5214_v43, 0.0 }
 0x3b3   :  { %1623 = vadd.xlane.f32.xlu0 %v1622_v48 }
 0x3c6   :  { %v1582_v27 = vpop.xlane.xlu0 %1581 }
 0x3c7   :  { %v1600_v45 = vsub.f32 %v5158_v9, %v1582_v27 }
 0x3c9   :  { %v1610_v46 = vmul.f32 1.442695, %v1600_v45 }
 0x3cb   :  { %4613 = vpow2.f32 %v1610_v46 }
 0x3d1   :  { %v1579_v52 = vpop.xlane.xlu1 %1578 }
 0x3d2   :  { %v1599_v40 = vsub.f32 %v1567_v38, %v1579_v52 }
 0x3d4   :  { %v1608_v47 = vmul.f32 1.442695, %v1599_v40 }
 0x3d5   :  { %v5219_v58 = vpop.eup %4613 }
 0x3d6   :  { %4615 = vpow2.f32 %v1608_v47  ;;  %v1628_v39 = vsel %vm547_vm2, %v5219_v58, 0.0 }
 0x3d7   :  { %1629 = vadd.xlane.f32.xlu0 %v1628_v39 }
 0x3d9   :  { %v1585_v32 = vpop.xlane.xlu0 %1584 }
 0x3da   :  { %v1601_v49 = vsub.f32 %v1569_v3, %v1585_v32 }
 0x3dc   :  { %v1612_v53 = vmul.f32 1.442695, %v1601_v49 }
 0x3dd   :  { %v1588_v44 = vpop.xlane.xlu0 %1587 }
 0x3de   :  { %4617 = vpow2.f32 %v1612_v53  ;;  %v1602_v19 = vsub.f32 %v5163_v50, %v1588_v44 }
 0x3e0   :  { %v5223_v54 = vpop.eup %4615  ;;  %v1614_v35 = vmul.f32 1.442695, %v1602_v19 }
 0x3e1   :  { %v1591_v9 = vpop.xlane.xlu1 %1590  ;;  %v1594_v57 = vpop.xlane.xlu0 %1593  ;;  %v1625_v38 = vsel %vm547_vm2, %v5223_v54, 0.0 }
 0x3e2   :  { %v1603_v60 = vsub.f32 %v1571_v61, %v1591_v9  ;;  %1626 = vadd.xlane.f32.xlu1 %v1625_v38  ;;  %v1604_v37 = vsub.f32 %v5168_v59, %v1594_v57 }
 0x3e4   :  { %v1616_v62 = vmul.f32 1.442695, %v1603_v60  ;;  %v1618_v24 = vmul.f32 1.442695, %v1604_v37 }
 0x3e5   :  { %v1679_v63 = vpop.permute.xlu1 %1678  ;;  %v1735_v56 = vpop.permute.xlu0 %1734 }
 0x3e6   :  { %4619 = vpow2.f32 %v1616_v62  ;;  %v1684_v55 = vsel %vm648_vm3, %v1679_v63, 0  ;;  %v1740_v3 = vsel %vm648_vm3, %v1735_v56, 0 }
 0x3e7   :  { %4329 = vmatpush3.bf16.msra.mxu0 %v1684_v55  ;;  %4335 = vmatpush3.bf16.msra.mxu1 %v1740_v3  ;;  %4621 = vpow2.f32 %v1614_v35 }
 0x3e8   :  { %v5229_v25 = vpop.eup %4617  ;;  %4340 = vmatprep.subr.bf16.mxu0 %v4707_v0  ;;  %4346 = vmatprep.subr.bf16.mxu1 %v4707_v0  ;;  %4623 = vpow2.f32 %v1618_v24 }
 0x3e9   :  { %v1631_v61 = vsel %vm547_vm2, %v5229_v25, 0.0 }
 0x3ea   :  { %1632 = vadd.xlane.f32.xlu1 %v1631_v61 }
 0x3ed   :  { %2014 = vrot.lane.b32.xlu0 %v5237_v29, %s4710_s13 }
 0x3f0   :  { %v5241_v30 = vpop.eup %4619 }
 0x3f1   :  { %v1637_v31 = vsel %vm547_vm2, %v5241_v30, 0.0  ;;  %v5255_v42 = vpop.eup %4621 }
 0x3f2   :  { %1638 = vadd.xlane.f32.xlu1 %v1637_v31  ;;  %v1634_v50 = vsel %vm547_vm2, %v5255_v42, 0.0  ;;  %v5261_v59 = vpop.eup %4623 }
 0x3f3   :  { %v1640_v10 = vsel %vm547_vm2, %v5261_v59, 0.0 }
 0x403   :  { %2070 = vrot.lane.b32.xlu1 %v5249_v51, %s4710_s13 }
 0x407   :  { %2193 = vrot.lane.b32.xlu1 %v4921_v21, %s4711_s26 }
 0x40b   :  { %2243 = vrot.lane.b32.xlu1 %v4988_v20, %s4711_s26 }
 0x40c   :  { %1635 = vadd.xlane.f32.xlu0 %v1634_v50 }
 0x40f   :  { %2293 = vrot.lane.b32.xlu1 %v4994_v23, %s4711_s26 }
 0x410   :  { %1641 = vadd.xlane.f32.xlu0 %v1640_v10 }
 0x413   :  { %2343 = vrot.lane.b32.xlu1 %v5000_v33, %s4711_s26 }
 0x416   :  { %v1597_v16 = vpop.xlane.xlu1 %1596 }
 0x417   :  { %v1605_v48 = vsub.f32 %v5185_v4, %v1597_v16  ;;  %2393 = vrot.lane.b32.xlu1 %v5006_v5, %s4711_s26 }
 0x419   :  { %v1620_v27 = vmul.f32 1.442695, %v1605_v48 }
 0x41a   :  { %v1791_v40 = vpop.permute.xlu1 %1790 }
 0x41b   :  { %4625 = vpow2.f32 %v1620_v27  ;;  %2443 = vrot.lane.b32.xlu1 %v5012_v6, %s4711_s26  ;;  %v1796_v32 = vsel %vm648_vm3, %v1791_v40, 0 }
 0x41f   :  { %2493 = vrot.lane.b32.xlu1 %v5018_v11, %s4711_s26 }
 0x423   :  { %2491 = vrot.lane.b32.xlu1 %v5024_v12, %s4711_s26 }
 0x425   :  { %v5278_v45 = vpop.eup %4625 }
 0x426   :  { %v1643_v46 = vsel %vm547_vm2, %v5278_v45, 0.0 }
 0x427   :  { %1644 = vadd.xlane.f32.xlu0 %v1643_v46 }
 0x43d   :  { %2143 = vrot.lane.b32.xlu0 %v4941_v2, %s4711_s26 }
 0x440   :  { %v1624_v4 = vpop.xlane.xlu0 %1623 }
 0x441   :  { %4627 = vrcp.f32 %v1624_v4  ;;  %2141 = vrot.lane.b32.xlu0 %v4935_v26, %s4711_s26 }
 0x445   :  { %2191 = vrot.lane.b32.xlu0 %v4947_v28, %s4711_s26 }
 0x449   :  { %2241 = vrot.lane.b32.xlu0 %v4954_v7, %s4711_s26 }
 0x44b   :  { %v4628_v52 = vpop.eup %4627 }
 0x44c   :  { %v1654_v47 = vmul.f32 %v4628_v52, %v5214_v43  ;;  %v1847_v43 = vpop.permute.xlu1 %1846 }
 0x44d   :  { %2291 = vrot.lane.b32.xlu0 %v4960_v1, %s4711_s26 }
 0x44e   :  { %v1662_v39 = vpack.c.bf16 %v1654_v47, %v1654_v47 }
 0x450   :  { %4331 = vmatmul.mubr.msk.bf16.vlgmr.msra.gmra.mrb[48].mxu0 %vm644_vm4, %v1662_v39  ;;  %v1903_v53 = vpop.permute.xlu1 %1902 }
 0x451   :  { %4341 = vmatpush3.bf16.msra.mxu0 %v1796_v32  ;;  %2341 = vrot.lane.b32.xlu0 %v4966_v8, %s4711_s26  ;;  %v1908_v62 = vsel %vm648_vm3, %v1903_v53, 0 }
 0x452   :  { %4342 = vmatprep.mubr.msk.bf16.mxu0 %vm4708_vm1, %v4707_v0  ;;  %4352 = vmatprep.subr.bf16.mxu0 %v4707_v0 }
 0x454   :  { %v1959_v44 = vpop.permute.xlu1 %1958 }
 0x455   :  { %2391 = vrot.lane.b32.xlu0 %v4972_v13, %s4711_s26  ;;  %v1964_v37 = vsel %vm648_vm3, %v1959_v44, 0 }
 0x459   :  { %2441 = vrot.lane.b32.xlu0 %v4978_v14, %s4711_s26 }
 0x464   :  { %v1630_v49 = vpop.xlane.xlu0 %1629 }
 0x465   :  { %4629 = vrcp.f32 %v1630_v49 }
 0x46f   :  { %v4630_v9 = vpop.eup %4629  ;;  %v1627_v57 = vpop.xlane.xlu1 %1626 }
 0x470   :  { %v1656_v38 = vmul.f32 %v4630_v9, %v5219_v58  ;;  %4631 = vrcp.f32 %v1627_v57  ;;  %v1852_v58 = vsel %vm648_vm3, %v1847_v43, 0 }
 0x472   :  { %v1664_v60 = vpack.c.bf16 %v1656_v38, %v1656_v38 }
 0x474   :  { %4343 = vmatmul.mubr.msk.bf16.vlgmr.msra.gmra.mrb[52].mxu0 %vm644_vm4, %v1664_v60 }
 0x475   :  { %4353 = vmatpush3.bf16.msra.mxu0 %v1908_v62  ;;  %4354 = vmatprep.mubr.msk.bf16.mxu0 %vm4708_vm1, %v4707_v0 }
 0x476   :  { %4364 = vmatprep.subr.bf16.mxu0 %v4707_v0 }
 0x477   :  { %v1633_v63 = vpop.xlane.xlu1 %1632 }
 0x478   :  { %4633 = vrcp.f32 %v1633_v63 }
 0x47a   :  { %v4632_v56 = vpop.eup %4631 }
 0x47b   :  { %v1655_v55 = vmul.f32 %v4632_v56, %v5223_v54 }
 0x47d   :  { %v1663_v3 = vpack.c.bf16 %v1655_v55, %v1655_v55 }
 0x47f   :  { %v1639_v61 = vpop.xlane.xlu1 %1638  ;;  %4337 = vmatmul.mubr.msk.bf16.vlgmr.msra.gmra.mrb[48].mxu1 %vm644_vm4, %v1663_v3 }
 0x480   :  { %4635 = vrcp.f32 %v1639_v61  ;;  %4347 = vmatpush3.bf16.msra.mxu1 %v1852_v58  ;;  %4348 = vmatprep.mubr.msk.bf16.mxu1 %vm4708_vm1, %v4707_v0 }
 0x481   :  { %4358 = vmatprep.subr.bf16.mxu1 %v4707_v0 }
 0x482   :  { %v4634_v31 = vpop.eup %4633 }
 0x483   :  { %v1657_v19 = vmul.f32 %v4634_v31, %v5229_v25  ;;  %v2071_v50 = vpop.permute.xlu1 %2070  ;;  %v2015_v25 = vpop.permute.xlu0 %2014 }
 0x484   :  { %v2076_v16 = vsel %vm648_vm3, %v2071_v50, 0  ;;  %v2020_v40 = vsel %vm648_vm3, %v2015_v25, 0 }
 0x485   :  { %v1665_v35 = vpack.c.bf16 %v1657_v19, %v1657_v19 }
 0x487   :  { %4349 = vmatmul.mubr.msk.bf16.vlgmr.msra.gmra.mrb[52].mxu1 %vm644_vm4, %v1665_v35  ;;  %v2194_v32 = vpop.permute.xlu1 %2193 }
 0x488   :  { %4359 = vmatpush3.bf16.msra.mxu1 %v1964_v37  ;;  %4360 = vmatprep.mubr.msk.bf16.mxu1 %vm4708_vm1, %v4707_v0  ;;  %v2199_v63 = vsel %vm170_vm0, %v2194_v32, 0 }
 0x489   :  { %4370 = vmatprep.subr.bf16.mxu1 %v4707_v0 }
 0x48a   :  { %v4636_v54 = vpop.eup %4635 }
 0x48b   :  { %v1659_v24 = vmul.f32 %v4636_v54, %v5241_v30  ;;  %v2244_v43 = vpop.permute.xlu1 %2243 }
 0x48c   :  { %v2249_v57 = vsel %vm170_vm0, %v2244_v43, 0 }
 0x48d   :  { %v1667_v10 = vpack.c.bf16 %v1659_v24, %v1659_v24 }
 0x48f   :  { %4361 = vmatmul.mubr.msk.bf16.vlgmr.msra.gmra.mrb[56].mxu1 %vm644_vm4, %v1667_v10  ;;  %v2294_v44 = vpop.permute.xlu1 %2293 }
 0x490   :  { %4371 = vmatpush3.bf16.msra.mxu1 %v2076_v16  ;;  %4372 = vmatprep.mubr.msk.bf16.mxu1 %vm4708_vm1, %v4707_v0  ;;  %v2299_v61 = vsel %vm170_vm0, %v2294_v44, 0 }
 0x491   :  { %4382 = vmatprep.subr.bf16.mxu1 %v4707_v0 }
 0x493   :  { %v2344_v62 = vpop.permute.xlu1 %2343 }
 0x494   :  { %v2349_v3 = vsel %vm170_vm0, %v2344_v62, 0 }
 0x499   :  { %v1636_v48 = vpop.xlane.xlu0 %1635 }
 0x49a   :  { %4637 = vrcp.f32 %v1636_v48 }
 0x49d   :  { %v1642_v27 = vpop.xlane.xlu0 %1641 }
 0x49e   :  { %4639 = vrcp.f32 %v1642_v27 }
 0x4a4   :  { %v4638_v46 = vpop.eup %4637 }
 0x4a5   :  { %v1658_v30 = vmul.f32 %v4638_v46, %v5255_v42 }
 0x4a7   :  { %v1666_v4 = vpack.c.bf16 %v1658_v30, %v1658_v30 }
 0x4a8   :  { %v4640_v52 = vpop.eup %4639 }
 0x4a9   :  { %4355 = vmatmul.mubr.msk.bf16.vlgmr.msra.gmra.mrb[56].mxu0 %vm644_vm4, %v1666_v4  ;;  %v1660_v47 = vmul.f32 %v4640_v52, %v5261_v59 }
 0x4aa   :  { %4365 = vmatpush3.bf16.msra.mxu0 %v2020_v40  ;;  %4366 = vmatprep.mubr.msk.bf16.mxu0 %vm4708_vm1, %v4707_v0 }
 0x4ab   :  { %4376 = vmatprep.subr.bf16.mxu0 %v4707_v0  ;;  %v1668_v39 = vpack.c.bf16 %v1660_v47, %v1660_v47 }
 0x4b1   :  { %4367 = vmatmul.mubr.msk.bf16.vlgmr.msra.gmra.mrb[60].mxu0 %vm644_vm4, %v1668_v39 }
 0x4b2   :  { %4378 = vmatprep.mubr.msk.bf16.mxu0 %vm4708_vm1, %v4707_v0 }
 0x4b4   :  { %v1645_v42 = vpop.xlane.xlu0 %1644 }
 0x4b5   :  { %4641 = vrcp.f32 %v1645_v42 }
 0x4b8   :  { %v2144_v49 = vpop.permute.xlu0 %2143 }
 0x4b9   :  { %v2149_v53 = vsel %vm170_vm0, %v2144_v49, 0 }
 0x4ba   :  { %4377 = vmatpush3.bf16.xpose.msra.mxu0 %v2149_v53 }
 0x4bb   :  { %4388 = vmatprep.subr.bf16.mxu0 %v4707_v0 }
 0x4bc   :  { %v2142_v59 = vpop.permute.xlu0 %2141 }
 0x4bf   :  { %v4642_v9 = vpop.eup %4641 }
 0x4c0   :  { %v1661_v38 = vmul.f32 %v4642_v9, %v5278_v45  ;;  %v2192_v60 = vpop.permute.xlu0 %2191  ;;  %v2394_v45 = vpop.permute.xlu1 %2393 }
 0x4c1   :  { %4379 = vmatmul.mubr.msk.bf16.vlgmr.msra.gmra.mrb[64].mxu0 %vm170_vm0, %v2142_v59  ;;  %v2399_v54 = vsel %vm170_vm0, %v2394_v45, 0 }
 0x4c2   :  { %4389 = vmatpush3.bf16.xpose.msra.mxu0 %v2249_v57  ;;  %v1669_v56 = vpack.c.bf16 %v1661_v38, %v1661_v38  ;;  %4390 = vmatprep.mubr.msk.bf16.mxu0 %vm4708_vm1, %v4707_v0 }
 0x4c3   :  { %4400 = vmatprep.subr.bf16.mxu0 %v4707_v0 }
 0x4c4   :  { %4373 = vmatmul.mubr.msk.bf16.vlgmr.msra.gmra.mrb[60].mxu1 %vm644_vm4, %v1669_v56  ;;  %v2242_v55 = vpop.permute.xlu0 %2241  ;;  %v2444_v31 = vpop.permute.xlu1 %2443 }
 0x4c5   :  { %4383 = vmatpush3.bf16.xpose.msra.mxu1 %v2199_v63  ;;  %4384 = vmatprep.mubr.msk.bf16.mxu1 %vm4708_vm1, %v4707_v0  ;;  %v2449_v35 = vsel %vm170_vm0, %v2444_v31, 0 }
 0x4c6   :  { %4394 = vmatprep.subr.bf16.mxu1 %v4707_v0 }
 0x4c8   :  { %v2292_v58 = vpop.permute.xlu0 %2291  ;;  %v2494_v50 = vpop.permute.xlu1 %2493 }
 0x4c9   :  { %4391 = vmatmul.mubr.msk.bf16.vlgmr.msra.gmra.mrb[68].mxu0 %vm170_vm0, %v2242_v55  ;;  %v2499_v10 = vsel %vm170_vm0, %v2494_v50, 0 }
 0x4ca   :  { %4401 = vmatpush3.bf16.xpose.msra.mxu0 %v2349_v3  ;;  %4402 = vmatprep.mubr.msk.bf16.mxu0 %vm4708_vm1, %v4707_v0 }
 0x4cb   :  { %4412 = vmatprep.subr.bf16.mxu0 %v4707_v0 }
 0x4cc   :  { %4385 = vmatmul.mubr.msk.bf16.vlgmr.msra.gmra.mrb[64].mxu1 %vm170_vm0, %v2192_v60  ;;  %v2342_v19 = vpop.permute.xlu0 %2341  ;;  %v2492_v16 = vpop.permute.xlu1 %2491 }
 0x4cd   :  { %4395 = vmatpush3.bf16.xpose.msra.mxu1 %v2299_v61  ;;  %4396 = vmatprep.mubr.msk.bf16.mxu1 %vm4708_vm1, %v4707_v0 }
 0x4ce   :  { %4406 = vmatprep.subr.bf16.mxu1 %v4707_v0 }
 0x4d0   :  { %v2392_v37 = vpop.permute.xlu0 %2391 }
 0x4d1   :  { %4403 = vmatmul.mubr.msk.bf16.vlgmr.msra.gmra.mrb[72].mxu0 %vm170_vm0, %v2342_v19 }
 0x4d2   :  { %4413 = vmatpush3.bf16.xpose.msra.mxu0 %v2449_v35  ;;  %4414 = vmatprep.mubr.msk.bf16.mxu0 %vm4708_vm1, %v4707_v0 }
 0x4d3   :  { %4424 = vmatprep.subr.bf16.mxu0 %v4707_v0 }
 0x4d4   :  { %4397 = vmatmul.mubr.msk.bf16.vlgmr.msra.gmra.mrb[68].mxu1 %vm170_vm0, %v2292_v58  ;;  %v2442_v24 = vpop.permute.xlu0 %2441 }
 0x4d5   :  { %4407 = vmatpush3.bf16.xpose.msra.mxu1 %v2399_v54  ;;  %4408 = vmatprep.mubr.msk.bf16.mxu1 %vm4708_vm1, %v4707_v0 }
 0x4d6   :  { %4418 = vmatprep.subr.bf16.mxu1 %v4707_v0 }
 0x4d9   :  { %4415 = vmatmul.mubr.msk.bf16.vlgmr.msra.gmra.mrb[76].mxu0 %vm170_vm0, %v2442_v24 }
 0x4da   :  { %4426 = vmatprep.mubr.msk.bf16.mxu0 %vm4708_vm1, %v4707_v0 }
 0x4dc   :  { %4409 = vmatmul.mubr.msk.bf16.vlgmr.msra.gmra.mrb[72].mxu1 %vm170_vm0, %v2392_v37 }
 0x4dd   :  { %4419 = vmatpush3.bf16.xpose.msra.mxu1 %v2499_v10  ;;  %4420 = vmatprep.mubr.msk.bf16.mxu1 %vm4708_vm1, %v4707_v0 }
 0x4de   :  { %4430 = vmatprep.subr.bf16.mxu1 %v4707_v0 }
 0x4e4   :  { %4421 = vmatmul.mubr.msk.bf16.vlgmr.msra.gmra.mrb[76].mxu1 %vm170_vm0, %v2492_v16 }
 0x4e5   :  { %4432 = vmatprep.mubr.msk.bf16.mxu1 %vm4708_vm1, %v4707_v0 }
 0x523   :  { %v1720_v25 = vpop.f32.mrb[48].mxu0 }
 0x524   :  { %v4332_v48 = vpop.f32.mrb[49].mxu0  ;;  %v2126_v39 = vsel %vm1022_vm5, %v1720_v25, 0.0 }
 0x525   :  { %v1723_v27 = vpop.f32.mrb[50].mxu0 }
 0x526   :  { %v4333_v46 = vpop.f32.mrb[51].mxu0 }
 0x547   :  { %v1832_v30 = vpop.f32.mrb[52].mxu0 }
 0x548   :  { %v4344_v4 = vpop.f32.mrb[53].mxu0  ;;  %v2129_v53 = vsel %vm1022_vm5, %v1832_v30, 0.0 }
 0x549   :  { %v1835_v52 = vpop.f32.mrb[54].mxu0 }
 0x54a   :  { %v4345_v40 = vpop.f32.mrb[55].mxu0 }
 0x552   :  { %v1776_v47 = vpop.f32.mrb[48].mxu1 }
 0x553   :  { %v2127_v32 = vsel %vm1022_vm5, %v1776_v47, 0.0  ;;  %v4338_v42 = vpop.f32.mrb[49].mxu1 }
 0x554   :  { %v2128_v43 = vadd.f32 %v2127_v32, %v2126_v39  ;;  %v1779_v49 = vpop.f32.mrb[50].mxu1 }
 0x555   :  { %v4339_v44 = vpop.f32.mrb[51].mxu1 }
 0x556   :  { %v2130_v59 = vadd.f32 %v2129_v53, %v2128_v43 }
 0x55a   :  { %v1888_v9 = vpop.f32.mrb[52].mxu1 }
 0x55b   :  { %v2131_v57 = vsel %vm1022_vm5, %v1888_v9, 0.0  ;;  %v4350_v38 = vpop.f32.mrb[53].mxu1 }
 0x55c   :  { %v5386_v60 = vadd.f32 %v2131_v57, %v2130_v59  ;;  %v1891_v62 = vpop.f32.mrb[54].mxu1 }
 0x55d   :  { %v4351_v63 = vpop.f32.mrb[55].mxu1 }
 0x562   :  { %v2000_v56 = vpop.f32.mrb[56].mxu1 }
 0x563   :  { %v4362_v55 = vpop.f32.mrb[57].mxu1 }
 0x564   :  { %v2003_v45 = vpop.f32.mrb[58].mxu1 }
 0x565   :  { %v4363_v3 = vpop.f32.mrb[59].mxu1 }
 0x57c   :  { %v1944_v58 = vpop.f32.mrb[56].mxu0 }
 0x57d   :  { %v4356_v61 = vpop.f32.mrb[57].mxu0 }
 0x57e   :  { %v1947_v31 = vpop.f32.mrb[58].mxu0 }
 0x57f   :  { %v4357_v19 = vpop.f32.mrb[59].mxu0 }
 0x584   :  { %v2056_v35 = vpop.f32.mrb[60].mxu0 }
 0x585   :  { %v4368_v37 = vpop.f32.mrb[61].mxu0 }
 0x586   :  { %v2059_v54 = vpop.f32.mrb[62].mxu0 }
 0x587   :  { %v4369_v24 = vpop.f32.mrb[63].mxu0 }
 0x594   :  { %v2185_v50 = vpop.f32.mrb[64].mxu0 }
 0x595   :  { %v5388_v10 = vmul.f32 0.35355338, %v2185_v50  ;;  %v4380_v16 = vpop.f32.mrb[65].mxu0 }
 0x596   :  { %v2188_v25 = vpop.f32.mrb[66].mxu0 }
 0x597   :  { %v2112_v48 = vpop.f32.mrb[60].mxu1  ;;  %v2549_v27 = vsel %vm547_vm2, %v5388_v10, -inf  ;;  %v4381_v46 = vpop.f32.mrb[67].mxu0 }
 0x598   :  { %v4374_v30 = vpop.f32.mrb[61].mxu1  ;;  %2550 = vmax.xlane.f32.xlu0 %v2549_v27 }
 0x599   :  { %v2115_v4 = vpop.f32.mrb[62].mxu1 }
 0x59a   :  { %v4375_v52 = vpop.f32.mrb[63].mxu1 }
 0x59c   :  { %v2285_v40 = vpop.f32.mrb[68].mxu0 }
 0x59d   :  { %v2543_v47 = vmul.f32 0.35355338, %v2285_v40  ;;  %v4392_v39 = vpop.f32.mrb[69].mxu0 }
 0x59e   :  { %v2288_v32 = vpop.f32.mrb[70].mxu0 }
 0x59f   :  { %v2235_v42 = vpop.f32.mrb[64].mxu1  ;;  %v2555_v43 = vsel %vm547_vm2, %v2543_v47, -inf  ;;  %v4393_v49 = vpop.f32.mrb[71].mxu0 }
 0x5a0   :  { %v2542_v53 = vmul.f32 0.35355338, %v2235_v42  ;;  %v4386_v44 = vpop.f32.mrb[65].mxu1  ;;  %2556 = vmax.xlane.f32.xlu0 %v2555_v43 }
 0x5a1   :  { %v2238_v59 = vpop.f32.mrb[66].mxu1 }
 0x5a2   :  { %v4387_v9 = vpop.f32.mrb[67].mxu1  ;;  %v2552_v57 = vsel %vm547_vm2, %v2542_v53, -inf }
 0x5a3   :  { %2553 = vmax.xlane.f32.xlu1 %v2552_v57 }
 0x5a4   :  { %v2385_v38 = vpop.f32.mrb[72].mxu0 }
 0x5a5   :  { %v4404_v62 = vpop.f32.mrb[73].mxu0  ;;  %v5394_v58 = vmul.f32 0.35355338, %v2385_v38 }
 0x5a6   :  { %v2388_v63 = vpop.f32.mrb[74].mxu0 }
 0x5a7   :  { %v2335_v56 = vpop.f32.mrb[68].mxu1  ;;  %v4405_v55 = vpop.f32.mrb[75].mxu0  ;;  %v2561_v35 = vsel %vm547_vm2, %v5394_v58, -inf }
 0x5a8   :  { %v2544_v45 = vmul.f32 0.35355338, %v2335_v56  ;;  %v4398_v3 = vpop.f32.mrb[69].mxu1 }
 0x5a9   :  { %v2338_v61 = vpop.f32.mrb[70].mxu1 }
 0x5aa   :  { %v4399_v31 = vpop.f32.mrb[71].mxu1  ;;  %v2558_v19 = vsel %vm547_vm2, %v2544_v45, -inf }
 0x5ab   :  { %2559 = vmax.xlane.f32.xlu0 %v2558_v19 }
 0x5ac   :  { %v2485_v37 = vpop.f32.mrb[76].mxu0 }
 0x5ad   :  { %v5399_v54 = vmul.f32 0.35355338, %v2485_v37  ;;  %v4416_v24 = vpop.f32.mrb[77].mxu0 }
 0x5ae   :  { %v2488_v50 = vpop.f32.mrb[78].mxu0 }
 0x5af   :  { %v2435_v16 = vpop.f32.mrb[72].mxu1  ;;  %2562 = vmax.xlane.f32.xlu0 %v2561_v35  ;;  %v4417_v25 = vpop.f32.mrb[79].mxu0  ;;  %v2567_v46 = vsel %vm547_vm2, %v5399_v54, -inf }
 0x5b0   :  { %v2546_v48 = vmul.f32 0.35355338, %v2435_v16  ;;  %v4410_v27 = vpop.f32.mrb[73].mxu1 }
 0x5b1   :  { %v2438_v30 = vpop.f32.mrb[74].mxu1 }
 0x5b2   :  { %v4411_v4 = vpop.f32.mrb[75].mxu1  ;;  %v2564_v52 = vsel %vm547_vm2, %v2546_v48, -inf }
 0x5b3   :  { %2565 = vmax.xlane.f32.xlu1 %v2564_v52  ;;  %2568 = vmax.xlane.f32.xlu0 %v2567_v46 }
 0x5b7   :  { %v2535_v40 = vpop.f32.mrb[76].mxu1 }
 0x5b8   :  { %v4422_v39 = vpop.f32.mrb[77].mxu1  ;;  %v5408_v43 = vmul.f32 0.35355338, %v2535_v40 }
 0x5b9   :  { %v2538_v32 = vpop.f32.mrb[78].mxu1 }
 0x5ba   :  { %v4423_v42 = vpop.f32.mrb[79].mxu1  ;;  %v2570_v49 = vsel %vm547_vm2, %v5408_v43, -inf }
 0x5c4   :  { %2645 = vrot.lane.b32.xlu1 %v5175_v34, %s4711_s26 }
 0x5c9   :  { %2693 = vrot.lane.b32.xlu0 %v5181_v17, %s4711_s26 }
 0x5e8   :  { %2571 = vmax.xlane.f32.xlu1 %v2570_v49 }
 0x5f9   :  { %2741 = vrot.lane.b32.xlu1 %v5191_v15, %s4711_s26 }
 0x5fd   :  { %2789 = vrot.lane.b32.xlu1 %v5197_v22, %s4711_s26 }
 0x601   :  { %2837 = vrot.lane.b32.xlu1 %v5203_v36, %s4711_s26 }
 0x605   :  { %2885 = vrot.lane.b32.xlu1 %v5209_v18, %s4711_s26 }
 0x625   :  { %v2551_v44 = vpop.xlane.xlu0 %2550 }
 0x626   :  { %v2573_v59 = vsub.f32 %v5388_v10, %v2551_v44 }
 0x628   :  { %v2581_v9 = vmul.f32 1.442695, %v2573_v59 }
 0x62a   :  { %4643 = vpow2.f32 %v2581_v9 }
 0x62d   :  { %v2557_v57 = vpop.xlane.xlu0 %2556 }
 0x62e   :  { %v2575_v38 = vsub.f32 %v2543_v47, %v2557_v57 }
 0x630   :  { %v2585_v62 = vmul.f32 1.442695, %v2575_v38  ;;  %v2554_v63 = vpop.xlane.xlu1 %2553 }
 0x631   :  { %v2574_v56 = vsub.f32 %v2542_v53, %v2554_v63 }
 0x632   :  { %4645 = vpow2.f32 %v2585_v62 }
 0x633   :  { %v2583_v55 = vmul.f32 1.442695, %v2574_v56 }
 0x634   :  { %v5421_v3 = vpop.eup %4643 }
 0x635   :  { %4647 = vpow2.f32 %v2583_v55  ;;  %v2597_v61 = vsel %vm547_vm2, %v5421_v3, 0.0 }
 0x636   :  { %2598 = vadd.xlane.f32.xlu0 %v2597_v61 }
 0x638   :  { %v2560_v31 = vpop.xlane.xlu0 %2559 }
 0x639   :  { %v2576_v19 = vsub.f32 %v2544_v45, %v2560_v31 }
 0x63b   :  { %v2587_v35 = vmul.f32 1.442695, %v2576_v19 }
 0x63c   :  { %v5425_v10 = vpop.eup %4645  ;;  %v2563_v37 = vpop.xlane.xlu0 %2562 }
 0x63d   :  { %4649 = vpow2.f32 %v2587_v35  ;;  %v2603_v47 = vsel %vm547_vm2, %v5425_v10, 0.0  ;;  %v2577_v32 = vsub.f32 %v5394_v58, %v2563_v37 }
 0x63e   :  { %2604 = vadd.xlane.f32.xlu0 %v2603_v47 }
 0x63f   :  { %v5429_v53 = vpop.eup %4647  ;;  %v2589_v42 = vmul.f32 1.442695, %v2577_v32 }
 0x640   :  { %v2566_v24 = vpop.xlane.xlu1 %2565  ;;  %v2569_v50 = vpop.xlane.xlu0 %2568  ;;  %v2600_v16 = vsel %vm547_vm2, %v5429_v53, 0.0 }
 0x641   :  { %v2578_v25 = vsub.f32 %v2546_v48, %v2566_v24  ;;  %2601 = vadd.xlane.f32.xlu1 %v2600_v16  ;;  %v2579_v49 = vsub.f32 %v5399_v54, %v2569_v50 }
 0x643   :  { %v2591_v27 = vmul.f32 1.442695, %v2578_v25  ;;  %v2593_v44 = vmul.f32 1.442695, %v2579_v49 }
 0x644   :  { %v2646_v45 = vpop.permute.xlu1 %2645  ;;  %v2694_v46 = vpop.permute.xlu0 %2693 }
 0x645   :  { %4651 = vpow2.f32 %v2591_v27  ;;  %v2651_v30 = vsel %vm648_vm3, %v2646_v45, 0  ;;  %v2699_v4 = vsel %vm648_vm3, %v2694_v46, 0 }
 0x646   :  { %4425 = vmatpush3.bf16.msra.mxu0 %v2651_v30  ;;  %4431 = vmatpush3.bf16.msra.mxu1 %v2699_v4  ;;  %4653 = vpow2.f32 %v2589_v42 }
 0x647   :  { %v5435_v52 = vpop.eup %4649  ;;  %4436 = vmatprep.subr.bf16.mxu0 %v4707_v0  ;;  %4442 = vmatprep.subr.bf16.mxu1 %v4707_v0  ;;  %4655 = vpow2.f32 %v2593_v44 }
 0x648   :  { %v2606_v48 = vsel %vm547_vm2, %v5435_v52, 0.0 }
 0x649   :  { %2607 = vadd.xlane.f32.xlu1 %v2606_v48 }
 0x64f   :  { %v5441_v40 = vpop.eup %4651 }
 0x650   :  { %v2612_v39 = vsel %vm547_vm2, %v5441_v40, 0.0  ;;  %v5457_v58 = vpop.eup %4653 }
 0x651   :  { %2613 = vadd.xlane.f32.xlu1 %v2612_v39  ;;  %v2609_v54 = vsel %vm547_vm2, %v5457_v58, 0.0  ;;  %v5463_v59 = vpop.eup %4655 }
 0x654   :  { %2933 = vrot.lane.b32.xlu0 %v5237_v29, %s4711_s26 }
 0x662   :  { %2981 = vrot.lane.b32.xlu1 %v5249_v51, %s4711_s26 }
 0x666   :  { %3104 = vrot.lane.b32.xlu1 %v4921_v21, %s4712_s27 }
 0x66a   :  { %3154 = vrot.lane.b32.xlu1 %v4988_v20, %s4712_s27  ;;  %v2615_v20 = vsel %vm547_vm2, %v5463_v59, 0.0 }
 0x66e   :  { %3204 = vrot.lane.b32.xlu1 %v4994_v23, %s4712_s27 }
 0x672   :  { %3202 = vrot.lane.b32.xlu1 %v4960_v1, %s4712_s27 }
 0x673   :  { %2610 = vadd.xlane.f32.xlu0 %v2609_v54 }
 0x675   :  { %v2572_v9 = vpop.xlane.xlu1 %2571 }
 0x676   :  { %v2580_v21 = vsub.f32 %v5408_v43, %v2572_v9  ;;  %3304 = vrot.lane.b32.xlu1 %v5006_v5, %s4712_s27 }
 0x677   :  { %2616 = vadd.xlane.f32.xlu0 %v2615_v20 }
 0x678   :  { %v2595_v23 = vmul.f32 1.442695, %v2580_v21 }
 0x67a   :  { %4657 = vpow2.f32 %v2595_v23  ;;  %3302 = vrot.lane.b32.xlu1 %v4972_v13, %s4712_s27  ;;  %v2742_v13 = vpop.permute.xlu1 %2741 }
 0x67b   :  { %v2747_v57 = vsel %vm648_vm3, %v2742_v13, 0 }
 0x67e   :  { %3404 = vrot.lane.b32.xlu1 %v5018_v11, %s4712_s27 }
 0x682   :  { %3402 = vrot.lane.b32.xlu1 %v5024_v12, %s4712_s27 }
 0x684   :  { %v5476_v1 = vpop.eup %4657 }
 0x685   :  { %v2618_v43 = vsel %vm547_vm2, %v5476_v1, 0.0 }
 0x686   :  { %2619 = vadd.xlane.f32.xlu0 %v2618_v43 }
 0x69c   :  { %3054 = vrot.lane.b32.xlu0 %v4941_v2, %s4712_s27 }
 0x6a0   :  { %3052 = vrot.lane.b32.xlu0 %v4935_v26, %s4712_s27  ;;  %v2790_v26 = vpop.permute.xlu1 %2789 }
 0x6a1   :  { %v2795_v61 = vsel %vm648_vm3, %v2790_v26, 0 }
 0x6a4   :  { %3102 = vrot.lane.b32.xlu0 %v4947_v28, %s4712_s27  ;;  %v2838_v5 = vpop.permute.xlu1 %2837 }
 0x6a5   :  { %v2843_v55 = vsel %vm648_vm3, %v2838_v5, 0 }
 0x6a8   :  { %3152 = vrot.lane.b32.xlu0 %v4954_v7, %s4712_s27  ;;  %v2886_v28 = vpop.permute.xlu1 %2885 }
 0x6a9   :  { %v2891_v37 = vsel %vm648_vm3, %v2886_v28, 0 }
 0x6ac   :  { %3254 = vrot.lane.b32.xlu0 %v5000_v33, %s4712_s27 }
 0x6b0   :  { %3252 = vrot.lane.b32.xlu0 %v4966_v8, %s4712_s27 }
 0x6b4   :  { %3354 = vrot.lane.b32.xlu0 %v5012_v6, %s4712_s27 }
 0x6b8   :  { %3352 = vrot.lane.b32.xlu0 %v4978_v14, %s4712_s27 }
 0x6c3   :  { %v2599_v2 = vpop.xlane.xlu0 %2598 }
 0x6c4   :  { %4659 = vrcp.f32 %v2599_v2 }
 0x6cb   :  { %v2605_v11 = vpop.xlane.xlu0 %2604 }
 0x6cc   :  { %4661 = vrcp.f32 %v2605_v11 }
 0x6ce   :  { %v4660_v7 = vpop.eup %4659  ;;  %v2602_v12 = vpop.xlane.xlu1 %2601 }
 0x6cf   :  { %v2629_v33 = vmul.f32 %v4660_v7, %v5421_v3  ;;  %4663 = vrcp.f32 %v2602_v12  ;;  %v2934_v25 = vpop.permute.xlu0 %2933 }
 0x6d0   :  { %v2939_v48 = vsel %vm648_vm3, %v2934_v25, 0 }
 0x6d1   :  { %v2637_v8 = vpack.c.bf16 %v2629_v33, %v2629_v33 }
 0x6d3   :  { %4427 = vmatmul.mubr.msk.bf16.vlgmr.msra.gmra.mrb[80].mxu0 %vm644_vm4, %v2637_v8 }
 0x6d4   :  { %4437 = vmatpush3.bf16.msra.mxu0 %v2747_v57  ;;  %4438 = vmatprep.mubr.msk.bf16.mxu0 %vm4708_vm1, %v4707_v0 }
 0x6d5   :  { %4448 = vmatprep.subr.bf16.mxu0 %v4707_v0 }
 0x6d6   :  { %v4662_v14 = vpop.eup %4661  ;;  %v2608_v6 = vpop.xlane.xlu1 %2607 }
 0x6d7   :  { %v2631_v38 = vmul.f32 %v4662_v14, %v5425_v10  ;;  %4665 = vrcp.f32 %v2608_v6 }
 0x6d9   :  { %v4664_v62 = vpop.eup %4663  ;;  %v2639_v63 = vpack.c.bf16 %v2631_v38, %v2631_v38 }
 0x6da   :  { %v2630_v56 = vmul.f32 %v4664_v62, %v5429_v53 }
 0x6db   :  { %4439 = vmatmul.mubr.msk.bf16.vlgmr.msra.gmra.mrb[84].mxu0 %vm644_vm4, %v2639_v63 }
 0x6dc   :  { %4449 = vmatpush3.bf16.msra.mxu0 %v2843_v55  ;;  %v2638_v3 = vpack.c.bf16 %v2630_v56, %v2630_v56  ;;  %4450 = vmatprep.mubr.msk.bf16.mxu0 %vm4708_vm1, %v4707_v0 }
 0x6dd   :  { %4460 = vmatprep.subr.bf16.mxu0 %v4707_v0 }
 0x6de   :  { %v2614_v31 = vpop.xlane.xlu1 %2613  ;;  %4433 = vmatmul.mubr.msk.bf16.vlgmr.msra.gmra.mrb[80].mxu1 %vm644_vm4, %v2638_v3 }
 0x6df   :  { %4667 = vrcp.f32 %v2614_v31  ;;  %4443 = vmatpush3.bf16.msra.mxu1 %v2795_v61  ;;  %4444 = vmatprep.mubr.msk.bf16.mxu1 %vm4708_vm1, %v4707_v0 }
 0x6e0   :  { %4454 = vmatprep.subr.bf16.mxu1 %v4707_v0 }
 0x6e1   :  { %v4666_v19 = vpop.eup %4665 }
 0x6e2   :  { %v2632_v35 = vmul.f32 %v4666_v19, %v5435_v52  ;;  %v2982_v24 = vpop.permute.xlu1 %2981 }
 0x6e3   :  { %v2987_v16 = vsel %vm648_vm3, %v2982_v24, 0 }
 0x6e4   :  { %v2640_v10 = vpack.c.bf16 %v2632_v35, %v2632_v35 }
 0x6e6   :  { %4445 = vmatmul.mubr.msk.bf16.vlgmr.msra.gmra.mrb[84].mxu1 %vm644_vm4, %v2640_v10  ;;  %v3105_v32 = vpop.permute.xlu1 %3104 }
 0x6e7   :  { %4455 = vmatpush3.bf16.msra.mxu1 %v2891_v37  ;;  %4456 = vmatprep.mubr.msk.bf16.mxu1 %vm4708_vm1, %v4707_v0  ;;  %v3110_v43 = vsel %vm170_vm0, %v3105_v32, 0 }
 0x6e8   :  { %4466 = vmatprep.subr.bf16.mxu1 %v4707_v0 }
 0x6e9   :  { %v4668_v47 = vpop.eup %4667 }
 0x6ea   :  { %v2634_v53 = vmul.f32 %v4668_v47, %v5441_v40 }
 0x6ec   :  { %v2642_v50 = vpack.c.bf16 %v2634_v53, %v2634_v53 }
 0x6ee   :  { %4457 = vmatmul.mubr.msk.bf16.vlgmr.msra.gmra.mrb[88].mxu1 %vm644_vm4, %v2642_v50 }
 0x6ef   :  { %4467 = vmatpush3.bf16.msra.mxu1 %v2987_v16  ;;  %4468 = vmatprep.mubr.msk.bf16.mxu1 %vm4708_vm1, %v4707_v0 }
 0x6f0   :  { %4478 = vmatprep.subr.bf16.mxu1 %v4707_v0 }
 0x700   :  { %v2611_v27 = vpop.xlane.xlu0 %2610 }
 0x701   :  { %4669 = vrcp.f32 %v2611_v27 }
 0x704   :  { %v2617_v45 = vpop.xlane.xlu0 %2616 }
 0x705   :  { %4671 = vrcp.f32 %v2617_v45 }
 0x70b   :  { %v4670_v46 = vpop.eup %4669 }
 0x70c   :  { %v2633_v30 = vmul.f32 %v4670_v46, %v5457_v58  ;;  %v3155_v58 = vpop.permute.xlu1 %3154 }
 0x70d   :  { %v3160_v20 = vsel %vm170_vm0, %v3155_v58, 0 }
 0x70e   :  { %v2641_v4 = vpack.c.bf16 %v2633_v30, %v2633_v30 }
 0x70f   :  { %v4672_v52 = vpop.eup %4671 }
 0x710   :  { %4451 = vmatmul.mubr.msk.bf16.vlgmr.msra.gmra.mrb[88].mxu0 %vm644_vm4, %v2641_v4  ;;  %v2635_v40 = vmul.f32 %v4672_v52, %v5463_v59  ;;  %v3205_v9 = vpop.permute.xlu1 %3204 }
 0x711   :  { %4461 = vmatpush3.bf16.msra.mxu0 %v2939_v48  ;;  %4462 = vmatprep.mubr.msk.bf16.mxu0 %vm4708_vm1, %v4707_v0  ;;  %v3210_v28 = vsel %vm170_vm0, %v3205_v9, 0 }
 0x712   :  { %4472 = vmatprep.subr.bf16.mxu0 %v4707_v0  ;;  %v2643_v42 = vpack.c.bf16 %v2635_v40, %v2635_v40 }
 0x713   :  { %v2620_v39 = vpop.xlane.xlu0 %2619 }
 0x714   :  { %4673 = vrcp.f32 %v2620_v39 }
 0x717   :  { %v3055_v49 = vpop.permute.xlu0 %3054 }
 0x718   :  { %v3060_v44 = vsel %vm170_vm0, %v3055_v49, 0  ;;  %4463 = vmatmul.mubr.msk.bf16.vlgmr.msra.gmra.mrb[92].mxu0 %vm644_vm4, %v2643_v42 }
 0x719   :  { %4474 = vmatprep.mubr.msk.bf16.mxu0 %vm4708_vm1, %v4707_v0 }
 0x71a   :  { %4473 = vmatpush3.bf16.xpose.msra.mxu0 %v3060_v44 }
 0x71b   :  { %v3053_v54 = vpop.permute.xlu0 %3052  ;;  %4484 = vmatprep.subr.bf16.mxu0 %v4707_v0 }
 0x71e   :  { %v4674_v59 = vpop.eup %4673 }
 0x71f   :  { %v2636_v21 = vmul.f32 %v4674_v59, %v5476_v1  ;;  %v3103_v23 = vpop.permute.xlu0 %3102  ;;  %v3203_v1 = vpop.permute.xlu1 %3202 }
 0x721   :  { %4475 = vmatmul.mubr.msk.bf16.vlgmr.msra.gmra.mrb[96].mxu0 %vm170_vm0, %v3053_v54  ;;  %v2644_v13 = vpack.c.bf16 %v2636_v21, %v2636_v21 }
 0x722   :  { %4485 = vmatpush3.bf16.xpose.msra.mxu0 %v3160_v20  ;;  %4486 = vmatprep.mubr.msk.bf16.mxu0 %vm4708_vm1, %v4707_v0 }
 0x723   :  { %4469 = vmatmul.mubr.msk.bf16.vlgmr.msra.gmra.mrb[92].mxu1 %vm644_vm4, %v2644_v13  ;;  %v3153_v26 = vpop.permute.xlu0 %3152  ;;  %4496 = vmatprep.subr.bf16.mxu0 %v4707_v0  ;;  %v3305_v11 = vpop.permute.xlu1 %3304 }
 0x724   :  { %4479 = vmatpush3.bf16.xpose.msra.mxu1 %v3110_v43  ;;  %4480 = vmatprep.mubr.msk.bf16.mxu1 %vm4708_vm1, %v4707_v0  ;;  %v3310_v57 = vsel %vm170_vm0, %v3305_v11, 0 }
 0x725   :  { %4490 = vmatprep.subr.bf16.mxu1 %v4707_v0 }
 0x727   :  { %v3255_v2 = vpop.permute.xlu0 %3254  ;;  %v3303_v33 = vpop.permute.xlu1 %3302 }
 0x728   :  { %v3260_v5 = vsel %vm170_vm0, %v3255_v2, 0 }
 0x729   :  { %4487 = vmatmul.mubr.msk.bf16.vlgmr.msra.gmra.mrb[100].mxu0 %vm170_vm0, %v3153_v26 }
 0x72a   :  { %4497 = vmatpush3.bf16.xpose.msra.mxu0 %v3260_v5  ;;  %4498 = vmatprep.mubr.msk.bf16.mxu0 %vm4708_vm1, %v4707_v0 }
 0x72b   :  { %4481 = vmatmul.mubr.msk.bf16.vlgmr.msra.gmra.mrb[96].mxu1 %vm170_vm0, %v3103_v23  ;;  %v3253_v7 = vpop.permute.xlu0 %3252  ;;  %4508 = vmatprep.subr.bf16.mxu0 %v4707_v0  ;;  %v3405_v14 = vpop.permute.xlu1 %3404 }
 0x72c   :  { %4491 = vmatpush3.bf16.xpose.msra.mxu1 %v3210_v28  ;;  %4492 = vmatprep.mubr.msk.bf16.mxu1 %vm4708_vm1, %v4707_v0  ;;  %v3410_v38 = vsel %vm170_vm0, %v3405_v14, 0 }
 0x72d   :  { %4502 = vmatprep.subr.bf16.mxu1 %v4707_v0 }
 0x72f   :  { %v3355_v12 = vpop.permute.xlu0 %3354  ;;  %v3403_v62 = vpop.permute.xlu1 %3402 }
 0x730   :  { %v3360_v8 = vsel %vm170_vm0, %v3355_v12, 0 }
 0x731   :  { %4499 = vmatmul.mubr.msk.bf16.vlgmr.msra.gmra.mrb[104].mxu0 %vm170_vm0, %v3253_v7 }
 0x732   :  { %4509 = vmatpush3.bf16.xpose.msra.mxu0 %v3360_v8  ;;  %4510 = vmatprep.mubr.msk.bf16.mxu0 %vm4708_vm1, %v4707_v0 }
 0x733   :  { %4493 = vmatmul.mubr.msk.bf16.vlgmr.msra.gmra.mrb[100].mxu1 %vm170_vm0, %v3203_v1  ;;  %4520 = vmatprep.subr.bf16.mxu0 %v4707_v0  ;;  %v3353_v6 = vpop.permute.xlu0 %3352 }
 0x734   :  { %4503 = vmatpush3.bf16.xpose.msra.mxu1 %v3310_v57  ;;  %4504 = vmatprep.mubr.msk.bf16.mxu1 %vm4708_vm1, %v4707_v0 }
 0x735   :  { %4514 = vmatprep.subr.bf16.mxu1 %v4707_v0 }
 0x739   :  { %4511 = vmatmul.mubr.msk.bf16.vlgmr.msra.gmra.mrb[108].mxu0 %vm170_vm0, %v3353_v6 }
 0x73a   :  { %4522 = vmatprep.mubr.msk.bf16.mxu0 %vm4708_vm1, %v4707_v0 }
 0x73b   :  { %4505 = vmatmul.mubr.msk.bf16.vlgmr.msra.gmra.mrb[104].mxu1 %vm170_vm0, %v3303_v33 }
 0x73c   :  { %4515 = vmatpush3.bf16.xpose.msra.mxu1 %v3410_v38  ;;  %4516 = vmatprep.mubr.msk.bf16.mxu1 %vm4708_vm1, %v4707_v0 }
 0x73d   :  { %4526 = vmatprep.subr.bf16.mxu1 %v4707_v0 }
 0x743   :  { %4517 = vmatmul.mubr.msk.bf16.vlgmr.msra.gmra.mrb[108].mxu1 %vm170_vm0, %v3403_v62 }
 0x744   :  { %4528 = vmatprep.mubr.msk.bf16.mxu1 %vm4708_vm1, %v4707_v0 }
 0x7a6   :  { %v2687_v63 = vpop.f32.mrb[80].mxu0 }
 0x7a7   :  { %v4428_v56 = vpop.f32.mrb[81].mxu0  ;;  %v3037_v37 = vsel %vm1022_vm5, %v2687_v63, 0.0 }
 0x7a8   :  { %v2690_v55 = vpop.f32.mrb[82].mxu0 }
 0x7a9   :  { %v4429_v3 = vpop.f32.mrb[83].mxu0 }
 0x7ae   :  { %v2783_v61 = vpop.f32.mrb[84].mxu0 }
 0x7af   :  { %v4440_v31 = vpop.f32.mrb[85].mxu0  ;;  %v3040_v16 = vsel %vm1022_vm5, %v2783_v61, 0.0 }
 0x7b0   :  { %v2786_v19 = vpop.f32.mrb[86].mxu0 }
 0x7b1   :  { %v2735_v35 = vpop.f32.mrb[80].mxu1  ;;  %v4441_v10 = vpop.f32.mrb[87].mxu0 }
 0x7b2   :  { %v3038_v47 = vsel %vm1022_vm5, %v2735_v35, 0.0  ;;  %v4434_v53 = vpop.f32.mrb[81].mxu1 }
 0x7b3   :  { %v3039_v24 = vadd.f32 %v3038_v47, %v3037_v37  ;;  %v2738_v50 = vpop.f32.mrb[82].mxu1 }
 0x7b4   :  { %v4435_v25 = vpop.f32.mrb[83].mxu1 }
 0x7b5   :  { %v3041_v27 = vadd.f32 %v3040_v16, %v3039_v24 }
 0x7b9   :  { %v2831_v45 = vpop.f32.mrb[84].mxu1 }
 0x7ba   :  { %v3042_v46 = vsel %vm1022_vm5, %v2831_v45, 0.0  ;;  %v4446_v30 = vpop.f32.mrb[85].mxu1 }
 0x7bb   :  { %v5584_v4 = vadd.f32 %v3042_v46, %v3041_v27  ;;  %v2834_v52 = vpop.f32.mrb[86].mxu1 }
 0x7bc   :  { %v4447_v48 = vpop.f32.mrb[87].mxu1 }
 0x7c1   :  { %v2927_v40 = vpop.f32.mrb[88].mxu1 }
 0x7c2   :  { %v4458_v39 = vpop.f32.mrb[89].mxu1 }
 0x7c3   :  { %v2930_v32 = vpop.f32.mrb[90].mxu1 }
 0x7c4   :  { %v4459_v42 = vpop.f32.mrb[91].mxu1 }
 0x7e3   :  { %v2879_v49 = vpop.f32.mrb[88].mxu0 }
 0x7e4   :  { %v4452_v44 = vpop.f32.mrb[89].mxu0 }
 0x7e5   :  { %v2882_v58 = vpop.f32.mrb[90].mxu0 }
 0x7e6   :  { %v4453_v54 = vpop.f32.mrb[91].mxu0 }
 0x7eb   :  { %v2975_v59 = vpop.f32.mrb[92].mxu0 }
 0x7ec   :  { %v4464_v9 = vpop.f32.mrb[93].mxu0 }
 0x7ed   :  { %v2978_v21 = vpop.f32.mrb[94].mxu0 }
 0x7ee   :  { %v4465_v20 = vpop.f32.mrb[95].mxu0 }
 0x7f4   :  { %v3096_v23 = vpop.f32.mrb[96].mxu0 }
 0x7f5   :  { %v3452_v43 = vmul.f32 0.35355338, %v3096_v23  ;;  %v4476_v13 = vpop.f32.mrb[97].mxu0 }
 0x7f6   :  { %v3023_v26 = vpop.f32.mrb[92].mxu1  ;;  %v3099_v1 = vpop.f32.mrb[98].mxu0 }
 0x7f7   :  { %v4470_v2 = vpop.f32.mrb[93].mxu1  ;;  %v3460_v5 = vsel %vm547_vm2, %v3452_v43, -inf  ;;  %v4477_v28 = vpop.f32.mrb[99].mxu0 }
 0x7f8   :  { %3461 = vmax.xlane.f32.xlu0 %v3460_v5  ;;  %v3026_v11 = vpop.f32.mrb[94].mxu1 }
 0x7f9   :  { %v4471_v7 = vpop.f32.mrb[95].mxu1 }
 0x7fc   :  { %v3196_v12 = vpop.f32.mrb[100].mxu0 }
 0x7fd   :  { %v3454_v33 = vmul.f32 0.35355338, %v3196_v12  ;;  %v4488_v8 = vpop.f32.mrb[101].mxu0 }
 0x7fe   :  { %v3146_v57 = vpop.f32.mrb[96].mxu1  ;;  %v3199_v14 = vpop.f32.mrb[102].mxu0 }
 0x7ff   :  { %v3453_v6 = vmul.f32 0.35355338, %v3146_v57  ;;  %v4482_v38 = vpop.f32.mrb[97].mxu1  ;;  %v3466_v62 = vsel %vm547_vm2, %v3454_v33, -inf  ;;  %v4489_v63 = vpop.f32.mrb[103].mxu0 }
 0x800   :  { %3467 = vmax.xlane.f32.xlu0 %v3466_v62  ;;  %v3149_v56 = vpop.f32.mrb[98].mxu1 }
 0x801   :  { %v4483_v55 = vpop.f32.mrb[99].mxu1  ;;  %v3463_v3 = vsel %vm547_vm2, %v3453_v6, -inf }
 0x802   :  { %3464 = vmax.xlane.f32.xlu1 %v3463_v3 }
 0x804   :  { %v3296_v61 = vpop.f32.mrb[104].mxu0 }
 0x805   :  { %v4500_v31 = vpop.f32.mrb[105].mxu0  ;;  %v3456_v37 = vmul.f32 0.35355338, %v3296_v61 }
 0x806   :  { %v3246_v19 = vpop.f32.mrb[100].mxu1  ;;  %v3299_v35 = vpop.f32.mrb[106].mxu0 }
 0x807   :  { %v5589_v10 = vmul.f32 0.35355338, %v3246_v19  ;;  %v4494_v47 = vpop.f32.mrb[101].mxu1  ;;  %v4501_v53 = vpop.f32.mrb[107].mxu0  ;;  %v3472_v25 = vsel %vm547_vm2, %v3456_v37, -inf }
 0x808   :  { %v3249_v24 = vpop.f32.mrb[102].mxu1 }
 0x809   :  { %v3469_v50 = vsel %vm547_vm2, %v5589_v10, -inf  ;;  %v4495_v16 = vpop.f32.mrb[103].mxu1 }
 0x80a   :  { %3470 = vmax.xlane.f32.xlu0 %v3469_v50 }
 0x80c   :  { %v3396_v27 = vpop.f32.mrb[108].mxu0 }
 0x80d   :  { %v3458_v45 = vmul.f32 0.35355338, %v3396_v27  ;;  %v4512_v46 = vpop.f32.mrb[109].mxu0 }
 0x80e   :  { %v3346_v30 = vpop.f32.mrb[104].mxu1  ;;  %3473 = vmax.xlane.f32.xlu0 %v3472_v25  ;;  %v3399_v52 = vpop.f32.mrb[110].mxu0 }
 0x80f   :  { %v5594_v48 = vmul.f32 0.35355338, %v3346_v30  ;;  %v4506_v40 = vpop.f32.mrb[105].mxu1  ;;  %v3478_v39 = vsel %vm547_vm2, %v3458_v45, -inf  ;;  %v4513_v32 = vpop.f32.mrb[111].mxu0 }
 0x810   :  { %v3349_v42 = vpop.f32.mrb[106].mxu1 }
 0x811   :  { %v3475_v49 = vsel %vm547_vm2, %v5594_v48, -inf  ;;  %v4507_v44 = vpop.f32.mrb[107].mxu1 }
 0x812   :  { %3476 = vmax.xlane.f32.xlu1 %v3475_v49  ;;  %3479 = vmax.xlane.f32.xlu0 %v3478_v39 }
 0x816   :  { %v3446_v58 = vpop.f32.mrb[108].mxu1 }
 0x817   :  { %v3459_v54 = vmul.f32 0.35355338, %v3446_v58  ;;  %v4518_v59 = vpop.f32.mrb[109].mxu1 }
 0x818   :  { %v3449_v9 = vpop.f32.mrb[110].mxu1 }
 0x819   :  { %v3481_v21 = vsel %vm547_vm2, %v3459_v54, -inf  ;;  %v4519_v20 = vpop.f32.mrb[111].mxu1 }
 0x81a   :  { %3482 = vmax.xlane.f32.xlu1 %v3481_v21 }
 0x885   :  { %v3462_v23 = vpop.xlane.xlu0 %3461 }
 0x886   :  { %v3484_v13 = vsub.f32 %v3452_v43, %v3462_v23 }
 0x888   :  { %v3492_v26 = vmul.f32 1.442695, %v3484_v13 }
 0x88a   :  { %4675 = vpow2.f32 %v3492_v26 }
 0x88d   :  { %v3468_v1 = vpop.xlane.xlu0 %3467 }
 0x88e   :  { %v3486_v2 = vsub.f32 %v3454_v33, %v3468_v1 }
 0x88f   :  { %v3465_v5 = vpop.xlane.xlu1 %3464 }
 0x890   :  { %v3496_v28 = vmul.f32 1.442695, %v3486_v2  ;;  %v3485_v11 = vsub.f32 %v3453_v6, %v3465_v5 }
 0x892   :  { %4677 = vpow2.f32 %v3496_v28  ;;  %v3494_v7 = vmul.f32 1.442695, %v3485_v11 }
 0x894   :  { %v5600_v12 = vpop.eup %4675  ;;  %4679 = vpow2.f32 %v3494_v7 }
 0x895   :  { %v3508_v8 = vsel %vm547_vm2, %v5600_v12, 0.0 }
 0x896   :  { %3509 = vadd.xlane.f32.xlu0 %v3508_v8 }
 0x897   :  { %v3471_v6 = vpop.xlane.xlu0 %3470 }
 0x898   :  { %v3487_v31 = vsub.f32 %v5589_v10, %v3471_v6 }
 0x89b   :  { %v3474_v38 = vpop.xlane.xlu0 %3473 }
 0x89c   :  { %v5604_v57 = vpop.eup %4677  ;;  %v3488_v62 = vsub.f32 %v3456_v37, %v3474_v38 }
 0x89d   :  { %v3514_v43 = vsel %vm547_vm2, %v5604_v57, 0.0 }
 0x89e   :  { %v5608_v14 = vpop.eup %4679  ;;  %3515 = vadd.xlane.f32.xlu0 %v3514_v43  ;;  %v3500_v55 = vmul.f32 1.442695, %v3488_v62 }
 0x89f   :  { %v3511_v33 = vsel %vm547_vm2, %v5608_v14, 0.0  ;;  %v3477_v63 = vpop.xlane.xlu1 %3476  ;;  %v3480_v56 = vpop.xlane.xlu0 %3479 }
 0x8a0   :  { %3512 = vadd.xlane.f32.xlu1 %v3511_v33  ;;  %v3490_v3 = vsub.f32 %v3458_v45, %v3480_v56  ;;  %4681 = vpow2.f32 %v3500_v55  ;;  %v3489_v25 = vsub.f32 %v5594_v48, %v3477_v63 }
 0x8a2   :  { %v3504_v19 = vmul.f32 1.442695, %v3490_v3  ;;  %v3502_v27 = vmul.f32 1.442695, %v3489_v25 }
 0x8a4   :  { %4683 = vpow2.f32 %v3504_v19 }
 0x8a7   :  { %v3483_v61 = vpop.xlane.xlu1 %3482 }
 0x8a8   :  { %v3491_v35 = vsub.f32 %v3459_v54, %v3483_v61 }
 0x8aa   :  { %v3506_v47 = vmul.f32 1.442695, %v3491_v35 }
 0x8b1   :  { %3604 = vrot.lane.b32.xlu1 %v5181_v17, %s4712_s27  ;;  %v3498_v17 = vmul.f32 1.442695, %v3487_v31 }
 0x8b3   :  { %4685 = vpow2.f32 %v3498_v17 }
 0x8b4   :  { %3556 = vrot.lane.b32.xlu0 %v5175_v34, %s4712_s27  ;;  %4687 = vpow2.f32 %v3506_v47  ;;  %v5619_v34 = vpop.eup %4681 }
 0x8b5   :  { %3652 = vrot.lane.b32.xlu1 %v5191_v15, %s4712_s27  ;;  %v3520_v15 = vsel %vm547_vm2, %v5619_v34, 0.0  ;;  %v5623_v37 = vpop.eup %4683  ;;  %4689 = vpow2.f32 %v3502_v27 }
 0x8b6   :  { %v3526_v10 = vsel %vm547_vm2, %v5623_v37, 0.0 }
 0x8bd   :  { %v5625_v53 = vpop.eup %4685 }
 0x8be   :  { %v5629_v24 = vpop.eup %4687  ;;  %v3517_v50 = vsel %vm547_vm2, %v5625_v53, 0.0 }
 0x8bf   :  { %v3529_v16 = vsel %vm547_vm2, %v5629_v24, 0.0  ;;  %v5641_v45 = vpop.eup %4689 }
 0x8c0   :  { %v3523_v46 = vsel %vm547_vm2, %v5641_v45, 0.0 }
 0x8d3   :  { %3521 = vadd.xlane.f32.xlu0 %v3520_v15 }
 0x8d7   :  { %3527 = vadd.xlane.f32.xlu0 %v3526_v10 }
 0x8d9   :  { %3518 = vadd.xlane.f32.xlu1 %v3517_v50 }
 0x8db   :  { %3530 = vadd.xlane.f32.xlu0 %v3529_v16 }
 0x8ea   :  { %3700 = vrot.lane.b32.xlu1 %v5197_v22, %s4712_s27 }
 0x8f1   :  { %3748 = vrot.lane.b32.xlu0 %v5203_v36, %s4712_s27 }
 0x8f5   :  { %3964 = vrot.lane.b32.xlu0 %v5386_v60, %s4713_s28 }
 0x90e   :  { %3524 = vadd.xlane.f32.xlu1 %v3523_v46 }
 0x91f   :  { %3796 = vrot.lane.b32.xlu1 %v5209_v18, %s4712_s27 }
 0x923   :  { %v3510_v22 = vpop.xlane.xlu0 %3509  ;;  %3844 = vrot.lane.b32.xlu1 %v5237_v29, %s4712_s27 }
 0x924   :  { %4691 = vrcp.f32 %v3510_v22 }
 0x927   :  { %3892 = vrot.lane.b32.xlu1 %v5249_v51, %s4712_s27 }
 0x92b   :  { %v3516_v36 = vpop.xlane.xlu0 %3515  ;;  %3968 = vrot.lane.b32.xlu1 %v5584_v4, %s4714_s29 }
 0x92c   :  { %4693 = vrcp.f32 %v3516_v36 }
 0x92d   :  { %v3513_v60 = vpop.xlane.xlu1 %3512 }
 0x92e   :  { %v4692_v30 = vpop.eup %4691  ;;  %4695 = vrcp.f32 %v3513_v60  ;;  %v4715_v60 = vmov 1  }
 0x92f   :  { %v3540_v52 = vmul.f32 %v4692_v30, %v5600_v12  ;;  %v3557_v48 = vpop.permute.xlu0 %3556  ;;  %v91_v30 = vpack.c.b16 %v4715_v60, %v4715_v60 }
 0x930   :  { %v3562_v18 = vsel %vm648_vm3, %v3557_v48, 0  ;;  %v28_v48 = vld [vmem:[%s5750_s0 + $0xa] sm:$0x3] }
 0x931   :  { %4521 = vmatpush3.bf16.msra.mxu0 %v3562_v18  ;;  %v3605_v40 = vpop.permute.xlu1 %3604  ;;  %v3548_v29 = vpack.c.bf16 %v3540_v52, %v3540_v52  ;;  %vm99_vm6 = vcmp.ne.s16.totalorder %v91_v30, 0  ;;  %v27_v52 = vld [vmem:[%s5750_s0] sm:$0x3]  ;;  %v35_v18 = vld [vmem:[%s5750_s0 + $0x2] sm:$0x3] }
 0x932   :  { %v3610_v39 = vsel %vm648_vm3, %v3605_v40, 0  ;;  %4532 = vmatprep.subr.bf16.mxu0 %v4707_v0  ;;  %v36_v40 = vld [vmem:[%s5750_s0 + $0xc] sm:$0x3] }
 0x933   :  { %4527 = vmatpush3.bf16.msra.mxu1 %v3610_v39  ;;  %v108_v39 = vsel %vm99_vm6, %v28_v48, 0 }
 0x934   :  { %4523 = vmatmul.mubr.msk.bf16.vlgmr.msra.gmra.mrb[112].mxu0 %vm644_vm4, %v3548_v29  ;;  %4538 = vmatprep.subr.bf16.mxu1 %v4707_v0  ;;  %v107_v29 = vsel %vm99_vm6, %v27_v52, 0 }
 0x935   :  { %v3653_v51 = vpop.permute.xlu1 %3652  ;;  %4534 = vmatprep.mubr.msk.bf16.mxu0 %vm4708_vm1, %v4707_v0 }
 0x936   :  { %v4694_v4 = vpop.eup %4693  ;;  %v3658_v32 = vsel %vm648_vm3, %v3653_v51, 0  ;;  %v139_v51 = vsel %vm99_vm6, %v35_v18, 0 }
 0x937   :  { %v3542_v42 = vmul.f32 %v4694_v4, %v5604_v57  ;;  %4533 = vmatpush3.bf16.msra.mxu0 %v3658_v32  ;;  %v29_v4 = vld [vmem:[%s5750_s0 + $0x14] sm:$0x3]  ;;  %v37_v32 = vld [vmem:[%s5750_s0 + $0x16] sm:$0x3] }
 0x938   :  { %v4696_v49 = vpop.eup %4695  ;;  %4544 = vmatprep.subr.bf16.mxu0 %v4707_v0 }
 0x939   :  { %v3541_v44 = vmul.f32 %v4696_v49, %v5608_v14  ;;  %v3550_v58 = vpack.c.bf16 %v3542_v42, %v3542_v42  ;;  %v115_v42 = vunpack.c.l.bf16 %v107_v29  ;;  %v116_v49 = vunpack.c.l.bf16 %v108_v39 }
 0x93b   :  { %v3549_v54 = vpack.c.bf16 %v3541_v44, %v3541_v44  ;;  %v140_v44 = vsel %vm99_vm6, %v36_v40, 0 }
 0x93c   :  { %4535 = vmatmul.mubr.msk.bf16.vlgmr.msra.gmra.mrb[116].mxu0 %vm644_vm4, %v3550_v58  ;;  %v147_v58 = vunpack.c.l.bf16 %v139_v51 }
 0x93d   :  { %4529 = vmatmul.mubr.msk.bf16.vlgmr.msra.gmra.mrb[112].mxu1 %vm644_vm4, %v3549_v54  ;;  %4546 = vmatprep.mubr.msk.bf16.mxu0 %vm4708_vm1, %v4707_v0  ;;  %v4716_v54 = vmov 0  }
 0x93e   :  { %4540 = vmatprep.mubr.msk.bf16.mxu1 %vm4708_vm1, %v4707_v0 }
 0x960   :  { %v3522_v59 = vpop.xlane.xlu0 %3521 }
 0x961   :  { %4697 = vrcp.f32 %v3522_v59  ;;  %v119_v59 = vunpack.c.l.bf16 %v4716_v54 }
 0x964   :  { %v3528_v9 = vpop.xlane.xlu0 %3527 }
 0x966   :  { %v3519_v21 = vpop.xlane.xlu1 %3518 }
 0x967   :  { %4699 = vrcp.f32 %v3519_v21  ;;  %v141_v21 = vsel %vm99_vm6, %v37_v32, 0 }
 0x968   :  { %v3531_v20 = vpop.xlane.xlu0 %3530  ;;  %4701 = vrcp.f32 %v3528_v9  ;;  %v109_v9 = vsel %vm99_vm6, %v29_v4, 0 }
 0x96a   :  { %v3701_v23 = vpop.permute.xlu1 %3700 }
 0x96b   :  { %v4698_v13 = vpop.eup %4697  ;;  %v3706_v26 = vsel %vm648_vm3, %v3701_v23, 0  ;;  %v30_v23 = vld [vmem:[%s5750_s0 + $0x1e] sm:$0x3] }
 0x96c   :  { %v3544_v1 = vmul.f32 %v4698_v13, %v5619_v34  ;;  %v3749_v2 = vpop.permute.xlu0 %3748  ;;  %4539 = vmatpush3.bf16.msra.mxu1 %v3706_v26  ;;  %v38_v13 = vld [vmem:[%s5750_s0 + $0x20] sm:$0x3]  ;;  %v117_v26 = vunpack.c.l.bf16 %v109_v9 }
 0x96d   :  { %v3754_v5 = vsel %vm648_vm3, %v3749_v2, 0  ;;  %4550 = vmatprep.subr.bf16.mxu1 %v4707_v0  ;;  %v125_v2 = vsel %vm123_vm7, %v116_v49, 0.0 }
 0x96e   :  { %4545 = vmatpush3.bf16.msra.mxu0 %v3754_v5  ;;  %v3552_v28 = vpack.c.bf16 %v3544_v1, %v3544_v1  ;;  %v124_v1 = vsel %vm123_vm7, %v115_v42, 0.0  ;;  %v149_v5 = vunpack.c.l.bf16 %v141_v21 }
 0x96f   :  { %4556 = vmatprep.subr.bf16.mxu0 %v4707_v0 }
 0x970   :  { %v3965_v49 = vpop.permute.xlu0 %3964 }
 0x971   :  { %v4700_v11 = vpop.eup %4699  ;;  %4547 = vmatmul.mubr.msk.bf16.vlgmr.msra.gmra.mrb[120].mxu0 %vm644_vm4, %v3552_v28  ;;  %v110_v28 = vsel %vm99_vm6, %v30_v23, 0 }
 0x972   :  { %v3543_v7 = vmul.f32 %v4700_v11, %v5625_v53  ;;  %4558 = vmatprep.mubr.msk.bf16.mxu0 %vm4708_vm1, %v4707_v0  ;;  %v4702_v57 = vpop.eup %4701  ;;  %v126_v11 = vadd.f32 %v125_v2, %v124_v1 }
 0x973   :  { %v3546_v33 = vmul.f32 %v4702_v57, %v5623_v37  ;;  %v127_v57 = vsel %vm123_vm7, %v117_v26, 0.0 }
 0x974   :  { %v3551_v12 = vpack.c.bf16 %v3543_v7, %v3543_v7  ;;  %v142_v7 = vsel %vm99_vm6, %v38_v13, 0 }
 0x975   :  { %v3554_v63 = vpack.c.bf16 %v3546_v33, %v3546_v33  ;;  %v128_v33 = vadd.f32 %v127_v57, %v126_v11 }
 0x976   :  { %4541 = vmatmul.mubr.msk.bf16.vlgmr.msra.gmra.mrb[116].mxu1 %vm644_vm4, %v3551_v12  ;;  %v155_v12 = vsel %vm123_vm7, %v147_v58, 0.0 }
 0x977   :  { %4552 = vmatprep.mubr.msk.bf16.mxu1 %vm4708_vm1, %v4707_v0 }
 0x99b   :  { %v3525_v8 = vpop.xlane.xlu1 %3524 }
 0x99c   :  { %4703 = vrcp.f32 %v3525_v8  ;;  %v118_v8 = vunpack.c.l.bf16 %v110_v28 }
 0x99d   :  { %4705 = vrcp.f32 %v3531_v20  ;;  %v148_v20 = vunpack.c.l.bf16 %v140_v44 }
 0x99f   :  { %v3797_v43 = vpop.permute.xlu1 %3796 }
 0x9a0   :  { %v3802_v14 = vsel %vm648_vm3, %v3797_v43, 0  ;;  %v150_v43 = vunpack.c.l.bf16 %v142_v7 }
 0x9a1   :  { %4551 = vmatpush3.bf16.msra.mxu1 %v3802_v14  ;;  %v156_v14 = vsel %vm123_vm7, %v148_v20, 0.0 }
 0x9a2   :  { %4562 = vmatprep.subr.bf16.mxu1 %v4707_v0 }
 0x9a3   :  { %v3845_v6 = vpop.permute.xlu1 %3844 }
 0x9a4   :  { %v3850_v38 = vsel %vm648_vm3, %v3845_v6, 0  ;;  %v157_v6 = vadd.f32 %v156_v14, %v155_v12 }
 0x9a5   :  { %4557 = vmatpush3.bf16.msra.mxu0 %v3850_v38  ;;  %v158_v38 = vsel %vm123_vm7, %v149_v5, 0.0 }
 0x9a6   :  { %v4704_v62 = vpop.eup %4703 }
 0x9a7   :  { %v3545_v56 = vmul.f32 %v4704_v62, %v5641_v45  ;;  %v3893_v55 = vpop.permute.xlu1 %3892  ;;  %v4706_v31 = vpop.eup %4705  ;;  %v131_v62 = vsel %vm123_vm7, %v119_v59, 0.0 }
 0x9a8   :  { %4559 = vmatmul.mubr.msk.bf16.vlgmr.msra.gmra.mrb[124].mxu0 %vm644_vm4, %v3554_v63  ;;  %v3898_v3 = vsel %vm648_vm3, %v3893_v55, 0  ;;  %v3547_v19 = vmul.f32 %v4706_v31, %v5629_v24  ;;  %v129_v63 = vsel %vm123_vm7, %v118_v8, 0.0 }
 0x9a9   :  { %v3553_v61 = vpack.c.bf16 %v3545_v56, %v3545_v56  ;;  %v160_v56 = vsel %vm123_vm7, %v150_v43, 0.0  ;;  %v130_v55 = vadd.f32 %v129_v63, %v128_v33 }
 0x9aa   :  { %v3555_v35 = vpack.c.bf16 %v3547_v19, %v3547_v19 }
 0x9ab   :  { %4553 = vmatmul.mubr.msk.bf16.vlgmr.msra.gmra.mrb[120].mxu1 %vm644_vm4, %v3553_v61  ;;  %v132_v61 = vadd.f32 %v131_v62, %v130_v55  ;;  %v3969_v44 = vpop.permute.xlu1 %3968 }
 0x9ac   :  { %4563 = vmatpush3.bf16.msra.mxu1 %v3898_v3  ;;  %4564 = vmatprep.mubr.msk.bf16.mxu1 %vm4708_vm1, %v4707_v0  ;;  %v159_v3 = vadd.f32 %v158_v38, %v157_v6 }
 0x9ad   :  { %v134_v19 = vadd.f32 %v132_v61, %v131_v62 }
 0x9ae   :  { %v161_v31 = vadd.f32 %v160_v56, %v159_v3 }
 0x9b3   :  { %4565 = vmatmul.mubr.msk.bf16.vlgmr.msra.gmra.mrb[124].mxu1 %vm644_vm4, %v3555_v35  ;;  %v163_v35 = vadd.f32 %v161_v31, %v131_v62 }
 0xa07   :  { %v3598_v17 = vpop.f32.mrb[112].mxu0 }
 0xa08   :  { %v4524_v47 = vpop.f32.mrb[113].mxu0  ;;  %v3948_v50 = vsel %vm1022_vm5, %v3598_v17, 0.0  ;;  %v136_v17 = vadd.f32 %v134_v19, %v131_v62 }
 0xa09   :  { %v3601_v34 = vpop.f32.mrb[114].mxu0  ;;  %v165_v47 = vadd.f32 %v163_v35, %v131_v62 }
 0xa0a   :  { %v4525_v15 = vpop.f32.mrb[115].mxu0  ;;  %v138_v34 = vadd.f32 %v136_v17, %v131_v62 }
 0xa0b   :  { %v167_v15 = vadd.f32 %v165_v47, %v131_v62 }
 0xa0f   :  { %v3694_v37 = vpop.f32.mrb[116].mxu0 }
 0xa10   :  { %v4536_v53 = vpop.f32.mrb[117].mxu0  ;;  %v3646_v10 = vpop.f32.mrb[112].mxu1  ;;  %v3951_v24 = vsel %vm1022_vm5, %v3694_v37, 0.0  ;;  %v169_v37 = vadd.f32 %v167_v15, %v131_v62 }
 0xa11   :  { %v3949_v16 = vsel %vm1022_vm5, %v3646_v10, 0.0  ;;  %v3697_v25 = vpop.f32.mrb[118].mxu0  ;;  %v4530_v27 = vpop.f32.mrb[113].mxu1 }
 0xa12   :  { %v3950_v45 = vadd.f32 %v3949_v16, %v3948_v50  ;;  %v4537_v0 = vpop.f32.mrb[119].mxu0  ;;  %v3649_v46 = vpop.f32.mrb[114].mxu1  ;;  %v3984_v10 = vcombine.low %v138_v34, %v169_v37 }
 0xa13   :  { %v4531_v22 = vpop.f32.mrb[115].mxu1 }
 0xa14   :  { %v5697_v36 = vadd.f32 %v3951_v24, %v3950_v45  ;;  %3986 = vst [vmem:[%s5751_s1] sm:$0xff] %v3984_v10 }
 0xa44   :  { %v3790_v53 = vpop.f32.mrb[120].mxu0 }
 0xa45   :  { %v4548_v50 = vpop.f32.mrb[121].mxu0 }
 0xa46   :  { %v3793_v16 = vpop.f32.mrb[122].mxu0 }
 0xa47   :  { %v4549_v25 = vpop.f32.mrb[123].mxu0 }
 0xa49   :  { %v3742_v27 = vpop.f32.mrb[116].mxu1 }
 0xa4a   :  { %v3953_v45 = vsel %vm1022_vm5, %v3742_v27, 0.0  ;;  %v4542_v0 = vpop.f32.mrb[117].mxu1 }
 0xa4b   :  { %v3954_v46 = vadd.f32 %v3953_v45, %v5697_v36  ;;  %v3745_v24 = vpop.f32.mrb[118].mxu1  ;;  %v3975_v36 = vsel %vm170_vm0, %v5152_v41, %v3965_v49 }
 0xa4c   :  { %v4543_v22 = vpop.f32.mrb[119].mxu1  ;;  %v3977_v58 = vsel %vm3976_vm8, %v3975_v36, %v3969_v44 }
 0xa4d   :  { %3972 = vrot.lane.b32.xlu0 %v3954_v46, %s4717_s18 }
 0xa7b   :  { %v3886_v60 = vpop.f32.mrb[124].mxu0 }
 0xa7c   :  { %v4560_v30 = vpop.f32.mrb[125].mxu0 }
 0xa7d   :  { %v3889_v52 = vpop.f32.mrb[126].mxu0 }
 0xa7e   :  { %v3838_v48 = vpop.f32.mrb[120].mxu1  ;;  %v4561_v18 = vpop.f32.mrb[127].mxu0 }
 0xa7f   :  { %v4554_v40 = vpop.f32.mrb[121].mxu1 }
 0xa80   :  { %v3841_v29 = vpop.f32.mrb[122].mxu1 }
 0xa81   :  { %v4555_v39 = vpop.f32.mrb[123].mxu1 }
 0xa86   :  { %v3934_v51 = vpop.f32.mrb[124].mxu1 }
 0xa87   :  { %v4566_v4 = vpop.f32.mrb[125].mxu1 }
 0xa88   :  { %v3937_v32 = vpop.f32.mrb[126].mxu1 }
 0xa89   :  { %v4567_v42 = vpop.f32.mrb[127].mxu1 }
 0xabf   :  { %v3973_v54 = vpop.permute.xlu0 %3972 }
 0xac0   :  { %v3979_v59 = vsel %vm3978_vm9, %v3977_v58, %v3973_v54 }
 0xac1   :  { %v3981_v9 = vsel %vm3980_vm10, %v3979_v59, 0.0 }
 0xac2   :  { %3987 = vst [vmem:[%s5751_s1 + $0x8] sm:$0xf] %v3981_v9 }

</bundles_post_ra>
